<compile_context>
chip_gen: v7x
topology: tpu7x:2x2x1
jax: 0.10.0
libtpu: 0.0.40
codegen_flags: <defaults>
</compile_context>

<pallas_src>
import functools

import jax
import jax.numpy as jnp
import numpy as np
from jax.experimental import pallas as pl
from jax.experimental.pallas import tpu as pltpu

BN_EPS = 1e-5


# ---------------------------------------------------------------------------
# Conv3x3 tile helper: padded-scratch taps -> 9 accumulated bf16 MXU dots.
# ---------------------------------------------------------------------------
def _conv3x3_tile(xin, w_ref, edge_ref, y_ref, part_ref, zpad_ref, Ho, Wo):
    Cin = xin.shape[0]
    Cout = w_ref.shape[1]
    rows = Ho * Wo

    # Height-padded, row-flattened tile with one slack row at each end so that
    # every 3x3 tap below is a plain contiguous lane slice (stray lanes = 0).
    zpad_ref[:, 0:2 * Wo] = jnp.zeros((Cin, 2 * Wo), jnp.bfloat16)
    zpad_ref[:, (Ho + 2) * Wo:(Ho + 4) * Wo] = jnp.zeros((Cin, 2 * Wo), jnp.bfloat16)
    zpad_ref[:, 2 * Wo:(Ho + 2) * Wo] = xin

    acc = jnp.zeros((Cout, rows), jnp.float32)
    for ky in range(3):
        for kx in range(3):
            start = (ky + 1) * Wo + kx - 1
            win = zpad_ref[:, start:start + rows]              # (Cin, rows) bf16
            if kx == 0:
                win = win * edge_ref[0:1, :]     # zero the w == 0 column
            elif kx == 2:
                win = win * edge_ref[1:2, :]     # zero the w == Wo-1 column
            acc = acc + jnp.dot(w_ref[3 * ky + kx], win,
                                preferred_element_type=jnp.float32)

    # Per-sample partial sums for the global-batch BN statistics (f32 acc).
    part_ref[:, 0:1] = jnp.sum(acc, axis=1, keepdims=True)
    part_ref[:, 1:2] = jnp.sum(acc * acc, axis=1, keepdims=True)

    # NOTE: Conv2d bias intentionally dropped -- the following train-mode BN
    # subtracts the per-channel batch mean, which cancels it exactly.
    y_ref[...] = acc.astype(jnp.bfloat16)                      # lane-dense store


def _conv3x3_kernel(x_ref, w_ref, edge_ref, y_ref, part_ref, zpad_ref, *, Ho, Wo):
    _conv3x3_tile(x_ref[...], w_ref, edge_ref, y_ref, part_ref, zpad_ref, Ho, Wo)


def _pool_conv3x3_kernel(x_ref, w_ref, edge_ref, sel_ref, y_ref, part_ref,
                         zpad_ref, pscr_ref, *, Ho, Wo):
    # Fused MaxPool2d(2): one copy into a slack-padded scratch, 4 shifted lane
    # slices + max, then an exact 0/1 selection matmul compacts the even-row /
    # even-column positions.  Only contiguous slices, max and dot are used.
    Cin = x_ref.shape[0]
    L = x_ref.shape[1]                                          # (2*Ho)*(2*Wo)
    slack = pscr_ref.shape[1] - L
    pscr_ref[:, L:L + slack] = jnp.zeros((Cin, slack), jnp.bfloat16)
    pscr_ref[:, 0:L] = x_ref[...]
    m = jnp.maximum(
        jnp.maximum(pscr_ref[:, 0:L], pscr_ref[:, 1:L + 1]),
        jnp.maximum(pscr_ref[:, 2 * Wo:2 * Wo + L],
                    pscr_ref[:, 2 * Wo + 1:2 * Wo + 1 + L]))
    xin = jnp.dot(m, sel_ref[...],
                  preferred_element_type=jnp.float32).astype(jnp.bfloat16)
    _conv3x3_tile(xin, w_ref, edge_ref, y_ref, part_ref, zpad_ref, Ho, Wo)


# ---------------------------------------------------------------------------
# BatchNorm(train, global batch stats) + ReLU.  scale/shift come in per-channel
# as (Cout, 1) and broadcast across the lane-dense rows axis.
# ---------------------------------------------------------------------------
def _bn_relu_kernel(scale_ref, shift_ref, y_ref, o_ref):
    y = y_ref[...].astype(jnp.float32)
    o_ref[...] = jnp.maximum(y * scale_ref[...] + shift_ref[...],
                             0.0).astype(jnp.bfloat16)


# ---------------------------------------------------------------------------
# Bilinear 2x upsample (align_corners=True): one bf16 matmul per sample with a
# constant Kronecker interpolation matrix on the channel-major flat layout.
# ---------------------------------------------------------------------------
def _upsample2x_kernel(kt_ref, x_ref, o_ref):
    o_ref[...] = jnp.dot(x_ref[...], kt_ref[...],
                         preferred_element_type=jnp.float32).astype(jnp.bfloat16)


# ---------------------------------------------------------------------------
# 1x1 conv (with bias) + sigmoid, emitted directly in NCHW layout.
# ---------------------------------------------------------------------------
def _outc_kernel(w_ref, b_ref, x_ref, o_ref):
    z = jnp.dot(w_ref[...], x_ref[...],
                preferred_element_type=jnp.float32) + b_ref[...]
    o_ref[...] = jax.nn.sigmoid(z)


# ---------------------------------------------------------------------------
# Host-side constants
# ---------------------------------------------------------------------------
def _edge_masks(Wo, rows):
    col = np.arange(rows) % Wo
    masks = np.stack([(col != 0), (col != Wo - 1)]).astype(np.float32)
    return jnp.asarray(masks, dtype=jnp.bfloat16)               # (2, rows)


def _pool_select_matrix(Ho, Wo):
    rows = Ho * Wo
    sel = np.zeros((4 * rows, rows), np.float32)
    for k in range(rows):
        h, w = divmod(k, Wo)
        sel[(2 * h) * (2 * Wo) + 2 * w, k] = 1.0
    return jnp.asarray(sel, dtype=jnp.bfloat16)                 # (4*rows, rows)


def _interp_matrix(size_in):
    """Dense 1-D linear interpolation matrix, scale 2, align_corners=True."""
    size_out = 2 * size_in
    a = np.zeros((size_out, size_in), np.float32)
    if size_in == 1:
        a[:, 0] = 1.0
    else:
        src = np.arange(size_out, dtype=np.float64) * (size_in - 1) / (size_out - 1)
        i0 = np.minimum(np.floor(src).astype(np.int64), size_in - 2)
        w = src - i0
        a[np.arange(size_out), i0] += 1.0 - w
        a[np.arange(size_out), i0 + 1] += w
    return a


# ---------------------------------------------------------------------------
# Wrappers
# ---------------------------------------------------------------------------
def conv_bn_relu_layer(x, hw, w_hwio, gamma, beta, *, pool):
    """[MaxPool2d(2)?] + Conv3x3(pad=1) + BatchNorm2d(train) + ReLU."""
    N, Cin, _ = x.shape
    H, W = hw
    Cout = w_hwio.shape[-1]
    Ho, Wo = (H // 2, W // 2) if pool else (H, W)
    rows = Ho * Wo

    w9 = jnp.transpose(w_hwio, (0, 1, 3, 2)).reshape(9, Cout, Cin)
    w9 = w9.astype(jnp.bfloat16)
    edge = _edge_masks(Wo, rows)

    base_specs = [
        pl.BlockSpec((None, Cin, H * W), lambda n: (n, 0, 0)),
        pl.BlockSpec((9, Cout, Cin), lambda n: (0, 0, 0)),
        pl.BlockSpec((2, rows), lambda n: (0, 0)),
    ]
    scratch = [pltpu.VMEM((Cin, (Ho + 4) * Wo), jnp.bfloat16)]
    if pool:
        kern = functools.partial(_pool_conv3x3_kernel, Ho=Ho, Wo=Wo)
        in_specs = base_specs + [pl.BlockSpec((H * W, rows), lambda n: (0, 0))]
        scratch = scratch + [pltpu.VMEM((Cin, H * W + 2 * Wo + 8), jnp.bfloat16)]
        args = (x, w9, edge, _pool_select_matrix(Ho, Wo))
    else:
        kern = functools.partial(_conv3x3_kernel, Ho=Ho, Wo=Wo)
        in_specs = base_specs
        args = (x, w9, edge)

    y, part = pl.pallas_call(
        kern,
        grid=(N,),
        in_specs=in_specs,
        out_specs=(
            pl.BlockSpec((None, Cout, rows), lambda n: (n, 0, 0)),
            pl.BlockSpec((None, Cout, 2), lambda n: (n, 0, 0)),
        ),
        out_shape=(
            jax.ShapeDtypeStruct((N, Cout, rows), jnp.bfloat16),
            jax.ShapeDtypeStruct((N, Cout, 2), jnp.float32),
        ),
        scratch_shapes=scratch,
        compiler_params=pltpu.CompilerParams(dimension_semantics=("parallel",)),
    )(*args)

    # Global (whole-batch) BN statistics: tiny (N, Cout, 2) reduction in plain
    # JAX between the two Pallas passes (no in-kernel expander / re-derivation).
    count = float(N * rows)
    tot = jnp.sum(part, axis=0)                                 # (Cout, 2)
    mean = tot[:, 0] / count
    var = jnp.maximum(tot[:, 1] / count - mean * mean, 0.0)     # guard cancellation
    inv = jax.lax.rsqrt(var + BN_EPS)
    scale = (gamma * inv).reshape(Cout, 1).astype(jnp.float32)
    shift = (beta - mean * gamma * inv).reshape(Cout, 1).astype(jnp.float32)

    out = pl.pallas_call(
        _bn_relu_kernel,
        grid=(N,),
        in_specs=[
            pl.BlockSpec((Cout, 1), lambda n: (0, 0)),
            pl.BlockSpec((Cout, 1), lambda n: (0, 0)),
            pl.BlockSpec((None, Cout, rows), lambda n: (n, 0, 0)),
        ],
        out_specs=pl.BlockSpec((None, Cout, rows), lambda n: (n, 0, 0)),
        out_shape=jax.ShapeDtypeStruct((N, Cout, rows), jnp.bfloat16),
        compiler_params=pltpu.CompilerParams(dimension_semantics=("parallel",)),
    )(scale, shift, y)
    return out, (Ho, Wo)


def conv_block(x, hw, layer_params, *, pool=False):
    """Conv(in, out, layers) (optionally preceded by MaxPool2d(2) == Down)."""
    h = x
    for i, p in enumerate(layer_params):
        h, hw = conv_bn_relu_layer(h, hw, p["w"], p["g"], p["bt"],
                                   pool=(pool and i == 0))
    return h, hw


def upsample2x_bilinear(x, hw):
    """F.interpolate(scale_factor=2, mode='bilinear', align_corners=True)."""
    N, C, _ = x.shape
    H, W = hw
    H2, W2 = 2 * H, 2 * W
    kt = jnp.asarray(np.kron(_interp_matrix(H), _interp_matrix(W)).T,
                     dtype=jnp.bfloat16)                        # (H*W, H2*W2)
    out = pl.pallas_call(
        _upsample2x_kernel,
        grid=(N,),
        in_specs=[
            pl.BlockSpec((H * W, H2 * W2), lambda n: (0, 0)),
            pl.BlockSpec((None, C, H * W), lambda n: (n, 0, 0)),
        ],
        out_specs=pl.BlockSpec((None, C, H2 * W2), lambda n: (n, 0, 0)),
        out_shape=jax.ShapeDtypeStruct((N, C, H2 * W2), jnp.bfloat16),
        compiler_params=pltpu.CompilerParams(dimension_semantics=("parallel",)),
    )(kt, x)
    return out, (H2, W2)


def up_block(x1, hw1, x2, hw2, layer_params):
    """Up: upsample x1, pad to x2's size, concat [x2, x1] on channels, Conv."""
    N, C1, _ = x1.shape
    x1u, (h1, w1) = upsample2x_bilinear(x1, hw1)
    H2, W2 = hw2
    if (h1, w1) != (H2, W2):
        # Rare F.pad path (not hit in this config): do it in plain JAX.
        x4 = x1u.reshape(N, C1, h1, w1)
        dy, dx = H2 - h1, W2 - w1
        x4 = jnp.pad(x4, ((0, 0), (0, 0), (dy // 2, dy - dy // 2),
                          (dx // 2, dx - dx // 2)))
        x1u = x4.reshape(N, C1, H2 * W2)
    h = jnp.concatenate([x2, x1u], axis=1)     # == torch.cat([x2, x1], dim=1)
    return conv_block(h, (H2, W2), layer_params, pool=False)


def outc_sigmoid(x, hw, w_ck, b_k):
    N, C, rows = x.shape
    K = w_ck.shape[-1]
    wk = jnp.transpose(w_ck).astype(jnp.bfloat16)               # (K, C)
    bk = b_k.reshape(K, 1).astype(jnp.float32)
    out = pl.pallas_call(
        _outc_kernel,
        grid=(N,),
        in_specs=[
            pl.BlockSpec((K, C), lambda n: (0, 0)),
            pl.BlockSpec((K, 1), lambda n: (0, 0)),
            pl.BlockSpec((None, C, rows), lambda n: (n, 0, 0)),
        ],
        out_specs=pl.BlockSpec((None, K, rows), lambda n: (n, 0, 0)),
        out_shape=jax.ShapeDtypeStruct((N, K, rows), jnp.float32),
        compiler_params=pltpu.CompilerParams(dimension_semantics=("parallel",)),
    )(wk, bk, x)
    return out.reshape(N, K, hw[0], hw[1])                      # already NCHW


def unet_forward(x_nchw, params):
    """UNet.forward: NCHW in -> NCHW sigmoid probabilities out."""
    N, C0, H, W = x_nchw.shape
    x = x_nchw.astype(jnp.bfloat16).reshape(N, C0, H * W)       # free reshape
    acts, sizes = [], []
    h, hw = conv_block(x, (H, W), params["inc"])                # inc
    acts.append(h); sizes.append(hw)
    for dp in params["downs"]:                                  # Down blocks
        h, hw = conv_block(h, hw, dp, pool=True)
        acts.append(h); sizes.append(hw)
    h, hw = acts[-1], sizes[-1]
    for i in reversed(range(len(params["ups"]))):               # Up blocks
        h, hw = up_block(h, hw, acts[i], sizes[i], params["ups"][i])
    return outc_sigmoid(h, hw, params["outc_w"], params["outc_b"])


# ---------------------------------------------------------------------------
# Pure-JAX f32 reference mirroring the PyTorch module (train-mode BN, with bias)
# ---------------------------------------------------------------------------
def _ref_conv_bn_relu(x, w, b, g, bt):
    y = jax.lax.conv_general_dilated(
        x, w, window_strides=(1, 1), padding="SAME",
        dimension_numbers=("NCHW", "HWIO", "NCHW"))
    y = y + b.reshape(1, -1, 1, 1)
    mu = y.mean(axis=(0, 2, 3), keepdims=True)
    var = ((y - mu) ** 2).mean(axis=(0, 2, 3), keepdims=True)
    y = (y - mu) / jnp.sqrt(var + BN_EPS) * g.reshape(1, -1, 1, 1) \
        + bt.reshape(1, -1, 1, 1)
    return jnp.maximum(y, 0.0)


def _ref_conv_block(x, layer_params):
    h = x
    for p in layer_params:
        h = _ref_conv_bn_relu(h, p["w"], p["b"], p["g"], p["bt"])
    return h


def _ref_maxpool2(x):
    n, c, h, w = x.shape
    return x.reshape(n, c, h // 2, 2, w // 2, 2).max(axis=(3, 5))


def _ref_upsample2x(x):
    n, c, h, w = x.shape
    sy = jnp.arange(2 * h) * (h - 1) / (2 * h - 1)
    sx = jnp.arange(2 * w) * (w - 1) / (2 * w - 1)
    y0 = jnp.floor(sy).astype(jnp.int32); y1 = jnp.minimum(y0 + 1, h - 1); wy = sy - y0
    x0 = jnp.floor(sx).astype(jnp.int32); x1 = jnp.minimum(x0 + 1, w - 1); wx = sx - x0
    top = x[:, :, y0, :] * (1 - wy)[None, None, :, None] \
        + x[:, :, y1, :] * wy[None, None, :, None]
    return top[:, :, :, x0] * (1 - wx) + top[:, :, :, x1] * wx


def unet_reference(x, params):
    xs = [_ref_conv_block(x.astype(jnp.float32), params["inc"])]
    for dp in params["downs"]:
        xs.append(_ref_conv_block(_ref_maxpool2(xs[-1]), dp))
    h = xs[-1]
    for i in reversed(range(len(params["ups"]))):
        x1 = _ref_upsample2x(h)
        h = jnp.concatenate([xs[i], x1], axis=1)
        h = _ref_conv_block(h, params["ups"][i])
    z = jnp.einsum("nchw,ck->nkhw", h, params["outc_w"]) \
        + params["outc_b"].reshape(1, -1, 1, 1)
    return jax.nn.sigmoid(z)


# ---------------------------------------------------------------------------
# Parameter init + test
# ---------------------------------------------------------------------------
def _init_conv_block(key, in_ch, out_ch, layers=2):
    ps = []
    for i in range(layers):
        cin = in_ch if i == 0 else out_ch
        key, k1, k2, k3, k4 = jax.random.split(key, 5)
        s = 1.0 / np.sqrt(9 * cin)
        ps.append({
            "w": jax.random.normal(k1, (3, 3, cin, out_ch), jnp.float32) * s,
            "b": jax.random.normal(k2, (out_ch,), jnp.float32) * s,  # cancelled by BN
            "g": 1.0 + 0.1 * jax.random.normal(k3, (out_ch,), jnp.float32),
            "bt": 0.1 * jax.random.normal(k4, (out_ch,), jnp.float32),
        })
    return key, ps


if __name__ == "__main__":
    key = jax.random.PRNGKey(0)
    # UNet(n_channels=3, n_classes=2, downs=[(8, 2), (16, 2)], ups=[(8, 2)])
    n_channels, n_classes = 3, 2
    downs_cfg = [(8, 2), (16, 2)]
    ups_cfg = [(8, 2)]
    N, H, W = 2, 16, 16

    key, inc_p = _init_conv_block(key, n_channels, downs_cfg[0][0], layers=2)
    down_ps = []
    for (pr_c, pr_l), (nx_c, _) in zip(downs_cfg[:-1], downs_cfg[1:]):
        key, p = _init_conv_block(key, pr_c, nx_c, layers=pr_l)
        down_ps.append(p)
    up_ps = []
    for i, (out_c, layers) in enumerate(ups_cfg):
        deep_c = ups_cfg[i + 1][0] if i < len(ups_cfg) - 1 else downs_cfg[-1][0]
        key, p = _init_conv_block(key, downs_cfg[i][0] + deep_c, out_c, layers=layers)
        up_ps.append(p)
    key, kw, kb, kx = jax.random.split(key, 4)
    params = {
        "inc": inc_p, "downs": down_ps, "ups": up_ps,
        "outc_w": jax.random.normal(kw, (ups_cfg[0][0], n_classes), jnp.float32)
                  / np.sqrt(ups_cfg[0][0]),
        "outc_b": 0.1 * jax.random.normal(kb, (n_classes,), jnp.float32),
    }
    x = jax.random.normal(kx, (N, n_channels, H, W), jnp.float32)   # NCHW like PyTorch

    out = jax.block_until_ready(jax.jit(unet_forward)(x, params))
    ref = jax.block_until_ready(unet_reference(x, params))

    assert out.shape == (N, n_classes, H, W), out.shape
    np.testing.assert_allclose(np.asarray(out), np.asarray(ref), rtol=2e-2, atol=2e-2)
    print("KERNEL_OK")
</pallas_src>

<mosaic_0001>
module attributes {stable_mosaic.version = 11 : i64} {
  func.func @_bn_relu_kernel(%arg0: i32, %arg1: memref<8x1xf32, #tpu.memory_space<vmem>>, %arg2: memref<8x1xf32, #tpu.memory_space<vmem>>, %arg3: memref<1x8x256xbf16, #tpu.memory_space<vmem>>, %arg4: memref<1x8x256xbf16, #tpu.memory_space<vmem>>) attributes {dimension_semantics = [#tpu.dimension_semantics<parallel>], iteration_bounds = array<i64: 2>, scalar_prefetch = 0 : i64, scratch_operands = 0 : i64, tpu.core_type = #tpu.core_type<tc>, window_params = [{pipeline_mode = #tpu.pipeline_mode<synchronous>, transform_indices = @transform_0, window_bounds = array<i64: 8, 1>}, {pipeline_mode = #tpu.pipeline_mode<synchronous>, transform_indices = @transform_1, window_bounds = array<i64: 8, 1>}, {transform_indices = @transform_2, window_bounds = array<i64: 1, 8, 256>}, {transform_indices = @transform_3, window_bounds = array<i64: 1, 8, 256>}]} {
    %c0 = arith.constant 0 : index
    %c0_0 = arith.constant 0 : index
    %c0_1 = arith.constant 0 : index
    %0 = vector.load %arg3[%c0, %c0_0, %c0_1] : memref<1x8x256xbf16, #tpu.memory_space<vmem>>, vector<1x8x256xbf16>
    %1 = vector.shape_cast %0 : vector<1x8x256xbf16> to vector<8x256xbf16>
    %2 = arith.extf %1 : vector<8x256xbf16> to vector<8x256xf32>
    %c0_2 = arith.constant 0 : index
    %c0_3 = arith.constant 0 : index
    %3 = vector.load %arg1[%c0_2, %c0_3] : memref<8x1xf32, #tpu.memory_space<vmem>>, vector<8x1xf32>
    %4 = vector.broadcast %3 : vector<8x1xf32> to vector<8x256xf32>
    %5 = arith.mulf %2, %4 : vector<8x256xf32>
    %c0_4 = arith.constant 0 : index
    %c0_5 = arith.constant 0 : index
    %6 = vector.load %arg2[%c0_4, %c0_5] : memref<8x1xf32, #tpu.memory_space<vmem>>, vector<8x1xf32>
    %7 = vector.broadcast %6 : vector<8x1xf32> to vector<8x256xf32>
    %8 = arith.addf %5, %7 : vector<8x256xf32>
    %cst = arith.constant 0.000000e+00 : f32
    %9 = vector.broadcast %cst : f32 to vector<8x256xf32>
    %10 = arith.maximumf %8, %9 : vector<8x256xf32>
    %11 = arith.truncf %10 : vector<8x256xf32> to vector<8x256xbf16>
    %c0_6 = arith.constant 0 : index
    %c0_7 = arith.constant 0 : index
    %c0_8 = arith.constant 0 : index
    %12 = vector.load %arg4[%c0_6, %c0_7, %c0_8] : memref<1x8x256xbf16, #tpu.memory_space<vmem>>, vector<1x8x256xbf16>
    %13 = vector.shape_cast %12 : vector<1x8x256xbf16> to vector<8x256xbf16>
    %14 = vector.shape_cast %11 : vector<8x256xbf16> to vector<1x8x256xbf16>
    tpu.vector_store %arg4[%c0_6, %c0_7, %c0_8], %14 {strides = array<i32>} : memref<1x8x256xbf16, #tpu.memory_space<vmem>>, vector<1x8x256xbf16>,
    return
  }
  func.func @transform_0(%arg0: i32) -> (i32, i32) {
    %c0_i32 = arith.constant 0 : i32
    %c0_i32_0 = arith.constant 0 : i32
    %c0_i32_1 = arith.constant 0 : i32
    return %c0_i32, %c0_i32_0 : i32, i32
  }
  func.func @transform_1(%arg0: i32) -> (i32, i32) {
    %c0_i32 = arith.constant 0 : i32
    %c0_i32_0 = arith.constant 0 : i32
    %c0_i32_1 = arith.constant 0 : i32
    return %c0_i32, %c0_i32_0 : i32, i32
  }
  func.func @transform_2(%arg0: i32) -> (i32, i32, i32) {
    %c0_i32 = arith.constant 0 : i32
    %c0_i32_0 = arith.constant 0 : i32
    %c0_i32_1 = arith.constant 0 : i32
    return %arg0, %c0_i32, %c0_i32_0 : i32, i32, i32
  }
  func.func @transform_3(%arg0: i32) -> (i32, i32, i32) {
    %c0_i32 = arith.constant 0 : i32
    %c0_i32_0 = arith.constant 0 : i32
    %c0_i32_1 = arith.constant 0 : i32
    return %arg0, %c0_i32, %c0_i32_0 : i32, i32, i32
  }
}

module attributes {stable_mosaic.version = 11 : i64} {
  func.func @_conv3x3_kernel(%arg0: i32, %arg1: memref<1x3x256xbf16, #tpu.memory_space<vmem>>, %arg2: memref<9x8x3xbf16, #tpu.memory_space<vmem>>, %arg3: memref<2x256xbf16, #tpu.memory_space<vmem>>, %arg4: memref<1x8x256xbf16, #tpu.memory_space<vmem>>, %arg5: memref<1x8x2xf32, #tpu.memory_space<vmem>>, %arg6: memref<3x320xbf16, #tpu.memory_space<vmem>>) attributes {dimension_semantics = [#tpu.dimension_semantics<parallel>], iteration_bounds = array<i64: 2>, scalar_prefetch = 0 : i64, scratch_operands = 1 : i64, tpu.core_type = #tpu.core_type<tc>, window_params = [{transform_indices = @transform_0, window_bounds = array<i64: 1, 3, 256>}, {pipeline_mode = #tpu.pipeline_mode<synchronous>, transform_indices = @transform_1, window_bounds = array<i64: 9, 8, 3>}, {pipeline_mode = #tpu.pipeline_mode<synchronous>, transform_indices = @transform_2, window_bounds = array<i64: 2, 256>}, {transform_indices = @transform_3, window_bounds = array<i64: 1, 8, 256>}, {transform_indices = @transform_4, window_bounds = array<i64: 1, 8, 2>}]} {
    %c0 = arith.constant 0 : index
    %c0_0 = arith.constant 0 : index
    %c0_1 = arith.constant 0 : index
    %0 = vector.load %arg1[%c0, %c0_0, %c0_1] : memref<1x3x256xbf16, #tpu.memory_space<vmem>>, vector<1x3x256xbf16>
    %1 = vector.shape_cast %0 : vector<1x3x256xbf16> to vector<3x256xbf16>
    %cst = arith.constant 0.000000e+00 : bf16
    %2 = vector.broadcast %cst : bf16 to vector<3x32xbf16>
    %c0_2 = arith.constant 0 : index
    %c0_3 = arith.constant 0 : index
    %3 = vector.load %arg6[%c0_2, %c0_3] : memref<3x320xbf16, #tpu.memory_space<vmem>>, vector<3x32xbf16>
    tpu.vector_store %arg6[%c0_2, %c0_3], %2 {strides = array<i32>} : memref<3x320xbf16, #tpu.memory_space<vmem>>, vector<3x32xbf16>,
    %cst_4 = arith.constant 0.000000e+00 : bf16
    %4 = vector.broadcast %cst_4 : bf16 to vector<3x32xbf16>
    %c0_5 = arith.constant 0 : index
    %c288 = arith.constant 288 : index
    %5 = vector.load %arg6[%c0_5, %c288] : memref<3x320xbf16, #tpu.memory_space<vmem>>, vector<3x32xbf16>
    tpu.vector_store %arg6[%c0_5, %c288], %4 {strides = array<i32>} : memref<3x320xbf16, #tpu.memory_space<vmem>>, vector<3x32xbf16>,
    %c0_6 = arith.constant 0 : index
    %c32 = arith.constant 32 : index
    %6 = vector.load %arg6[%c0_6, %c32] : memref<3x320xbf16, #tpu.memory_space<vmem>>, vector<3x256xbf16>
    tpu.vector_store %arg6[%c0_6, %c32], %1 {strides = array<i32>} : memref<3x320xbf16, #tpu.memory_space<vmem>>, vector<3x256xbf16>,
    %cst_7 = arith.constant 0.000000e+00 : f32
    %7 = vector.broadcast %cst_7 : f32 to vector<8x256xf32>
    %c0_8 = arith.constant 0 : index
    %c15 = arith.constant 15 : index
    %8 = vector.load %arg6[%c0_8, %c15] : memref<3x320xbf16, #tpu.memory_space<vmem>>, vector<3x256xbf16>
    %c0_9 = arith.constant 0 : index
    %c0_10 = arith.constant 0 : index
    %9 = vector.load %arg3[%c0_9, %c0_10] : memref<2x256xbf16, #tpu.memory_space<vmem>>, vector<1x256xbf16>
    %10 = vector.broadcast %9 : vector<1x256xbf16> to vector<3x256xbf16>
    %11 = arith.mulf %8, %10 : vector<3x256xbf16>
    %c0_11 = arith.constant 0 : index
    %c0_12 = arith.constant 0 : index
    %c0_13 = arith.constant 0 : index
    %12 = vector.load %arg2[%c0_11, %c0_12, %c0_13] : memref<9x8x3xbf16, #tpu.memory_space<vmem>>, vector<1x8x3xbf16>
    %13 = vector.shape_cast %12 : vector<1x8x3xbf16> to vector<8x3xbf16>
    %cst_14 = arith.constant dense<0.000000e+00> : vector<8x256xf32>
    %14 = tpu.matmul %13, %11, %cst_14 {dimension_numbers = #tpu.dot_dimension_numbers<[1], [0], [0], [1], [0, 0, 1, 1], [], []>} : vector<8x3xbf16>, vector<3x256xbf16>, vector<8x256xf32> -> vector<8x256xf32>
    %15 = arith.addf %7, %14 : vector<8x256xf32>
    %c0_15 = arith.constant 0 : index
    %c16 = arith.constant 16 : index
    %16 = vector.load %arg6[%c0_15, %c16] : memref<3x320xbf16, #tpu.memory_space<vmem>>, vector<3x256xbf16>
    %c1 = arith.constant 1 : index
    %c0_16 = arith.constant 0 : index
    %c0_17 = arith.constant 0 : index
    %17 = vector.load %arg2[%c1, %c0_16, %c0_17] : memref<9x8x3xbf16, #tpu.memory_space<vmem>>, vector<1x8x3xbf16>
    %18 = vector.shape_cast %17 : vector<1x8x3xbf16> to vector<8x3xbf16>
    %cst_18 = arith.constant dense<0.000000e+00> : vector<8x256xf32>
    %19 = tpu.matmul %18, %16, %cst_18 {dimension_numbers = #tpu.dot_dimension_numbers<[1], [0], [0], [1], [0, 0, 1, 1], [], []>} : vector<8x3xbf16>, vector<3x256xbf16>, vector<8x256xf32> -> vector<8x256xf32>
    %20 = arith.addf %15, %19 : vector<8x256xf32>
    %c0_19 = arith.constant 0 : index
    %c17 = arith.constant 17 : index
    %21 = vector.load %arg6[%c0_19, %c17] : memref<3x320xbf16, #tpu.memory_space<vmem>>, vector<3x256xbf16>
    %c1_20 = arith.constant 1 : index
    %c0_21 = arith.constant 0 : index
    %22 = vector.load %arg3[%c1_20, %c0_21] : memref<2x256xbf16, #tpu.memory_space<vmem>>, vector<1x256xbf16>
    %23 = vector.broadcast %22 : vector<1x256xbf16> to vector<3x256xbf16>
    %24 = arith.mulf %21, %23 : vector<3x256xbf16>
    %c2 = arith.constant 2 : index
    %c0_22 = arith.constant 0 : index
    %c0_23 = arith.constant 0 : index
    %25 = vector.load %arg2[%c2, %c0_22, %c0_23] : memref<9x8x3xbf16, #tpu.memory_space<vmem>>, vector<1x8x3xbf16>
    %26 = vector.shape_cast %25 : vector<1x8x3xbf16> to vector<8x3xbf16>
    %cst_24 = arith.constant dense<0.000000e+00> : vector<8x256xf32>
    %27 = tpu.matmul %26, %24, %cst_24 {dimension_numbers = #tpu.dot_dimension_numbers<[1], [0], [0], [1], [0, 0, 1, 1], [], []>} : vector<8x3xbf16>, vector<3x256xbf16>, vector<8x256xf32> -> vector<8x256xf32>
    %28 = arith.addf %20, %27 : vector<8x256xf32>
    %c0_25 = arith.constant 0 : index
    %c31 = arith.constant 31 : index
    %29 = vector.load %arg6[%c0_25, %c31] : memref<3x320xbf16, #tpu.memory_space<vmem>>, vector<3x256xbf16>
    %c0_26 = arith.constant 0 : index
    %c0_27 = arith.constant 0 : index
    %30 = vector.load %arg3[%c0_26, %c0_27] : memref<2x256xbf16, #tpu.memory_space<vmem>>, vector<1x256xbf16>
    %31 = vector.broadcast %30 : vector<1x256xbf16> to vector<3x256xbf16>
    %32 = arith.mulf %29, %31 : vector<3x256xbf16>
    %c3 = arith.constant 3 : index
    %c0_28 = arith.constant 0 : index
    %c0_29 = arith.constant 0 : index
    %33 = vector.load %arg2[%c3, %c0_28, %c0_29] : memref<9x8x3xbf16, #tpu.memory_space<vmem>>, vector<1x8x3xbf16>
    %34 = vector.shape_cast %33 : vector<1x8x3xbf16> to vector<8x3xbf16>
    %cst_30 = arith.constant dense<0.000000e+00> : vector<8x256xf32>
    %35 = tpu.matmul %34, %32, %cst_30 {dimension_numbers = #tpu.dot_dimension_numbers<[1], [0], [0], [1], [0, 0, 1, 1], [], []>} : vector<8x3xbf16>, vector<3x256xbf16>, vector<8x256xf32> -> vector<8x256xf32>
    %36 = arith.addf %28, %35 : vector<8x256xf32>
    %c0_31 = arith.constant 0 : index
    %c32_32 = arith.constant 32 : index
    %37 = vector.load %arg6[%c0_31, %c32_32] : memref<3x320xbf16, #tpu.memory_space<vmem>>, vector<3x256xbf16>
    %c4 = arith.constant 4 : index
    %c0_33 = arith.constant 0 : index
    %c0_34 = arith.constant 0 : index
    %38 = vector.load %arg2[%c4, %c0_33, %c0_34] : memref<9x8x3xbf16, #tpu.memory_space<vmem>>, vector<1x8x3xbf16>
    %39 = vector.shape_cast %38 : vector<1x8x3xbf16> to vector<8x3xbf16>
    %cst_35 = arith.constant dense<0.000000e+00> : vector<8x256xf32>
    %40 = tpu.matmul %39, %37, %cst_35 {dimension_numbers = #tpu.dot_dimension_numbers<[1], [0], [0], [1], [0, 0, 1, 1], [], []>} : vector<8x3xbf16>, vector<3x256xbf16>, vector<8x256xf32> -> vector<8x256xf32>
    %41 = arith.addf %36, %40 : vector<8x256xf32>
    %c0_36 = arith.constant 0 : index
    %c33 = arith.constant 33 : index
    %42 = vector.load %arg6[%c0_36, %c33] : memref<3x320xbf16, #tpu.memory_space<vmem>>, vector<3x256xbf16>
    %c1_37 = arith.constant 1 : index
    %c0_38 = arith.constant 0 : index
    %43 = vector.load %arg3[%c1_37, %c0_38] : memref<2x256xbf16, #tpu.memory_space<vmem>>, vector<1x256xbf16>
    %44 = vector.broadcast %43 : vector<1x256xbf16> to vector<3x256xbf16>
    %45 = arith.mulf %42, %44 : vector<3x256xbf16>
    %c5 = arith.constant 5 : index
    %c0_39 = arith.constant 0 : index
    %c0_40 = arith.constant 0 : index
    %46 = vector.load %arg2[%c5, %c0_39, %c0_40] : memref<9x8x3xbf16, #tpu.memory_space<vmem>>, vector<1x8x3xbf16>
    %47 = vector.shape_cast %46 : vector<1x8x3xbf16> to vector<8x3xbf16>
    %cst_41 = arith.constant dense<0.000000e+00> : vector<8x256xf32>
    %48 = tpu.matmul %47, %45, %cst_41 {dimension_numbers = #tpu.dot_dimension_numbers<[1], [0], [0], [1], [0, 0, 1, 1], [], []>} : vector<8x3xbf16>, vector<3x256xbf16>, vector<8x256xf32> -> vector<8x256xf32>
    %49 = arith.addf %41, %48 : vector<8x256xf32>
    %c0_42 = arith.constant 0 : index
    %c47 = arith.constant 47 : index
    %50 = vector.load %arg6[%c0_42, %c47] : memref<3x320xbf16, #tpu.memory_space<vmem>>, vector<3x256xbf16>
    %c0_43 = arith.constant 0 : index
    %c0_44 = arith.constant 0 : index
    %51 = vector.load %arg3[%c0_43, %c0_44] : memref<2x256xbf16, #tpu.memory_space<vmem>>, vector<1x256xbf16>
    %52 = vector.broadcast %51 : vector<1x256xbf16> to vector<3x256xbf16>
    %53 = arith.mulf %50, %52 : vector<3x256xbf16>
    %c6 = arith.constant 6 : index
    %c0_45 = arith.constant 0 : index
    %c0_46 = arith.constant 0 : index
    %54 = vector.load %arg2[%c6, %c0_45, %c0_46] : memref<9x8x3xbf16, #tpu.memory_space<vmem>>, vector<1x8x3xbf16>
    %55 = vector.shape_cast %54 : vector<1x8x3xbf16> to vector<8x3xbf16>
    %cst_47 = arith.constant dense<0.000000e+00> : vector<8x256xf32>
    %56 = tpu.matmul %55, %53, %cst_47 {dimension_numbers = #tpu.dot_dimension_numbers<[1], [0], [0], [1], [0, 0, 1, 1], [], []>} : vector<8x3xbf16>, vector<3x256xbf16>, vector<8x256xf32> -> vector<8x256xf32>
    %57 = arith.addf %49, %56 : vector<8x256xf32>
    %c0_48 = arith.constant 0 : index
    %c48 = arith.constant 48 : index
    %58 = vector.load %arg6[%c0_48, %c48] : memref<3x320xbf16, #tpu.memory_space<vmem>>, vector<3x256xbf16>
    %c7 = arith.constant 7 : index
    %c0_49 = arith.constant 0 : index
    %c0_50 = arith.constant 0 : index
    %59 = vector.load %arg2[%c7, %c0_49, %c0_50] : memref<9x8x3xbf16, #tpu.memory_space<vmem>>, vector<1x8x3xbf16>
    %60 = vector.shape_cast %59 : vector<1x8x3xbf16> to vector<8x3xbf16>
    %cst_51 = arith.constant dense<0.000000e+00> : vector<8x256xf32>
    %61 = tpu.matmul %60, %58, %cst_51 {dimension_numbers = #tpu.dot_dimension_numbers<[1], [0], [0], [1], [0, 0, 1, 1], [], []>} : vector<8x3xbf16>, vector<3x256xbf16>, vector<8x256xf32> -> vector<8x256xf32>
    %62 = arith.addf %57, %61 : vector<8x256xf32>
    %c0_52 = arith.constant 0 : index
    %c49 = arith.constant 49 : index
    %63 = vector.load %arg6[%c0_52, %c49] : memref<3x320xbf16, #tpu.memory_space<vmem>>, vector<3x256xbf16>
    %c1_53 = arith.constant 1 : index
    %c0_54 = arith.constant 0 : index
    %64 = vector.load %arg3[%c1_53, %c0_54] : memref<2x256xbf16, #tpu.memory_space<vmem>>, vector<1x256xbf16>
    %65 = vector.broadcast %64 : vector<1x256xbf16> to vector<3x256xbf16>
    %66 = arith.mulf %63, %65 : vector<3x256xbf16>
    %c8 = arith.constant 8 : index
    %c0_55 = arith.constant 0 : index
    %c0_56 = arith.constant 0 : index
    %67 = vector.load %arg2[%c8, %c0_55, %c0_56] : memref<9x8x3xbf16, #tpu.memory_space<vmem>>, vector<1x8x3xbf16>
    %68 = vector.shape_cast %67 : vector<1x8x3xbf16> to vector<8x3xbf16>
    %cst_57 = arith.constant dense<0.000000e+00> : vector<8x256xf32>
    %69 = tpu.matmul %68, %66, %cst_57 {dimension_numbers = #tpu.dot_dimension_numbers<[1], [0], [0], [1], [0, 0, 1, 1], [], []>} : vector<8x3xbf16>, vector<3x256xbf16>, vector<8x256xf32> -> vector<8x256xf32>
    %70 = arith.addf %62, %69 : vector<8x256xf32>
    %cst_58 = arith.constant dense<0.000000e+00> : vector<8xf32>
    %71 = vector.multi_reduction <add>, %70, %cst_58 [1] : vector<8x256xf32> to vector<8xf32>
    %72 = vector.shape_cast %71 : vector<8xf32> to vector<8x1xf32>
    %c0_59 = arith.constant 0 : index
    %c0_60 = arith.constant 0 : index
    %c0_61 = arith.constant 0 : index
    %73 = vector.load %arg5[%c0_59, %c0_60, %c0_61] : memref<1x8x2xf32, #tpu.memory_space<vmem>>, vector<1x8x1xf32>
    %74 = vector.shape_cast %73 : vector<1x8x1xf32> to vector<8x1xf32>
    %75 = vector.shape_cast %72 : vector<8x1xf32> to vector<1x8x1xf32>
    tpu.vector_store %arg5[%c0_59, %c0_60, %c0_61], %75 {strides = array<i32>} : memref<1x8x2xf32, #tpu.memory_space<vmem>>, vector<1x8x1xf32>,
    %76 = arith.mulf %70, %70 : vector<8x256xf32>
    %cst_62 = arith.constant dense<0.000000e+00> : vector<8xf32>
    %77 = vector.multi_reduction <add>, %76, %cst_62 [1] : vector<8x256xf32> to vector<8xf32>
    %78 = vector.shape_cast %77 : vector<8xf32> to vector<8x1xf32>
    %c0_63 = arith.constant 0 : index
    %c0_64 = arith.constant 0 : index
    %c1_65 = arith.constant 1 : index
    %79 = vector.load %arg5[%c0_63, %c0_64, %c1_65] : memref<1x8x2xf32, #tpu.memory_space<vmem>>, vector<1x8x1xf32>
    %80 = vector.shape_cast %79 : vector<1x8x1xf32> to vector<8x1xf32>
    %81 = vector.shape_cast %78 : vector<8x1xf32> to vector<1x8x1xf32>
    tpu.vector_store %arg5[%c0_63, %c0_64, %c1_65], %81 {strides = array<i32>} : memref<1x8x2xf32, #tpu.memory_space<vmem>>, vector<1x8x1xf32>,
    %82 = arith.truncf %70 : vector<8x256xf32> to vector<8x256xbf16>
    %c0_66 = arith.constant 0 : index
    %c0_67 = arith.constant 0 : index
    %c0_68 = arith.constant 0 : index
    %83 = vector.load %arg4[%c0_66, %c0_67, %c0_68] : memref<1x8x256xbf16, #tpu.memory_space<vmem>>, vector<1x8x256xbf16>
    %84 = vector.shape_cast %83 : vector<1x8x256xbf16> to vector<8x256xbf16>
    %85 = vector.shape_cast %82 : vector<8x256xbf16> to vector<1x8x256xbf16>
    tpu.vector_store %arg4[%c0_66, %c0_67, %c0_68], %85 {strides = array<i32>} : memref<1x8x256xbf16, #tpu.memory_space<vmem>>, vector<1x8x256xbf16>,
    return
  }
  func.func @transform_0(%arg0: i32) -> (i32, i32, i32) {
    %c0_i32 = arith.constant 0 : i32
    %c0_i32_0 = arith.constant 0 : i32
    %c0_i32_1 = arith.constant 0 : i32
    return %arg0, %c0_i32, %c0_i32_0 : i32, i32, i32
  }
  func.func @transform_1(%arg0: i32) -> (i32, i32, i32) {
    %c0_i32 = arith.constant 0 : i32
    %c0_i32_0 = arith.constant 0 : i32
    %c0_i32_1 = arith.constant 0 : i32
    %c0_i32_2 = arith.constant 0 : i32
    return %c0_i32, %c0_i32_0, %c0_i32_1 : i32, i32, i32
  }
  func.func @transform_2(%arg0: i32) -> (i32, i32) {
    %c0_i32 = arith.constant 0 : i32
    %c0_i32_0 = arith.constant 0 : i32
    %c0_i32_1 = arith.constant 0 : i32
    return %c0_i32, %c0_i32_0 : i32, i32
  }
  func.func @transform_3(%arg0: i32) -> (i32, i32, i32) {
    %c0_i32 = arith.constant 0 : i32
    %c0_i32_0 = arith.constant 0 : i32
    %c0_i32_1 = arith.constant 0 : i32
    return %arg0, %c0_i32, %c0_i32_0 : i32, i32, i32
  }
  func.func @transform_4(%arg0: i32) -> (i32, i32, i32) {
    %c0_i32 = arith.constant 0 : i32
    %c0_i32_0 = arith.constant 0 : i32
    %c0_i32_1 = arith.constant 0 : i32
    return %arg0, %c0_i32, %c0_i32_0 : i32, i32, i32
  }
}

module attributes {stable_mosaic.version = 11 : i64} {
  func.func @_conv3x3_kernel(%arg0: i32, %arg1: memref<1x8x256xbf16, #tpu.memory_space<vmem>>, %arg2: memref<9x8x8xbf16, #tpu.memory_space<vmem>>, %arg3: memref<2x256xbf16, #tpu.memory_space<vmem>>, %arg4: memref<1x8x256xbf16, #tpu.memory_space<vmem>>, %arg5: memref<1x8x2xf32, #tpu.memory_space<vmem>>, %arg6: memref<8x320xbf16, #tpu.memory_space<vmem>>) attributes {dimension_semantics = [#tpu.dimension_semantics<parallel>], iteration_bounds = array<i64: 2>, scalar_prefetch = 0 : i64, scratch_operands = 1 : i64, tpu.core_type = #tpu.core_type<tc>, window_params = [{transform_indices = @transform_0, window_bounds = array<i64: 1, 8, 256>}, {pipeline_mode = #tpu.pipeline_mode<synchronous>, transform_indices = @transform_1, window_bounds = array<i64: 9, 8, 8>}, {pipeline_mode = #tpu.pipeline_mode<synchronous>, transform_indices = @transform_2, window_bounds = array<i64: 2, 256>}, {transform_indices = @transform_3, window_bounds = array<i64: 1, 8, 256>}, {transform_indices = @transform_4, window_bounds = array<i64: 1, 8, 2>}]} {
    %c0 = arith.constant 0 : index
    %c0_0 = arith.constant 0 : index
    %c0_1 = arith.constant 0 : index
    %0 = vector.load %arg1[%c0, %c0_0, %c0_1] : memref<1x8x256xbf16, #tpu.memory_space<vmem>>, vector<1x8x256xbf16>
    %1 = vector.shape_cast %0 : vector<1x8x256xbf16> to vector<8x256xbf16>
    %cst = arith.constant 0.000000e+00 : bf16
    %2 = vector.broadcast %cst : bf16 to vector<8x32xbf16>
    %c0_2 = arith.constant 0 : index
    %c0_3 = arith.constant 0 : index
    %3 = vector.load %arg6[%c0_2, %c0_3] : memref<8x320xbf16, #tpu.memory_space<vmem>>, vector<8x32xbf16>
    tpu.vector_store %arg6[%c0_2, %c0_3], %2 {strides = array<i32>} : memref<8x320xbf16, #tpu.memory_space<vmem>>, vector<8x32xbf16>,
    %cst_4 = arith.constant 0.000000e+00 : bf16
    %4 = vector.broadcast %cst_4 : bf16 to vector<8x32xbf16>
    %c0_5 = arith.constant 0 : index
    %c288 = arith.constant 288 : index
    %5 = vector.load %arg6[%c0_5, %c288] : memref<8x320xbf16, #tpu.memory_space<vmem>>, vector<8x32xbf16>
    tpu.vector_store %arg6[%c0_5, %c288], %4 {strides = array<i32>} : memref<8x320xbf16, #tpu.memory_space<vmem>>, vector<8x32xbf16>,
    %c0_6 = arith.constant 0 : index
    %c32 = arith.constant 32 : index
    %6 = vector.load %arg6[%c0_6, %c32] : memref<8x320xbf16, #tpu.memory_space<vmem>>, vector<8x256xbf16>
    tpu.vector_store %arg6[%c0_6, %c32], %1 {strides = array<i32>} : memref<8x320xbf16, #tpu.memory_space<vmem>>, vector<8x256xbf16>,
    %cst_7 = arith.constant 0.000000e+00 : f32
    %7 = vector.broadcast %cst_7 : f32 to vector<8x256xf32>
    %c0_8 = arith.constant 0 : index
    %c15 = arith.constant 15 : index
    %8 = vector.load %arg6[%c0_8, %c15] : memref<8x320xbf16, #tpu.memory_space<vmem>>, vector<8x256xbf16>
    %c0_9 = arith.constant 0 : index
    %c0_10 = arith.constant 0 : index
    %9 = vector.load %arg3[%c0_9, %c0_10] : memref<2x256xbf16, #tpu.memory_space<vmem>>, vector<1x256xbf16>
    %10 = vector.broadcast %9 : vector<1x256xbf16> to vector<8x256xbf16>
    %11 = arith.mulf %8, %10 : vector<8x256xbf16>
    %c0_11 = arith.constant 0 : index
    %c0_12 = arith.constant 0 : index
    %c0_13 = arith.constant 0 : index
    %12 = vector.load %arg2[%c0_11, %c0_12, %c0_13] : memref<9x8x8xbf16, #tpu.memory_space<vmem>>, vector<1x8x8xbf16>
    %13 = vector.shape_cast %12 : vector<1x8x8xbf16> to vector<8x8xbf16>
    %cst_14 = arith.constant dense<0.000000e+00> : vector<8x256xf32>
    %14 = tpu.matmul %13, %11, %cst_14 {dimension_numbers = #tpu.dot_dimension_numbers<[1], [0], [0], [1], [0, 0, 1, 1], [], []>} : vector<8x8xbf16>, vector<8x256xbf16>, vector<8x256xf32> -> vector<8x256xf32>
    %15 = arith.addf %7, %14 : vector<8x256xf32>
    %c0_15 = arith.constant 0 : index
    %c16 = arith.constant 16 : index
    %16 = vector.load %arg6[%c0_15, %c16] : memref<8x320xbf16, #tpu.memory_space<vmem>>, vector<8x256xbf16>
    %c1 = arith.constant 1 : index
    %c0_16 = arith.constant 0 : index
    %c0_17 = arith.constant 0 : index
    %17 = vector.load %arg2[%c1, %c0_16, %c0_17] : memref<9x8x8xbf16, #tpu.memory_space<vmem>>, vector<1x8x8xbf16>
    %18 = vector.shape_cast %17 : vector<1x8x8xbf16> to vector<8x8xbf16>
    %cst_18 = arith.constant dense<0.000000e+00> : vector<8x256xf32>
    %19 = tpu.matmul %18, %16, %cst_18 {dimension_numbers = #tpu.dot_dimension_numbers<[1], [0], [0], [1], [0, 0, 1, 1], [], []>} : vector<8x8xbf16>, vector<8x256xbf16>, vector<8x256xf32> -> vector<8x256xf32>
    %20 = arith.addf %15, %19 : vector<8x256xf32>
    %c0_19 = arith.constant 0 : index
    %c17 = arith.constant 17 : index
    %21 = vector.load %arg6[%c0_19, %c17] : memref<8x320xbf16, #tpu.memory_space<vmem>>, vector<8x256xbf16>
    %c1_20 = arith.constant 1 : index
    %c0_21 = arith.constant 0 : index
    %22 = vector.load %arg3[%c1_20, %c0_21] : memref<2x256xbf16, #tpu.memory_space<vmem>>, vector<1x256xbf16>
    %23 = vector.broadcast %22 : vector<1x256xbf16> to vector<8x256xbf16>
    %24 = arith.mulf %21, %23 : vector<8x256xbf16>
    %c2 = arith.constant 2 : index
    %c0_22 = arith.constant 0 : index
    %c0_23 = arith.constant 0 : index
    %25 = vector.load %arg2[%c2, %c0_22, %c0_23] : memref<9x8x8xbf16, #tpu.memory_space<vmem>>, vector<1x8x8xbf16>
    %26 = vector.shape_cast %25 : vector<1x8x8xbf16> to vector<8x8xbf16>
    %cst_24 = arith.constant dense<0.000000e+00> : vector<8x256xf32>
    %27 = tpu.matmul %26, %24, %cst_24 {dimension_numbers = #tpu.dot_dimension_numbers<[1], [0], [0], [1], [0, 0, 1, 1], [], []>} : vector<8x8xbf16>, vector<8x256xbf16>, vector<8x256xf32> -> vector<8x256xf32>
    %28 = arith.addf %20, %27 : vector<8x256xf32>
    %c0_25 = arith.constant 0 : index
    %c31 = arith.constant 31 : index
    %29 = vector.load %arg6[%c0_25, %c31] : memref<8x320xbf16, #tpu.memory_space<vmem>>, vector<8x256xbf16>
    %c0_26 = arith.constant 0 : index
    %c0_27 = arith.constant 0 : index
    %30 = vector.load %arg3[%c0_26, %c0_27] : memref<2x256xbf16, #tpu.memory_space<vmem>>, vector<1x256xbf16>
    %31 = vector.broadcast %30 : vector<1x256xbf16> to vector<8x256xbf16>
    %32 = arith.mulf %29, %31 : vector<8x256xbf16>
    %c3 = arith.constant 3 : index
    %c0_28 = arith.constant 0 : index
    %c0_29 = arith.constant 0 : index
    %33 = vector.load %arg2[%c3, %c0_28, %c0_29] : memref<9x8x8xbf16, #tpu.memory_space<vmem>>, vector<1x8x8xbf16>
    %34 = vector.shape_cast %33 : vector<1x8x8xbf16> to vector<8x8xbf16>
    %cst_30 = arith.constant dense<0.000000e+00> : vector<8x256xf32>
    %35 = tpu.matmul %34, %32, %cst_30 {dimension_numbers = #tpu.dot_dimension_numbers<[1], [0], [0], [1], [0, 0, 1, 1], [], []>} : vector<8x8xbf16>, vector<8x256xbf16>, vector<8x256xf32> -> vector<8x256xf32>
    %36 = arith.addf %28, %35 : vector<8x256xf32>
    %c0_31 = arith.constant 0 : index
    %c32_32 = arith.constant 32 : index
    %37 = vector.load %arg6[%c0_31, %c32_32] : memref<8x320xbf16, #tpu.memory_space<vmem>>, vector<8x256xbf16>
    %c4 = arith.constant 4 : index
    %c0_33 = arith.constant 0 : index
    %c0_34 = arith.constant 0 : index
    %38 = vector.load %arg2[%c4, %c0_33, %c0_34] : memref<9x8x8xbf16, #tpu.memory_space<vmem>>, vector<1x8x8xbf16>
    %39 = vector.shape_cast %38 : vector<1x8x8xbf16> to vector<8x8xbf16>
    %cst_35 = arith.constant dense<0.000000e+00> : vector<8x256xf32>
    %40 = tpu.matmul %39, %37, %cst_35 {dimension_numbers = #tpu.dot_dimension_numbers<[1], [0], [0], [1], [0, 0, 1, 1], [], []>} : vector<8x8xbf16>, vector<8x256xbf16>, vector<8x256xf32> -> vector<8x256xf32>
    %41 = arith.addf %36, %40 : vector<8x256xf32>
    %c0_36 = arith.constant 0 : index
    %c33 = arith.constant 33 : index
    %42 = vector.load %arg6[%c0_36, %c33] : memref<8x320xbf16, #tpu.memory_space<vmem>>, vector<8x256xbf16>
    %c1_37 = arith.constant 1 : index
    %c0_38 = arith.constant 0 : index
    %43 = vector.load %arg3[%c1_37, %c0_38] : memref<2x256xbf16, #tpu.memory_space<vmem>>, vector<1x256xbf16>
    %44 = vector.broadcast %43 : vector<1x256xbf16> to vector<8x256xbf16>
    %45 = arith.mulf %42, %44 : vector<8x256xbf16>
    %c5 = arith.constant 5 : index
    %c0_39 = arith.constant 0 : index
    %c0_40 = arith.constant 0 : index
    %46 = vector.load %arg2[%c5, %c0_39, %c0_40] : memref<9x8x8xbf16, #tpu.memory_space<vmem>>, vector<1x8x8xbf16>
    %47 = vector.shape_cast %46 : vector<1x8x8xbf16> to vector<8x8xbf16>
    %cst_41 = arith.constant dense<0.000000e+00> : vector<8x256xf32>
    %48 = tpu.matmul %47, %45, %cst_41 {dimension_numbers = #tpu.dot_dimension_numbers<[1], [0], [0], [1], [0, 0, 1, 1], [], []>} : vector<8x8xbf16>, vector<8x256xbf16>, vector<8x256xf32> -> vector<8x256xf32>
    %49 = arith.addf %41, %48 : vector<8x256xf32>
    %c0_42 = arith.constant 0 : index
    %c47 = arith.constant 47 : index
    %50 = vector.load %arg6[%c0_42, %c47] : memref<8x320xbf16, #tpu.memory_space<vmem>>, vector<8x256xbf16>
    %c0_43 = arith.constant 0 : index
    %c0_44 = arith.constant 0 : index
    %51 = vector.load %arg3[%c0_43, %c0_44] : memref<2x256xbf16, #tpu.memory_space<vmem>>, vector<1x256xbf16>
    %52 = vector.broadcast %51 : vector<1x256xbf16> to vector<8x256xbf16>
    %53 = arith.mulf %50, %52 : vector<8x256xbf16>
    %c6 = arith.constant 6 : index
    %c0_45 = arith.constant 0 : index
    %c0_46 = arith.constant 0 : index
    %54 = vector.load %arg2[%c6, %c0_45, %c0_46] : memref<9x8x8xbf16, #tpu.memory_space<vmem>>, vector<1x8x8xbf16>
    %55 = vector.shape_cast %54 : vector<1x8x8xbf16> to vector<8x8xbf16>
    %cst_47 = arith.constant dense<0.000000e+00> : vector<8x256xf32>
    %56 = tpu.matmul %55, %53, %cst_47 {dimension_numbers = #tpu.dot_dimension_numbers<[1], [0], [0], [1], [0, 0, 1, 1], [], []>} : vector<8x8xbf16>, vector<8x256xbf16>, vector<8x256xf32> -> vector<8x256xf32>
    %57 = arith.addf %49, %56 : vector<8x256xf32>
    %c0_48 = arith.constant 0 : index
    %c48 = arith.constant 48 : index
    %58 = vector.load %arg6[%c0_48, %c48] : memref<8x320xbf16, #tpu.memory_space<vmem>>, vector<8x256xbf16>
    %c7 = arith.constant 7 : index
    %c0_49 = arith.constant 0 : index
    %c0_50 = arith.constant 0 : index
    %59 = vector.load %arg2[%c7, %c0_49, %c0_50] : memref<9x8x8xbf16, #tpu.memory_space<vmem>>, vector<1x8x8xbf16>
    %60 = vector.shape_cast %59 : vector<1x8x8xbf16> to vector<8x8xbf16>
    %cst_51 = arith.constant dense<0.000000e+00> : vector<8x256xf32>
    %61 = tpu.matmul %60, %58, %cst_51 {dimension_numbers = #tpu.dot_dimension_numbers<[1], [0], [0], [1], [0, 0, 1, 1], [], []>} : vector<8x8xbf16>, vector<8x256xbf16>, vector<8x256xf32> -> vector<8x256xf32>
    %62 = arith.addf %57, %61 : vector<8x256xf32>
    %c0_52 = arith.constant 0 : index
    %c49 = arith.constant 49 : index
    %63 = vector.load %arg6[%c0_52, %c49] : memref<8x320xbf16, #tpu.memory_space<vmem>>, vector<8x256xbf16>
    %c1_53 = arith.constant 1 : index
    %c0_54 = arith.constant 0 : index
    %64 = vector.load %arg3[%c1_53, %c0_54] : memref<2x256xbf16, #tpu.memory_space<vmem>>, vector<1x256xbf16>
    %65 = vector.broadcast %64 : vector<1x256xbf16> to vector<8x256xbf16>
    %66 = arith.mulf %63, %65 : vector<8x256xbf16>
    %c8 = arith.constant 8 : index
    %c0_55 = arith.constant 0 : index
    %c0_56 = arith.constant 0 : index
    %67 = vector.load %arg2[%c8, %c0_55, %c0_56] : memref<9x8x8xbf16, #tpu.memory_space<vmem>>, vector<1x8x8xbf16>
    %68 = vector.shape_cast %67 : vector<1x8x8xbf16> to vector<8x8xbf16>
    %cst_57 = arith.constant dense<0.000000e+00> : vector<8x256xf32>
    %69 = tpu.matmul %68, %66, %cst_57 {dimension_numbers = #tpu.dot_dimension_numbers<[1], [0], [0], [1], [0, 0, 1, 1], [], []>} : vector<8x8xbf16>, vector<8x256xbf16>, vector<8x256xf32> -> vector<8x256xf32>
    %70 = arith.addf %62, %69 : vector<8x256xf32>
    %cst_58 = arith.constant dense<0.000000e+00> : vector<8xf32>
    %71 = vector.multi_reduction <add>, %70, %cst_58 [1] : vector<8x256xf32> to vector<8xf32>
    %72 = vector.shape_cast %71 : vector<8xf32> to vector<8x1xf32>
    %c0_59 = arith.constant 0 : index
    %c0_60 = arith.constant 0 : index
    %c0_61 = arith.constant 0 : index
    %73 = vector.load %arg5[%c0_59, %c0_60, %c0_61] : memref<1x8x2xf32, #tpu.memory_space<vmem>>, vector<1x8x1xf32>
    %74 = vector.shape_cast %73 : vector<1x8x1xf32> to vector<8x1xf32>
    %75 = vector.shape_cast %72 : vector<8x1xf32> to vector<1x8x1xf32>
    tpu.vector_store %arg5[%c0_59, %c0_60, %c0_61], %75 {strides = array<i32>} : memref<1x8x2xf32, #tpu.memory_space<vmem>>, vector<1x8x1xf32>,
    %76 = arith.mulf %70, %70 : vector<8x256xf32>
    %cst_62 = arith.constant dense<0.000000e+00> : vector<8xf32>
    %77 = vector.multi_reduction <add>, %76, %cst_62 [1] : vector<8x256xf32> to vector<8xf32>
    %78 = vector.shape_cast %77 : vector<8xf32> to vector<8x1xf32>
    %c0_63 = arith.constant 0 : index
    %c0_64 = arith.constant 0 : index
    %c1_65 = arith.constant 1 : index
    %79 = vector.load %arg5[%c0_63, %c0_64, %c1_65] : memref<1x8x2xf32, #tpu.memory_space<vmem>>, vector<1x8x1xf32>
    %80 = vector.shape_cast %79 : vector<1x8x1xf32> to vector<8x1xf32>
    %81 = vector.shape_cast %78 : vector<8x1xf32> to vector<1x8x1xf32>
    tpu.vector_store %arg5[%c0_63, %c0_64, %c1_65], %81 {strides = array<i32>} : memref<1x8x2xf32, #tpu.memory_space<vmem>>, vector<1x8x1xf32>,
    %82 = arith.truncf %70 : vector<8x256xf32> to vector<8x256xbf16>
    %c0_66 = arith.constant 0 : index
    %c0_67 = arith.constant 0 : index
    %c0_68 = arith.constant 0 : index
    %83 = vector.load %arg4[%c0_66, %c0_67, %c0_68] : memref<1x8x256xbf16, #tpu.memory_space<vmem>>, vector<1x8x256xbf16>
    %84 = vector.shape_cast %83 : vector<1x8x256xbf16> to vector<8x256xbf16>
    %85 = vector.shape_cast %82 : vector<8x256xbf16> to vector<1x8x256xbf16>
    tpu.vector_store %arg4[%c0_66, %c0_67, %c0_68], %85 {strides = array<i32>} : memref<1x8x256xbf16, #tpu.memory_space<vmem>>, vector<1x8x256xbf16>,
    return
  }
  func.func @transform_0(%arg0: i32) -> (i32, i32, i32) {
    %c0_i32 = arith.constant 0 : i32
    %c0_i32_0 = arith.constant 0 : i32
    %c0_i32_1 = arith.constant 0 : i32
    return %arg0, %c0_i32, %c0_i32_0 : i32, i32, i32
  }
  func.func @transform_1(%arg0: i32) -> (i32, i32, i32) {
    %c0_i32 = arith.constant 0 : i32
    %c0_i32_0 = arith.constant 0 : i32
    %c0_i32_1 = arith.constant 0 : i32
    %c0_i32_2 = arith.constant 0 : i32
    return %c0_i32, %c0_i32_0, %c0_i32_1 : i32, i32, i32
  }
  func.func @transform_2(%arg0: i32) -> (i32, i32) {
    %c0_i32 = arith.constant 0 : i32
    %c0_i32_0 = arith.constant 0 : i32
    %c0_i32_1 = arith.constant 0 : i32
    return %c0_i32, %c0_i32_0 : i32, i32
  }
  func.func @transform_3(%arg0: i32) -> (i32, i32, i32) {
    %c0_i32 = arith.constant 0 : i32
    %c0_i32_0 = arith.constant 0 : i32
    %c0_i32_1 = arith.constant 0 : i32
    return %arg0, %c0_i32, %c0_i32_0 : i32, i32, i32
  }
  func.func @transform_4(%arg0: i32) -> (i32, i32, i32) {
    %c0_i32 = arith.constant 0 : i32
    %c0_i32_0 = arith.constant 0 : i32
    %c0_i32_1 = arith.constant 0 : i32
    return %arg0, %c0_i32, %c0_i32_0 : i32, i32, i32
  }
}

module attributes {stable_mosaic.version = 11 : i64} {
  func.func @_pool_conv3x3_kernel(%arg0: i32, %arg1: memref<1x8x256xbf16, #tpu.memory_space<vmem>>, %arg2: memref<9x16x8xbf16, #tpu.memory_space<vmem>>, %arg3: memref<2x64xbf16, #tpu.memory_space<vmem>>, %arg4: memref<256x64xbf16, #tpu.memory_space<vmem>>, %arg5: memref<1x16x64xbf16, #tpu.memory_space<vmem>>, %arg6: memref<1x16x2xf32, #tpu.memory_space<vmem>>, %arg7: memref<8x96xbf16, #tpu.memory_space<vmem>>, %arg8: memref<8x280xbf16, #tpu.memory_space<vmem>>) attributes {dimension_semantics = [#tpu.dimension_semantics<parallel>], iteration_bounds = array<i64: 2>, scalar_prefetch = 0 : i64, scratch_operands = 2 : i64, tpu.core_type = #tpu.core_type<tc>, window_params = [{transform_indices = @transform_0, window_bounds = array<i64: 1, 8, 256>}, {pipeline_mode = #tpu.pipeline_mode<synchronous>, transform_indices = @transform_1, window_bounds = array<i64: 9, 16, 8>}, {pipeline_mode = #tpu.pipeline_mode<synchronous>, transform_indices = @transform_2, window_bounds = array<i64: 2, 64>}, {pipeline_mode = #tpu.pipeline_mode<synchronous>, transform_indices = @transform_3, window_bounds = array<i64: 256, 64>}, {transform_indices = @transform_4, window_bounds = array<i64: 1, 16, 64>}, {transform_indices = @transform_5, window_bounds = array<i64: 1, 16, 2>}]} {
    %cst = arith.constant 0.000000e+00 : bf16
    %0 = vector.broadcast %cst : bf16 to vector<8x24xbf16>
    %c0 = arith.constant 0 : index
    %c256 = arith.constant 256 : index
    %1 = vector.load %arg8[%c0, %c256] : memref<8x280xbf16, #tpu.memory_space<vmem>>, vector<8x24xbf16>
    tpu.vector_store %arg8[%c0, %c256], %0 {strides = array<i32>} : memref<8x280xbf16, #tpu.memory_space<vmem>>, vector<8x24xbf16>,
    %c0_0 = arith.constant 0 : index
    %c0_1 = arith.constant 0 : index
    %c0_2 = arith.constant 0 : index
    %2 = vector.load %arg1[%c0_0, %c0_1, %c0_2] : memref<1x8x256xbf16, #tpu.memory_space<vmem>>, vector<1x8x256xbf16>
    %3 = vector.shape_cast %2 : vector<1x8x256xbf16> to vector<8x256xbf16>
    %c0_3 = arith.constant 0 : index
    %c0_4 = arith.constant 0 : index
    %4 = vector.load %arg8[%c0_3, %c0_4] : memref<8x280xbf16, #tpu.memory_space<vmem>>, vector<8x256xbf16>
    tpu.vector_store %arg8[%c0_3, %c0_4], %3 {strides = array<i32>} : memref<8x280xbf16, #tpu.memory_space<vmem>>, vector<8x256xbf16>,
    %c0_5 = arith.constant 0 : index
    %c0_6 = arith.constant 0 : index
    %5 = vector.load %arg8[%c0_5, %c0_6] : memref<8x280xbf16, #tpu.memory_space<vmem>>, vector<8x256xbf16>
    %c0_7 = arith.constant 0 : index
    %c1 = arith.constant 1 : index
    %6 = vector.load %arg8[%c0_7, %c1] : memref<8x280xbf16, #tpu.memory_space<vmem>>, vector<8x256xbf16>
    %7 = arith.maximumf %5, %6 : vector<8x256xbf16>
    %c0_8 = arith.constant 0 : index
    %c16 = arith.constant 16 : index
    %8 = vector.load %arg8[%c0_8, %c16] : memref<8x280xbf16, #tpu.memory_space<vmem>>, vector<8x256xbf16>
    %c0_9 = arith.constant 0 : index
    %c17 = arith.constant 17 : index
    %9 = vector.load %arg8[%c0_9, %c17] : memref<8x280xbf16, #tpu.memory_space<vmem>>, vector<8x256xbf16>
    %10 = arith.maximumf %8, %9 : vector<8x256xbf16>
    %11 = arith.maximumf %7, %10 : vector<8x256xbf16>
    %c0_10 = arith.constant 0 : index
    %c0_11 = arith.constant 0 : index
    %12 = vector.load %arg4[%c0_10, %c0_11] : memref<256x64xbf16, #tpu.memory_space<vmem>>, vector<256x64xbf16>
    %cst_12 = arith.constant dense<0.000000e+00> : vector<8x64xf32>
    %13 = tpu.matmul %11, %12, %cst_12 {dimension_numbers = #tpu.dot_dimension_numbers<[1], [0], [0], [1], [0, 0, 1, 1], [], []>} : vector<8x256xbf16>, vector<256x64xbf16>, vector<8x64xf32> -> vector<8x64xf32>
    %14 = arith.truncf %13 : vector<8x64xf32> to vector<8x64xbf16>
    %cst_13 = arith.constant 0.000000e+00 : bf16
    %15 = vector.broadcast %cst_13 : bf16 to vector<8x16xbf16>
    %c0_14 = arith.constant 0 : index
    %c0_15 = arith.constant 0 : index
    %16 = vector.load %arg7[%c0_14, %c0_15] : memref<8x96xbf16, #tpu.memory_space<vmem>>, vector<8x16xbf16>
    tpu.vector_store %arg7[%c0_14, %c0_15], %15 {strides = array<i32>} : memref<8x96xbf16, #tpu.memory_space<vmem>>, vector<8x16xbf16>,
    %cst_16 = arith.constant 0.000000e+00 : bf16
    %17 = vector.broadcast %cst_16 : bf16 to vector<8x16xbf16>
    %c0_17 = arith.constant 0 : index
    %c80 = arith.constant 80 : index
    %18 = vector.load %arg7[%c0_17, %c80] : memref<8x96xbf16, #tpu.memory_space<vmem>>, vector<8x16xbf16>
    tpu.vector_store %arg7[%c0_17, %c80], %17 {strides = array<i32>} : memref<8x96xbf16, #tpu.memory_space<vmem>>, vector<8x16xbf16>,
    %c0_18 = arith.constant 0 : index
    %c16_19 = arith.constant 16 : index
    %19 = vector.load %arg7[%c0_18, %c16_19] : memref<8x96xbf16, #tpu.memory_space<vmem>>, vector<8x64xbf16>
    tpu.vector_store %arg7[%c0_18, %c16_19], %14 {strides = array<i32>} : memref<8x96xbf16, #tpu.memory_space<vmem>>, vector<8x64xbf16>,
    %cst_20 = arith.constant 0.000000e+00 : f32
    %20 = vector.broadcast %cst_20 : f32 to vector<16x64xf32>
    %c0_21 = arith.constant 0 : index
    %c7 = arith.constant 7 : index
    %21 = vector.load %arg7[%c0_21, %c7] : memref<8x96xbf16, #tpu.memory_space<vmem>>, vector<8x64xbf16>
    %c0_22 = arith.constant 0 : index
    %c0_23 = arith.constant 0 : index
    %22 = vector.load %arg3[%c0_22, %c0_23] : memref<2x64xbf16, #tpu.memory_space<vmem>>, vector<1x64xbf16>
    %23 = vector.broadcast %22 : vector<1x64xbf16> to vector<8x64xbf16>
    %24 = arith.mulf %21, %23 : vector<8x64xbf16>
    %c0_24 = arith.constant 0 : index
    %c0_25 = arith.constant 0 : index
    %c0_26 = arith.constant 0 : index
    %25 = vector.load %arg2[%c0_24, %c0_25, %c0_26] : memref<9x16x8xbf16, #tpu.memory_space<vmem>>, vector<1x16x8xbf16>
    %26 = vector.shape_cast %25 : vector<1x16x8xbf16> to vector<16x8xbf16>
    %cst_27 = arith.constant dense<0.000000e+00> : vector<16x64xf32>
    %27 = tpu.matmul %26, %24, %cst_27 {dimension_numbers = #tpu.dot_dimension_numbers<[1], [0], [0], [1], [0, 0, 1, 1], [], []>} : vector<16x8xbf16>, vector<8x64xbf16>, vector<16x64xf32> -> vector<16x64xf32>
    %28 = arith.addf %20, %27 : vector<16x64xf32>
    %c0_28 = arith.constant 0 : index
    %c8 = arith.constant 8 : index
    %29 = vector.load %arg7[%c0_28, %c8] : memref<8x96xbf16, #tpu.memory_space<vmem>>, vector<8x64xbf16>
    %c1_29 = arith.constant 1 : index
    %c0_30 = arith.constant 0 : index
    %c0_31 = arith.constant 0 : index
    %30 = vector.load %arg2[%c1_29, %c0_30, %c0_31] : memref<9x16x8xbf16, #tpu.memory_space<vmem>>, vector<1x16x8xbf16>
    %31 = vector.shape_cast %30 : vector<1x16x8xbf16> to vector<16x8xbf16>
    %cst_32 = arith.constant dense<0.000000e+00> : vector<16x64xf32>
    %32 = tpu.matmul %31, %29, %cst_32 {dimension_numbers = #tpu.dot_dimension_numbers<[1], [0], [0], [1], [0, 0, 1, 1], [], []>} : vector<16x8xbf16>, vector<8x64xbf16>, vector<16x64xf32> -> vector<16x64xf32>
    %33 = arith.addf %28, %32 : vector<16x64xf32>
    %c0_33 = arith.constant 0 : index
    %c9 = arith.constant 9 : index
    %34 = vector.load %arg7[%c0_33, %c9] : memref<8x96xbf16, #tpu.memory_space<vmem>>, vector<8x64xbf16>
    %c1_34 = arith.constant 1 : index
    %c0_35 = arith.constant 0 : index
    %35 = vector.load %arg3[%c1_34, %c0_35] : memref<2x64xbf16, #tpu.memory_space<vmem>>, vector<1x64xbf16>
    %36 = vector.broadcast %35 : vector<1x64xbf16> to vector<8x64xbf16>
    %37 = arith.mulf %34, %36 : vector<8x64xbf16>
    %c2 = arith.constant 2 : index
    %c0_36 = arith.constant 0 : index
    %c0_37 = arith.constant 0 : index
    %38 = vector.load %arg2[%c2, %c0_36, %c0_37] : memref<9x16x8xbf16, #tpu.memory_space<vmem>>, vector<1x16x8xbf16>
    %39 = vector.shape_cast %38 : vector<1x16x8xbf16> to vector<16x8xbf16>
    %cst_38 = arith.constant dense<0.000000e+00> : vector<16x64xf32>
    %40 = tpu.matmul %39, %37, %cst_38 {dimension_numbers = #tpu.dot_dimension_numbers<[1], [0], [0], [1], [0, 0, 1, 1], [], []>} : vector<16x8xbf16>, vector<8x64xbf16>, vector<16x64xf32> -> vector<16x64xf32>
    %41 = arith.addf %33, %40 : vector<16x64xf32>
    %c0_39 = arith.constant 0 : index
    %c15 = arith.constant 15 : index
    %42 = vector.load %arg7[%c0_39, %c15] : memref<8x96xbf16, #tpu.memory_space<vmem>>, vector<8x64xbf16>
    %c0_40 = arith.constant 0 : index
    %c0_41 = arith.constant 0 : index
    %43 = vector.load %arg3[%c0_40, %c0_41] : memref<2x64xbf16, #tpu.memory_space<vmem>>, vector<1x64xbf16>
    %44 = vector.broadcast %43 : vector<1x64xbf16> to vector<8x64xbf16>
    %45 = arith.mulf %42, %44 : vector<8x64xbf16>
    %c3 = arith.constant 3 : index
    %c0_42 = arith.constant 0 : index
    %c0_43 = arith.constant 0 : index
    %46 = vector.load %arg2[%c3, %c0_42, %c0_43] : memref<9x16x8xbf16, #tpu.memory_space<vmem>>, vector<1x16x8xbf16>
    %47 = vector.shape_cast %46 : vector<1x16x8xbf16> to vector<16x8xbf16>
    %cst_44 = arith.constant dense<0.000000e+00> : vector<16x64xf32>
    %48 = tpu.matmul %47, %45, %cst_44 {dimension_numbers = #tpu.dot_dimension_numbers<[1], [0], [0], [1], [0, 0, 1, 1], [], []>} : vector<16x8xbf16>, vector<8x64xbf16>, vector<16x64xf32> -> vector<16x64xf32>
    %49 = arith.addf %41, %48 : vector<16x64xf32>
    %c0_45 = arith.constant 0 : index
    %c16_46 = arith.constant 16 : index
    %50 = vector.load %arg7[%c0_45, %c16_46] : memref<8x96xbf16, #tpu.memory_space<vmem>>, vector<8x64xbf16>
    %c4 = arith.constant 4 : index
    %c0_47 = arith.constant 0 : index
    %c0_48 = arith.constant 0 : index
    %51 = vector.load %arg2[%c4, %c0_47, %c0_48] : memref<9x16x8xbf16, #tpu.memory_space<vmem>>, vector<1x16x8xbf16>
    %52 = vector.shape_cast %51 : vector<1x16x8xbf16> to vector<16x8xbf16>
    %cst_49 = arith.constant dense<0.000000e+00> : vector<16x64xf32>
    %53 = tpu.matmul %52, %50, %cst_49 {dimension_numbers = #tpu.dot_dimension_numbers<[1], [0], [0], [1], [0, 0, 1, 1], [], []>} : vector<16x8xbf16>, vector<8x64xbf16>, vector<16x64xf32> -> vector<16x64xf32>
    %54 = arith.addf %49, %53 : vector<16x64xf32>
    %c0_50 = arith.constant 0 : index
    %c17_51 = arith.constant 17 : index
    %55 = vector.load %arg7[%c0_50, %c17_51] : memref<8x96xbf16, #tpu.memory_space<vmem>>, vector<8x64xbf16>
    %c1_52 = arith.constant 1 : index
    %c0_53 = arith.constant 0 : index
    %56 = vector.load %arg3[%c1_52, %c0_53] : memref<2x64xbf16, #tpu.memory_space<vmem>>, vector<1x64xbf16>
    %57 = vector.broadcast %56 : vector<1x64xbf16> to vector<8x64xbf16>
    %58 = arith.mulf %55, %57 : vector<8x64xbf16>
    %c5 = arith.constant 5 : index
    %c0_54 = arith.constant 0 : index
    %c0_55 = arith.constant 0 : index
    %59 = vector.load %arg2[%c5, %c0_54, %c0_55] : memref<9x16x8xbf16, #tpu.memory_space<vmem>>, vector<1x16x8xbf16>
    %60 = vector.shape_cast %59 : vector<1x16x8xbf16> to vector<16x8xbf16>
    %cst_56 = arith.constant dense<0.000000e+00> : vector<16x64xf32>
    %61 = tpu.matmul %60, %58, %cst_56 {dimension_numbers = #tpu.dot_dimension_numbers<[1], [0], [0], [1], [0, 0, 1, 1], [], []>} : vector<16x8xbf16>, vector<8x64xbf16>, vector<16x64xf32> -> vector<16x64xf32>
    %62 = arith.addf %54, %61 : vector<16x64xf32>
    %c0_57 = arith.constant 0 : index
    %c23 = arith.constant 23 : index
    %63 = vector.load %arg7[%c0_57, %c23] : memref<8x96xbf16, #tpu.memory_space<vmem>>, vector<8x64xbf16>
    %c0_58 = arith.constant 0 : index
    %c0_59 = arith.constant 0 : index
    %64 = vector.load %arg3[%c0_58, %c0_59] : memref<2x64xbf16, #tpu.memory_space<vmem>>, vector<1x64xbf16>
    %65 = vector.broadcast %64 : vector<1x64xbf16> to vector<8x64xbf16>
    %66 = arith.mulf %63, %65 : vector<8x64xbf16>
    %c6 = arith.constant 6 : index
    %c0_60 = arith.constant 0 : index
    %c0_61 = arith.constant 0 : index
    %67 = vector.load %arg2[%c6, %c0_60, %c0_61] : memref<9x16x8xbf16, #tpu.memory_space<vmem>>, vector<1x16x8xbf16>
    %68 = vector.shape_cast %67 : vector<1x16x8xbf16> to vector<16x8xbf16>
    %cst_62 = arith.constant dense<0.000000e+00> : vector<16x64xf32>
    %69 = tpu.matmul %68, %66, %cst_62 {dimension_numbers = #tpu.dot_dimension_numbers<[1], [0], [0], [1], [0, 0, 1, 1], [], []>} : vector<16x8xbf16>, vector<8x64xbf16>, vector<16x64xf32> -> vector<16x64xf32>
    %70 = arith.addf %62, %69 : vector<16x64xf32>
    %c0_63 = arith.constant 0 : index
    %c24 = arith.constant 24 : index
    %71 = vector.load %arg7[%c0_63, %c24] : memref<8x96xbf16, #tpu.memory_space<vmem>>, vector<8x64xbf16>
    %c7_64 = arith.constant 7 : index
    %c0_65 = arith.constant 0 : index
    %c0_66 = arith.constant 0 : index
    %72 = vector.load %arg2[%c7_64, %c0_65, %c0_66] : memref<9x16x8xbf16, #tpu.memory_space<vmem>>, vector<1x16x8xbf16>
    %73 = vector.shape_cast %72 : vector<1x16x8xbf16> to vector<16x8xbf16>
    %cst_67 = arith.constant dense<0.000000e+00> : vector<16x64xf32>
    %74 = tpu.matmul %73, %71, %cst_67 {dimension_numbers = #tpu.dot_dimension_numbers<[1], [0], [0], [1], [0, 0, 1, 1], [], []>} : vector<16x8xbf16>, vector<8x64xbf16>, vector<16x64xf32> -> vector<16x64xf32>
    %75 = arith.addf %70, %74 : vector<16x64xf32>
    %c0_68 = arith.constant 0 : index
    %c25 = arith.constant 25 : index
    %76 = vector.load %arg7[%c0_68, %c25] : memref<8x96xbf16, #tpu.memory_space<vmem>>, vector<8x64xbf16>
    %c1_69 = arith.constant 1 : index
    %c0_70 = arith.constant 0 : index
    %77 = vector.load %arg3[%c1_69, %c0_70] : memref<2x64xbf16, #tpu.memory_space<vmem>>, vector<1x64xbf16>
    %78 = vector.broadcast %77 : vector<1x64xbf16> to vector<8x64xbf16>
    %79 = arith.mulf %76, %78 : vector<8x64xbf16>
    %c8_71 = arith.constant 8 : index
    %c0_72 = arith.constant 0 : index
    %c0_73 = arith.constant 0 : index
    %80 = vector.load %arg2[%c8_71, %c0_72, %c0_73] : memref<9x16x8xbf16, #tpu.memory_space<vmem>>, vector<1x16x8xbf16>
    %81 = vector.shape_cast %80 : vector<1x16x8xbf16> to vector<16x8xbf16>
    %cst_74 = arith.constant dense<0.000000e+00> : vector<16x64xf32>
    %82 = tpu.matmul %81, %79, %cst_74 {dimension_numbers = #tpu.dot_dimension_numbers<[1], [0], [0], [1], [0, 0, 1, 1], [], []>} : vector<16x8xbf16>, vector<8x64xbf16>, vector<16x64xf32> -> vector<16x64xf32>
    %83 = arith.addf %75, %82 : vector<16x64xf32>
    %cst_75 = arith.constant dense<0.000000e+00> : vector<16xf32>
    %84 = vector.multi_reduction <add>, %83, %cst_75 [1] : vector<16x64xf32> to vector<16xf32>
    %85 = vector.shape_cast %84 : vector<16xf32> to vector<16x1xf32>
    %c0_76 = arith.constant 0 : index
    %c0_77 = arith.constant 0 : index
    %c0_78 = arith.constant 0 : index
    %86 = vector.load %arg6[%c0_76, %c0_77, %c0_78] : memref<1x16x2xf32, #tpu.memory_space<vmem>>, vector<1x16x1xf32>
    %87 = vector.shape_cast %86 : vector<1x16x1xf32> to vector<16x1xf32>
    %88 = vector.shape_cast %85 : vector<16x1xf32> to vector<1x16x1xf32>
    tpu.vector_store %arg6[%c0_76, %c0_77, %c0_78], %88 {strides = array<i32>} : memref<1x16x2xf32, #tpu.memory_space<vmem>>, vector<1x16x1xf32>,
    %89 = arith.mulf %83, %83 : vector<16x64xf32>
    %cst_79 = arith.constant dense<0.000000e+00> : vector<16xf32>
    %90 = vector.multi_reduction <add>, %89, %cst_79 [1] : vector<16x64xf32> to vector<16xf32>
    %91 = vector.shape_cast %90 : vector<16xf32> to vector<16x1xf32>
    %c0_80 = arith.constant 0 : index
    %c0_81 = arith.constant 0 : index
    %c1_82 = arith.constant 1 : index
    %92 = vector.load %arg6[%c0_80, %c0_81, %c1_82] : memref<1x16x2xf32, #tpu.memory_space<vmem>>, vector<1x16x1xf32>
    %93 = vector.shape_cast %92 : vector<1x16x1xf32> to vector<16x1xf32>
    %94 = vector.shape_cast %91 : vector<16x1xf32> to vector<1x16x1xf32>
    tpu.vector_store %arg6[%c0_80, %c0_81, %c1_82], %94 {strides = array<i32>} : memref<1x16x2xf32, #tpu.memory_space<vmem>>, vector<1x16x1xf32>,
    %95 = arith.truncf %83 : vector<16x64xf32> to vector<16x64xbf16>
    %c0_83 = arith.constant 0 : index
    %c0_84 = arith.constant 0 : index
    %c0_85 = arith.constant 0 : index
    %96 = vector.load %arg5[%c0_83, %c0_84, %c0_85] : memref<1x16x64xbf16, #tpu.memory_space<vmem>>, vector<1x16x64xbf16>
    %97 = vector.shape_cast %96 : vector<1x16x64xbf16> to vector<16x64xbf16>
    %98 = vector.shape_cast %95 : vector<16x64xbf16> to vector<1x16x64xbf16>
    tpu.vector_store %arg5[%c0_83, %c0_84, %c0_85], %98 {strides = array<i32>} : memref<1x16x64xbf16, #tpu.memory_space<vmem>>, vector<1x16x64xbf16>,
    return
  }
  func.func @transform_0(%arg0: i32) -> (i32, i32, i32) {
    %c0_i32 = arith.constant 0 : i32
    %c0_i32_0 = arith.constant 0 : i32
    %c0_i32_1 = arith.constant 0 : i32
    return %arg0, %c0_i32, %c0_i32_0 : i32, i32, i32
  }
  func.func @transform_1(%arg0: i32) -> (i32, i32, i32) {
    %c0_i32 = arith.constant 0 : i32
    %c0_i32_0 = arith.constant 0 : i32
    %c0_i32_1 = arith.constant 0 : i32
    %c0_i32_2 = arith.constant 0 : i32
    return %c0_i32, %c0_i32_0, %c0_i32_1 : i32, i32, i32
  }
  func.func @transform_2(%arg0: i32) -> (i32, i32) {
    %c0_i32 = arith.constant 0 : i32
    %c0_i32_0 = arith.constant 0 : i32
    %c0_i32_1 = arith.constant 0 : i32
    return %c0_i32, %c0_i32_0 : i32, i32
  }
  func.func @transform_3(%arg0: i32) -> (i32, i32) {
    %c0_i32 = arith.constant 0 : i32
    %c0_i32_0 = arith.constant 0 : i32
    %c0_i32_1 = arith.constant 0 : i32
    return %c0_i32, %c0_i32_0 : i32, i32
  }
  func.func @transform_4(%arg0: i32) -> (i32, i32, i32) {
    %c0_i32 = arith.constant 0 : i32
    %c0_i32_0 = arith.constant 0 : i32
    %c0_i32_1 = arith.constant 0 : i32
    return %arg0, %c0_i32, %c0_i32_0 : i32, i32, i32
  }
  func.func @transform_5(%arg0: i32) -> (i32, i32, i32) {
    %c0_i32 = arith.constant 0 : i32
    %c0_i32_0 = arith.constant 0 : i32
    %c0_i32_1 = arith.constant 0 : i32
    return %arg0, %c0_i32, %c0_i32_0 : i32, i32, i32
  }
}

module attributes {stable_mosaic.version = 11 : i64} {
  func.func @_conv3x3_kernel(%arg0: i32, %arg1: memref<1x16x64xbf16, #tpu.memory_space<vmem>>, %arg2: memref<9x16x16xbf16, #tpu.memory_space<vmem>>, %arg3: memref<2x64xbf16, #tpu.memory_space<vmem>>, %arg4: memref<1x16x64xbf16, #tpu.memory_space<vmem>>, %arg5: memref<1x16x2xf32, #tpu.memory_space<vmem>>, %arg6: memref<16x96xbf16, #tpu.memory_space<vmem>>) attributes {dimension_semantics = [#tpu.dimension_semantics<parallel>], iteration_bounds = array<i64: 2>, scalar_prefetch = 0 : i64, scratch_operands = 1 : i64, tpu.core_type = #tpu.core_type<tc>, window_params = [{transform_indices = @transform_0, window_bounds = array<i64: 1, 16, 64>}, {pipeline_mode = #tpu.pipeline_mode<synchronous>, transform_indices = @transform_1, window_bounds = array<i64: 9, 16, 16>}, {pipeline_mode = #tpu.pipeline_mode<synchronous>, transform_indices = @transform_2, window_bounds = array<i64: 2, 64>}, {transform_indices = @transform_3, window_bounds = array<i64: 1, 16, 64>}, {transform_indices = @transform_4, window_bounds = array<i64: 1, 16, 2>}]} {
    %c0 = arith.constant 0 : index
    %c0_0 = arith.constant 0 : index
    %c0_1 = arith.constant 0 : index
    %0 = vector.load %arg1[%c0, %c0_0, %c0_1] : memref<1x16x64xbf16, #tpu.memory_space<vmem>>, vector<1x16x64xbf16>
    %1 = vector.shape_cast %0 : vector<1x16x64xbf16> to vector<16x64xbf16>
    %cst = arith.constant 0.000000e+00 : bf16
    %2 = vector.broadcast %cst : bf16 to vector<16x16xbf16>
    %c0_2 = arith.constant 0 : index
    %c0_3 = arith.constant 0 : index
    %3 = vector.load %arg6[%c0_2, %c0_3] : memref<16x96xbf16, #tpu.memory_space<vmem>>, vector<16x16xbf16>
    tpu.vector_store %arg6[%c0_2, %c0_3], %2 {strides = array<i32>} : memref<16x96xbf16, #tpu.memory_space<vmem>>, vector<16x16xbf16>,
    %cst_4 = arith.constant 0.000000e+00 : bf16
    %4 = vector.broadcast %cst_4 : bf16 to vector<16x16xbf16>
    %c0_5 = arith.constant 0 : index
    %c80 = arith.constant 80 : index
    %5 = vector.load %arg6[%c0_5, %c80] : memref<16x96xbf16, #tpu.memory_space<vmem>>, vector<16x16xbf16>
    tpu.vector_store %arg6[%c0_5, %c80], %4 {strides = array<i32>} : memref<16x96xbf16, #tpu.memory_space<vmem>>, vector<16x16xbf16>,
    %c0_6 = arith.constant 0 : index
    %c16 = arith.constant 16 : index
    %6 = vector.load %arg6[%c0_6, %c16] : memref<16x96xbf16, #tpu.memory_space<vmem>>, vector<16x64xbf16>
    tpu.vector_store %arg6[%c0_6, %c16], %1 {strides = array<i32>} : memref<16x96xbf16, #tpu.memory_space<vmem>>, vector<16x64xbf16>,
    %cst_7 = arith.constant 0.000000e+00 : f32
    %7 = vector.broadcast %cst_7 : f32 to vector<16x64xf32>
    %c0_8 = arith.constant 0 : index
    %c7 = arith.constant 7 : index
    %8 = vector.load %arg6[%c0_8, %c7] : memref<16x96xbf16, #tpu.memory_space<vmem>>, vector<16x64xbf16>
    %c0_9 = arith.constant 0 : index
    %c0_10 = arith.constant 0 : index
    %9 = vector.load %arg3[%c0_9, %c0_10] : memref<2x64xbf16, #tpu.memory_space<vmem>>, vector<1x64xbf16>
    %10 = vector.broadcast %9 : vector<1x64xbf16> to vector<16x64xbf16>
    %11 = arith.mulf %8, %10 : vector<16x64xbf16>
    %c0_11 = arith.constant 0 : index
    %c0_12 = arith.constant 0 : index
    %c0_13 = arith.constant 0 : index
    %12 = vector.load %arg2[%c0_11, %c0_12, %c0_13] : memref<9x16x16xbf16, #tpu.memory_space<vmem>>, vector<1x16x16xbf16>
    %13 = vector.shape_cast %12 : vector<1x16x16xbf16> to vector<16x16xbf16>
    %cst_14 = arith.constant dense<0.000000e+00> : vector<16x64xf32>
    %14 = tpu.matmul %13, %11, %cst_14 {dimension_numbers = #tpu.dot_dimension_numbers<[1], [0], [0], [1], [0, 0, 1, 1], [], []>} : vector<16x16xbf16>, vector<16x64xbf16>, vector<16x64xf32> -> vector<16x64xf32>
    %15 = arith.addf %7, %14 : vector<16x64xf32>
    %c0_15 = arith.constant 0 : index
    %c8 = arith.constant 8 : index
    %16 = vector.load %arg6[%c0_15, %c8] : memref<16x96xbf16, #tpu.memory_space<vmem>>, vector<16x64xbf16>
    %c1 = arith.constant 1 : index
    %c0_16 = arith.constant 0 : index
    %c0_17 = arith.constant 0 : index
    %17 = vector.load %arg2[%c1, %c0_16, %c0_17] : memref<9x16x16xbf16, #tpu.memory_space<vmem>>, vector<1x16x16xbf16>
    %18 = vector.shape_cast %17 : vector<1x16x16xbf16> to vector<16x16xbf16>
    %cst_18 = arith.constant dense<0.000000e+00> : vector<16x64xf32>
    %19 = tpu.matmul %18, %16, %cst_18 {dimension_numbers = #tpu.dot_dimension_numbers<[1], [0], [0], [1], [0, 0, 1, 1], [], []>} : vector<16x16xbf16>, vector<16x64xbf16>, vector<16x64xf32> -> vector<16x64xf32>
    %20 = arith.addf %15, %19 : vector<16x64xf32>
    %c0_19 = arith.constant 0 : index
    %c9 = arith.constant 9 : index
    %21 = vector.load %arg6[%c0_19, %c9] : memref<16x96xbf16, #tpu.memory_space<vmem>>, vector<16x64xbf16>
    %c1_20 = arith.constant 1 : index
    %c0_21 = arith.constant 0 : index
    %22 = vector.load %arg3[%c1_20, %c0_21] : memref<2x64xbf16, #tpu.memory_space<vmem>>, vector<1x64xbf16>
    %23 = vector.broadcast %22 : vector<1x64xbf16> to vector<16x64xbf16>
    %24 = arith.mulf %21, %23 : vector<16x64xbf16>
    %c2 = arith.constant 2 : index
    %c0_22 = arith.constant 0 : index
    %c0_23 = arith.constant 0 : index
    %25 = vector.load %arg2[%c2, %c0_22, %c0_23] : memref<9x16x16xbf16, #tpu.memory_space<vmem>>, vector<1x16x16xbf16>
    %26 = vector.shape_cast %25 : vector<1x16x16xbf16> to vector<16x16xbf16>
    %cst_24 = arith.constant dense<0.000000e+00> : vector<16x64xf32>
    %27 = tpu.matmul %26, %24, %cst_24 {dimension_numbers = #tpu.dot_dimension_numbers<[1], [0], [0], [1], [0, 0, 1, 1], [], []>} : vector<16x16xbf16>, vector<16x64xbf16>, vector<16x64xf32> -> vector<16x64xf32>
    %28 = arith.addf %20, %27 : vector<16x64xf32>
    %c0_25 = arith.constant 0 : index
    %c15 = arith.constant 15 : index
    %29 = vector.load %arg6[%c0_25, %c15] : memref<16x96xbf16, #tpu.memory_space<vmem>>, vector<16x64xbf16>
    %c0_26 = arith.constant 0 : index
    %c0_27 = arith.constant 0 : index
    %30 = vector.load %arg3[%c0_26, %c0_27] : memref<2x64xbf16, #tpu.memory_space<vmem>>, vector<1x64xbf16>
    %31 = vector.broadcast %30 : vector<1x64xbf16> to vector<16x64xbf16>
    %32 = arith.mulf %29, %31 : vector<16x64xbf16>
    %c3 = arith.constant 3 : index
    %c0_28 = arith.constant 0 : index
    %c0_29 = arith.constant 0 : index
    %33 = vector.load %arg2[%c3, %c0_28, %c0_29] : memref<9x16x16xbf16, #tpu.memory_space<vmem>>, vector<1x16x16xbf16>
    %34 = vector.shape_cast %33 : vector<1x16x16xbf16> to vector<16x16xbf16>
    %cst_30 = arith.constant dense<0.000000e+00> : vector<16x64xf32>
    %35 = tpu.matmul %34, %32, %cst_30 {dimension_numbers = #tpu.dot_dimension_numbers<[1], [0], [0], [1], [0, 0, 1, 1], [], []>} : vector<16x16xbf16>, vector<16x64xbf16>, vector<16x64xf32> -> vector<16x64xf32>
    %36 = arith.addf %28, %35 : vector<16x64xf32>
    %c0_31 = arith.constant 0 : index
    %c16_32 = arith.constant 16 : index
    %37 = vector.load %arg6[%c0_31, %c16_32] : memref<16x96xbf16, #tpu.memory_space<vmem>>, vector<16x64xbf16>
    %c4 = arith.constant 4 : index
    %c0_33 = arith.constant 0 : index
    %c0_34 = arith.constant 0 : index
    %38 = vector.load %arg2[%c4, %c0_33, %c0_34] : memref<9x16x16xbf16, #tpu.memory_space<vmem>>, vector<1x16x16xbf16>
    %39 = vector.shape_cast %38 : vector<1x16x16xbf16> to vector<16x16xbf16>
    %cst_35 = arith.constant dense<0.000000e+00> : vector<16x64xf32>
    %40 = tpu.matmul %39, %37, %cst_35 {dimension_numbers = #tpu.dot_dimension_numbers<[1], [0], [0], [1], [0, 0, 1, 1], [], []>} : vector<16x16xbf16>, vector<16x64xbf16>, vector<16x64xf32> -> vector<16x64xf32>
    %41 = arith.addf %36, %40 : vector<16x64xf32>
    %c0_36 = arith.constant 0 : index
    %c17 = arith.constant 17 : index
    %42 = vector.load %arg6[%c0_36, %c17] : memref<16x96xbf16, #tpu.memory_space<vmem>>, vector<16x64xbf16>
    %c1_37 = arith.constant 1 : index
    %c0_38 = arith.constant 0 : index
    %43 = vector.load %arg3[%c1_37, %c0_38] : memref<2x64xbf16, #tpu.memory_space<vmem>>, vector<1x64xbf16>
    %44 = vector.broadcast %43 : vector<1x64xbf16> to vector<16x64xbf16>
    %45 = arith.mulf %42, %44 : vector<16x64xbf16>
    %c5 = arith.constant 5 : index
    %c0_39 = arith.constant 0 : index
    %c0_40 = arith.constant 0 : index
    %46 = vector.load %arg2[%c5, %c0_39, %c0_40] : memref<9x16x16xbf16, #tpu.memory_space<vmem>>, vector<1x16x16xbf16>
    %47 = vector.shape_cast %46 : vector<1x16x16xbf16> to vector<16x16xbf16>
    %cst_41 = arith.constant dense<0.000000e+00> : vector<16x64xf32>
    %48 = tpu.matmul %47, %45, %cst_41 {dimension_numbers = #tpu.dot_dimension_numbers<[1], [0], [0], [1], [0, 0, 1, 1], [], []>} : vector<16x16xbf16>, vector<16x64xbf16>, vector<16x64xf32> -> vector<16x64xf32>
    %49 = arith.addf %41, %48 : vector<16x64xf32>
    %c0_42 = arith.constant 0 : index
    %c23 = arith.constant 23 : index
    %50 = vector.load %arg6[%c0_42, %c23] : memref<16x96xbf16, #tpu.memory_space<vmem>>, vector<16x64xbf16>
    %c0_43 = arith.constant 0 : index
    %c0_44 = arith.constant 0 : index
    %51 = vector.load %arg3[%c0_43, %c0_44] : memref<2x64xbf16, #tpu.memory_space<vmem>>, vector<1x64xbf16>
    %52 = vector.broadcast %51 : vector<1x64xbf16> to vector<16x64xbf16>
    %53 = arith.mulf %50, %52 : vector<16x64xbf16>
    %c6 = arith.constant 6 : index
    %c0_45 = arith.constant 0 : index
    %c0_46 = arith.constant 0 : index
    %54 = vector.load %arg2[%c6, %c0_45, %c0_46] : memref<9x16x16xbf16, #tpu.memory_space<vmem>>, vector<1x16x16xbf16>
    %55 = vector.shape_cast %54 : vector<1x16x16xbf16> to vector<16x16xbf16>
    %cst_47 = arith.constant dense<0.000000e+00> : vector<16x64xf32>
    %56 = tpu.matmul %55, %53, %cst_47 {dimension_numbers = #tpu.dot_dimension_numbers<[1], [0], [0], [1], [0, 0, 1, 1], [], []>} : vector<16x16xbf16>, vector<16x64xbf16>, vector<16x64xf32> -> vector<16x64xf32>
    %57 = arith.addf %49, %56 : vector<16x64xf32>
    %c0_48 = arith.constant 0 : index
    %c24 = arith.constant 24 : index
    %58 = vector.load %arg6[%c0_48, %c24] : memref<16x96xbf16, #tpu.memory_space<vmem>>, vector<16x64xbf16>
    %c7_49 = arith.constant 7 : index
    %c0_50 = arith.constant 0 : index
    %c0_51 = arith.constant 0 : index
    %59 = vector.load %arg2[%c7_49, %c0_50, %c0_51] : memref<9x16x16xbf16, #tpu.memory_space<vmem>>, vector<1x16x16xbf16>
    %60 = vector.shape_cast %59 : vector<1x16x16xbf16> to vector<16x16xbf16>
    %cst_52 = arith.constant dense<0.000000e+00> : vector<16x64xf32>
    %61 = tpu.matmul %60, %58, %cst_52 {dimension_numbers = #tpu.dot_dimension_numbers<[1], [0], [0], [1], [0, 0, 1, 1], [], []>} : vector<16x16xbf16>, vector<16x64xbf16>, vector<16x64xf32> -> vector<16x64xf32>
    %62 = arith.addf %57, %61 : vector<16x64xf32>
    %c0_53 = arith.constant 0 : index
    %c25 = arith.constant 25 : index
    %63 = vector.load %arg6[%c0_53, %c25] : memref<16x96xbf16, #tpu.memory_space<vmem>>, vector<16x64xbf16>
    %c1_54 = arith.constant 1 : index
    %c0_55 = arith.constant 0 : index
    %64 = vector.load %arg3[%c1_54, %c0_55] : memref<2x64xbf16, #tpu.memory_space<vmem>>, vector<1x64xbf16>
    %65 = vector.broadcast %64 : vector<1x64xbf16> to vector<16x64xbf16>
    %66 = arith.mulf %63, %65 : vector<16x64xbf16>
    %c8_56 = arith.constant 8 : index
    %c0_57 = arith.constant 0 : index
    %c0_58 = arith.constant 0 : index
    %67 = vector.load %arg2[%c8_56, %c0_57, %c0_58] : memref<9x16x16xbf16, #tpu.memory_space<vmem>>, vector<1x16x16xbf16>
    %68 = vector.shape_cast %67 : vector<1x16x16xbf16> to vector<16x16xbf16>
    %cst_59 = arith.constant dense<0.000000e+00> : vector<16x64xf32>
    %69 = tpu.matmul %68, %66, %cst_59 {dimension_numbers = #tpu.dot_dimension_numbers<[1], [0], [0], [1], [0, 0, 1, 1], [], []>} : vector<16x16xbf16>, vector<16x64xbf16>, vector<16x64xf32> -> vector<16x64xf32>
    %70 = arith.addf %62, %69 : vector<16x64xf32>
    %cst_60 = arith.constant dense<0.000000e+00> : vector<16xf32>
    %71 = vector.multi_reduction <add>, %70, %cst_60 [1] : vector<16x64xf32> to vector<16xf32>
    %72 = vector.shape_cast %71 : vector<16xf32> to vector<16x1xf32>
    %c0_61 = arith.constant 0 : index
    %c0_62 = arith.constant 0 : index
    %c0_63 = arith.constant 0 : index
    %73 = vector.load %arg5[%c0_61, %c0_62, %c0_63] : memref<1x16x2xf32, #tpu.memory_space<vmem>>, vector<1x16x1xf32>
    %74 = vector.shape_cast %73 : vector<1x16x1xf32> to vector<16x1xf32>
    %75 = vector.shape_cast %72 : vector<16x1xf32> to vector<1x16x1xf32>
    tpu.vector_store %arg5[%c0_61, %c0_62, %c0_63], %75 {strides = array<i32>} : memref<1x16x2xf32, #tpu.memory_space<vmem>>, vector<1x16x1xf32>,
    %76 = arith.mulf %70, %70 : vector<16x64xf32>
    %cst_64 = arith.constant dense<0.000000e+00> : vector<16xf32>
    %77 = vector.multi_reduction <add>, %76, %cst_64 [1] : vector<16x64xf32> to vector<16xf32>
    %78 = vector.shape_cast %77 : vector<16xf32> to vector<16x1xf32>
    %c0_65 = arith.constant 0 : index
    %c0_66 = arith.constant 0 : index
    %c1_67 = arith.constant 1 : index
    %79 = vector.load %arg5[%c0_65, %c0_66, %c1_67] : memref<1x16x2xf32, #tpu.memory_space<vmem>>, vector<1x16x1xf32>
    %80 = vector.shape_cast %79 : vector<1x16x1xf32> to vector<16x1xf32>
    %81 = vector.shape_cast %78 : vector<16x1xf32> to vector<1x16x1xf32>
    tpu.vector_store %arg5[%c0_65, %c0_66, %c1_67], %81 {strides = array<i32>} : memref<1x16x2xf32, #tpu.memory_space<vmem>>, vector<1x16x1xf32>,
    %82 = arith.truncf %70 : vector<16x64xf32> to vector<16x64xbf16>
    %c0_68 = arith.constant 0 : index
    %c0_69 = arith.constant 0 : index
    %c0_70 = arith.constant 0 : index
    %83 = vector.load %arg4[%c0_68, %c0_69, %c0_70] : memref<1x16x64xbf16, #tpu.memory_space<vmem>>, vector<1x16x64xbf16>
    %84 = vector.shape_cast %83 : vector<1x16x64xbf16> to vector<16x64xbf16>
    %85 = vector.shape_cast %82 : vector<16x64xbf16> to vector<1x16x64xbf16>
    tpu.vector_store %arg4[%c0_68, %c0_69, %c0_70], %85 {strides = array<i32>} : memref<1x16x64xbf16, #tpu.memory_space<vmem>>, vector<1x16x64xbf16>,
    return
  }
  func.func @transform_0(%arg0: i32) -> (i32, i32, i32) {
    %c0_i32 = arith.constant 0 : i32
    %c0_i32_0 = arith.constant 0 : i32
    %c0_i32_1 = arith.constant 0 : i32
    return %arg0, %c0_i32, %c0_i32_0 : i32, i32, i32
  }
  func.func @transform_1(%arg0: i32) -> (i32, i32, i32) {
    %c0_i32 = arith.constant 0 : i32
    %c0_i32_0 = arith.constant 0 : i32
    %c0_i32_1 = arith.constant 0 : i32
    %c0_i32_2 = arith.constant 0 : i32
    return %c0_i32, %c0_i32_0, %c0_i32_1 : i32, i32, i32
  }
  func.func @transform_2(%arg0: i32) -> (i32, i32) {
    %c0_i32 = arith.constant 0 : i32
    %c0_i32_0 = arith.constant 0 : i32
    %c0_i32_1 = arith.constant 0 : i32
    return %c0_i32, %c0_i32_0 : i32, i32
  }
  func.func @transform_3(%arg0: i32) -> (i32, i32, i32) {
    %c0_i32 = arith.constant 0 : i32
    %c0_i32_0 = arith.constant 0 : i32
    %c0_i32_1 = arith.constant 0 : i32
    return %arg0, %c0_i32, %c0_i32_0 : i32, i32, i32
  }
  func.func @transform_4(%arg0: i32) -> (i32, i32, i32) {
    %c0_i32 = arith.constant 0 : i32
    %c0_i32_0 = arith.constant 0 : i32
    %c0_i32_1 = arith.constant 0 : i32
    return %arg0, %c0_i32, %c0_i32_0 : i32, i32, i32
  }
}

module attributes {stable_mosaic.version = 11 : i64} {
  func.func @_upsample2x_kernel(%arg0: i32, %arg1: memref<64x256xbf16, #tpu.memory_space<vmem>>, %arg2: memref<1x16x64xbf16, #tpu.memory_space<vmem>>, %arg3: memref<1x16x256xbf16, #tpu.memory_space<vmem>>) attributes {dimension_semantics = [#tpu.dimension_semantics<parallel>], iteration_bounds = array<i64: 2>, scalar_prefetch = 0 : i64, scratch_operands = 0 : i64, tpu.core_type = #tpu.core_type<tc>, window_params = [{pipeline_mode = #tpu.pipeline_mode<synchronous>, transform_indices = @transform_0, window_bounds = array<i64: 64, 256>}, {transform_indices = @transform_1, window_bounds = array<i64: 1, 16, 64>}, {transform_indices = @transform_2, window_bounds = array<i64: 1, 16, 256>}]} {
    %c0 = arith.constant 0 : index
    %c0_0 = arith.constant 0 : index
    %c0_1 = arith.constant 0 : index
    %0 = vector.load %arg2[%c0, %c0_0, %c0_1] : memref<1x16x64xbf16, #tpu.memory_space<vmem>>, vector<1x16x64xbf16>
    %1 = vector.shape_cast %0 : vector<1x16x64xbf16> to vector<16x64xbf16>
    %c0_2 = arith.constant 0 : index
    %c0_3 = arith.constant 0 : index
    %2 = vector.load %arg1[%c0_2, %c0_3] : memref<64x256xbf16, #tpu.memory_space<vmem>>, vector<64x256xbf16>
    %cst = arith.constant dense<0.000000e+00> : vector<16x256xf32>
    %3 = tpu.matmul %1, %2, %cst {dimension_numbers = #tpu.dot_dimension_numbers<[1], [0], [0], [1], [0, 0, 1, 1], [], []>} : vector<16x64xbf16>, vector<64x256xbf16>, vector<16x256xf32> -> vector<16x256xf32>
    %4 = arith.truncf %3 : vector<16x256xf32> to vector<16x256xbf16>
    %c0_4 = arith.constant 0 : index
    %c0_5 = arith.constant 0 : index
    %c0_6 = arith.constant 0 : index
    %5 = vector.load %arg3[%c0_4, %c0_5, %c0_6] : memref<1x16x256xbf16, #tpu.memory_space<vmem>>, vector<1x16x256xbf16>
    %6 = vector.shape_cast %5 : vector<1x16x256xbf16> to vector<16x256xbf16>
    %7 = vector.shape_cast %4 : vector<16x256xbf16> to vector<1x16x256xbf16>
    tpu.vector_store %arg3[%c0_4, %c0_5, %c0_6], %7 {strides = array<i32>} : memref<1x16x256xbf16, #tpu.memory_space<vmem>>, vector<1x16x256xbf16>,
    return
  }
  func.func @transform_0(%arg0: i32) -> (i32, i32) {
    %c0_i32 = arith.constant 0 : i32
    %c0_i32_0 = arith.constant 0 : i32
    %c0_i32_1 = arith.constant 0 : i32
    return %c0_i32, %c0_i32_0 : i32, i32
  }
  func.func @transform_1(%arg0: i32) -> (i32, i32, i32) {
    %c0_i32 = arith.constant 0 : i32
    %c0_i32_0 = arith.constant 0 : i32
    %c0_i32_1 = arith.constant 0 : i32
    return %arg0, %c0_i32, %c0_i32_0 : i32, i32, i32
  }
  func.func @transform_2(%arg0: i32) -> (i32, i32, i32) {
    %c0_i32 = arith.constant 0 : i32
    %c0_i32_0 = arith.constant 0 : i32
    %c0_i32_1 = arith.constant 0 : i32
    return %arg0, %c0_i32, %c0_i32_0 : i32, i32, i32
  }
}

module attributes {stable_mosaic.version = 11 : i64} {
  func.func @_bn_relu_kernel(%arg0: i32, %arg1: memref<16x1xf32, #tpu.memory_space<vmem>>, %arg2: memref<16x1xf32, #tpu.memory_space<vmem>>, %arg3: memref<1x16x64xbf16, #tpu.memory_space<vmem>>, %arg4: memref<1x16x64xbf16, #tpu.memory_space<vmem>>) attributes {dimension_semantics = [#tpu.dimension_semantics<parallel>], iteration_bounds = array<i64: 2>, scalar_prefetch = 0 : i64, scratch_operands = 0 : i64, tpu.core_type = #tpu.core_type<tc>, window_params = [{pipeline_mode = #tpu.pipeline_mode<synchronous>, transform_indices = @transform_0, window_bounds = array<i64: 16, 1>}, {pipeline_mode = #tpu.pipeline_mode<synchronous>, transform_indices = @transform_1, window_bounds = array<i64: 16, 1>}, {transform_indices = @transform_2, window_bounds = array<i64: 1, 16, 64>}, {transform_indices = @transform_3, window_bounds = array<i64: 1, 16, 64>}]} {
    %c0 = arith.constant 0 : index
    %c0_0 = arith.constant 0 : index
    %c0_1 = arith.constant 0 : index
    %0 = vector.load %arg3[%c0, %c0_0, %c0_1] : memref<1x16x64xbf16, #tpu.memory_space<vmem>>, vector<1x16x64xbf16>
    %1 = vector.shape_cast %0 : vector<1x16x64xbf16> to vector<16x64xbf16>
    %2 = arith.extf %1 : vector<16x64xbf16> to vector<16x64xf32>
    %c0_2 = arith.constant 0 : index
    %c0_3 = arith.constant 0 : index
    %3 = vector.load %arg1[%c0_2, %c0_3] : memref<16x1xf32, #tpu.memory_space<vmem>>, vector<16x1xf32>
    %4 = vector.broadcast %3 : vector<16x1xf32> to vector<16x64xf32>
    %5 = arith.mulf %2, %4 : vector<16x64xf32>
    %c0_4 = arith.constant 0 : index
    %c0_5 = arith.constant 0 : index
    %6 = vector.load %arg2[%c0_4, %c0_5] : memref<16x1xf32, #tpu.memory_space<vmem>>, vector<16x1xf32>
    %7 = vector.broadcast %6 : vector<16x1xf32> to vector<16x64xf32>
    %8 = arith.addf %5, %7 : vector<16x64xf32>
    %cst = arith.constant 0.000000e+00 : f32
    %9 = vector.broadcast %cst : f32 to vector<16x64xf32>
    %10 = arith.maximumf %8, %9 : vector<16x64xf32>
    %11 = arith.truncf %10 : vector<16x64xf32> to vector<16x64xbf16>
    %c0_6 = arith.constant 0 : index
    %c0_7 = arith.constant 0 : index
    %c0_8 = arith.constant 0 : index
    %12 = vector.load %arg4[%c0_6, %c0_7, %c0_8] : memref<1x16x64xbf16, #tpu.memory_space<vmem>>, vector<1x16x64xbf16>
    %13 = vector.shape_cast %12 : vector<1x16x64xbf16> to vector<16x64xbf16>
    %14 = vector.shape_cast %11 : vector<16x64xbf16> to vector<1x16x64xbf16>
    tpu.vector_store %arg4[%c0_6, %c0_7, %c0_8], %14 {strides = array<i32>} : memref<1x16x64xbf16, #tpu.memory_space<vmem>>, vector<1x16x64xbf16>,
    return
  }
  func.func @transform_0(%arg0: i32) -> (i32, i32) {
    %c0_i32 = arith.constant 0 : i32
    %c0_i32_0 = arith.constant 0 : i32
    %c0_i32_1 = arith.constant 0 : i32
    return %c0_i32, %c0_i32_0 : i32, i32
  }
  func.func @transform_1(%arg0: i32) -> (i32, i32) {
    %c0_i32 = arith.constant 0 : i32
    %c0_i32_0 = arith.constant 0 : i32
    %c0_i32_1 = arith.constant 0 : i32
    return %c0_i32, %c0_i32_0 : i32, i32
  }
  func.func @transform_2(%arg0: i32) -> (i32, i32, i32) {
    %c0_i32 = arith.constant 0 : i32
    %c0_i32_0 = arith.constant 0 : i32
    %c0_i32_1 = arith.constant 0 : i32
    return %arg0, %c0_i32, %c0_i32_0 : i32, i32, i32
  }
  func.func @transform_3(%arg0: i32) -> (i32, i32, i32) {
    %c0_i32 = arith.constant 0 : i32
    %c0_i32_0 = arith.constant 0 : i32
    %c0_i32_1 = arith.constant 0 : i32
    return %arg0, %c0_i32, %c0_i32_0 : i32, i32, i32
  }
}

module attributes {stable_mosaic.version = 11 : i64} {
  func.func @_conv3x3_kernel(%arg0: i32, %arg1: memref<1x24x256xbf16, #tpu.memory_space<vmem>>, %arg2: memref<9x8x24xbf16, #tpu.memory_space<vmem>>, %arg3: memref<2x256xbf16, #tpu.memory_space<vmem>>, %arg4: memref<1x8x256xbf16, #tpu.memory_space<vmem>>, %arg5: memref<1x8x2xf32, #tpu.memory_space<vmem>>, %arg6: memref<24x320xbf16, #tpu.memory_space<vmem>>) attributes {dimension_semantics = [#tpu.dimension_semantics<parallel>], iteration_bounds = array<i64: 2>, scalar_prefetch = 0 : i64, scratch_operands = 1 : i64, tpu.core_type = #tpu.core_type<tc>, window_params = [{transform_indices = @transform_0, window_bounds = array<i64: 1, 24, 256>}, {pipeline_mode = #tpu.pipeline_mode<synchronous>, transform_indices = @transform_1, window_bounds = array<i64: 9, 8, 24>}, {pipeline_mode = #tpu.pipeline_mode<synchronous>, transform_indices = @transform_2, window_bounds = array<i64: 2, 256>}, {transform_indices = @transform_3, window_bounds = array<i64: 1, 8, 256>}, {transform_indices = @transform_4, window_bounds = array<i64: 1, 8, 2>}]} {
    %c0 = arith.constant 0 : index
    %c0_0 = arith.constant 0 : index
    %c0_1 = arith.constant 0 : index
    %0 = vector.load %arg1[%c0, %c0_0, %c0_1] : memref<1x24x256xbf16, #tpu.memory_space<vmem>>, vector<1x24x256xbf16>
    %1 = vector.shape_cast %0 : vector<1x24x256xbf16> to vector<24x256xbf16>
    %cst = arith.constant 0.000000e+00 : bf16
    %2 = vector.broadcast %cst : bf16 to vector<24x32xbf16>
    %c0_2 = arith.constant 0 : index
    %c0_3 = arith.constant 0 : index
    %3 = vector.load %arg6[%c0_2, %c0_3] : memref<24x320xbf16, #tpu.memory_space<vmem>>, vector<24x32xbf16>
    tpu.vector_store %arg6[%c0_2, %c0_3], %2 {strides = array<i32>} : memref<24x320xbf16, #tpu.memory_space<vmem>>, vector<24x32xbf16>,
    %cst_4 = arith.constant 0.000000e+00 : bf16
    %4 = vector.broadcast %cst_4 : bf16 to vector<24x32xbf16>
    %c0_5 = arith.constant 0 : index
    %c288 = arith.constant 288 : index
    %5 = vector.load %arg6[%c0_5, %c288] : memref<24x320xbf16, #tpu.memory_space<vmem>>, vector<24x32xbf16>
    tpu.vector_store %arg6[%c0_5, %c288], %4 {strides = array<i32>} : memref<24x320xbf16, #tpu.memory_space<vmem>>, vector<24x32xbf16>,
    %c0_6 = arith.constant 0 : index
    %c32 = arith.constant 32 : index
    %6 = vector.load %arg6[%c0_6, %c32] : memref<24x320xbf16, #tpu.memory_space<vmem>>, vector<24x256xbf16>
    tpu.vector_store %arg6[%c0_6, %c32], %1 {strides = array<i32>} : memref<24x320xbf16, #tpu.memory_space<vmem>>, vector<24x256xbf16>,
    %cst_7 = arith.constant 0.000000e+00 : f32
    %7 = vector.broadcast %cst_7 : f32 to vector<8x256xf32>
    %c0_8 = arith.constant 0 : index
    %c15 = arith.constant 15 : index
    %8 = vector.load %arg6[%c0_8, %c15] : memref<24x320xbf16, #tpu.memory_space<vmem>>, vector<24x256xbf16>
    %c0_9 = arith.constant 0 : index
    %c0_10 = arith.constant 0 : index
    %9 = vector.load %arg3[%c0_9, %c0_10] : memref<2x256xbf16, #tpu.memory_space<vmem>>, vector<1x256xbf16>
    %10 = vector.broadcast %9 : vector<1x256xbf16> to vector<24x256xbf16>
    %11 = arith.mulf %8, %10 : vector<24x256xbf16>
    %c0_11 = arith.constant 0 : index
    %c0_12 = arith.constant 0 : index
    %c0_13 = arith.constant 0 : index
    %12 = vector.load %arg2[%c0_11, %c0_12, %c0_13] : memref<9x8x24xbf16, #tpu.memory_space<vmem>>, vector<1x8x24xbf16>
    %13 = vector.shape_cast %12 : vector<1x8x24xbf16> to vector<8x24xbf16>
    %cst_14 = arith.constant dense<0.000000e+00> : vector<8x256xf32>
    %14 = tpu.matmul %13, %11, %cst_14 {dimension_numbers = #tpu.dot_dimension_numbers<[1], [0], [0], [1], [0, 0, 1, 1], [], []>} : vector<8x24xbf16>, vector<24x256xbf16>, vector<8x256xf32> -> vector<8x256xf32>
    %15 = arith.addf %7, %14 : vector<8x256xf32>
    %c0_15 = arith.constant 0 : index
    %c16 = arith.constant 16 : index
    %16 = vector.load %arg6[%c0_15, %c16] : memref<24x320xbf16, #tpu.memory_space<vmem>>, vector<24x256xbf16>
    %c1 = arith.constant 1 : index
    %c0_16 = arith.constant 0 : index
    %c0_17 = arith.constant 0 : index
    %17 = vector.load %arg2[%c1, %c0_16, %c0_17] : memref<9x8x24xbf16, #tpu.memory_space<vmem>>, vector<1x8x24xbf16>
    %18 = vector.shape_cast %17 : vector<1x8x24xbf16> to vector<8x24xbf16>
    %cst_18 = arith.constant dense<0.000000e+00> : vector<8x256xf32>
    %19 = tpu.matmul %18, %16, %cst_18 {dimension_numbers = #tpu.dot_dimension_numbers<[1], [0], [0], [1], [0, 0, 1, 1], [], []>} : vector<8x24xbf16>, vector<24x256xbf16>, vector<8x256xf32> -> vector<8x256xf32>
    %20 = arith.addf %15, %19 : vector<8x256xf32>
    %c0_19 = arith.constant 0 : index
    %c17 = arith.constant 17 : index
    %21 = vector.load %arg6[%c0_19, %c17] : memref<24x320xbf16, #tpu.memory_space<vmem>>, vector<24x256xbf16>
    %c1_20 = arith.constant 1 : index
    %c0_21 = arith.constant 0 : index
    %22 = vector.load %arg3[%c1_20, %c0_21] : memref<2x256xbf16, #tpu.memory_space<vmem>>, vector<1x256xbf16>
    %23 = vector.broadcast %22 : vector<1x256xbf16> to vector<24x256xbf16>
    %24 = arith.mulf %21, %23 : vector<24x256xbf16>
    %c2 = arith.constant 2 : index
    %c0_22 = arith.constant 0 : index
    %c0_23 = arith.constant 0 : index
    %25 = vector.load %arg2[%c2, %c0_22, %c0_23] : memref<9x8x24xbf16, #tpu.memory_space<vmem>>, vector<1x8x24xbf16>
    %26 = vector.shape_cast %25 : vector<1x8x24xbf16> to vector<8x24xbf16>
    %cst_24 = arith.constant dense<0.000000e+00> : vector<8x256xf32>
    %27 = tpu.matmul %26, %24, %cst_24 {dimension_numbers = #tpu.dot_dimension_numbers<[1], [0], [0], [1], [0, 0, 1, 1], [], []>} : vector<8x24xbf16>, vector<24x256xbf16>, vector<8x256xf32> -> vector<8x256xf32>
    %28 = arith.addf %20, %27 : vector<8x256xf32>
    %c0_25 = arith.constant 0 : index
    %c31 = arith.constant 31 : index
    %29 = vector.load %arg6[%c0_25, %c31] : memref<24x320xbf16, #tpu.memory_space<vmem>>, vector<24x256xbf16>
    %c0_26 = arith.constant 0 : index
    %c0_27 = arith.constant 0 : index
    %30 = vector.load %arg3[%c0_26, %c0_27] : memref<2x256xbf16, #tpu.memory_space<vmem>>, vector<1x256xbf16>
    %31 = vector.broadcast %30 : vector<1x256xbf16> to vector<24x256xbf16>
    %32 = arith.mulf %29, %31 : vector<24x256xbf16>
    %c3 = arith.constant 3 : index
    %c0_28 = arith.constant 0 : index
    %c0_29 = arith.constant 0 : index
    %33 = vector.load %arg2[%c3, %c0_28, %c0_29] : memref<9x8x24xbf16, #tpu.memory_space<vmem>>, vector<1x8x24xbf16>
    %34 = vector.shape_cast %33 : vector<1x8x24xbf16> to vector<8x24xbf16>
    %cst_30 = arith.constant dense<0.000000e+00> : vector<8x256xf32>
    %35 = tpu.matmul %34, %32, %cst_30 {dimension_numbers = #tpu.dot_dimension_numbers<[1], [0], [0], [1], [0, 0, 1, 1], [], []>} : vector<8x24xbf16>, vector<24x256xbf16>, vector<8x256xf32> -> vector<8x256xf32>
    %36 = arith.addf %28, %35 : vector<8x256xf32>
    %c0_31 = arith.constant 0 : index
    %c32_32 = arith.constant 32 : index
    %37 = vector.load %arg6[%c0_31, %c32_32] : memref<24x320xbf16, #tpu.memory_space<vmem>>, vector<24x256xbf16>
    %c4 = arith.constant 4 : index
    %c0_33 = arith.constant 0 : index
    %c0_34 = arith.constant 0 : index
    %38 = vector.load %arg2[%c4, %c0_33, %c0_34] : memref<9x8x24xbf16, #tpu.memory_space<vmem>>, vector<1x8x24xbf16>
    %39 = vector.shape_cast %38 : vector<1x8x24xbf16> to vector<8x24xbf16>
    %cst_35 = arith.constant dense<0.000000e+00> : vector<8x256xf32>
    %40 = tpu.matmul %39, %37, %cst_35 {dimension_numbers = #tpu.dot_dimension_numbers<[1], [0], [0], [1], [0, 0, 1, 1], [], []>} : vector<8x24xbf16>, vector<24x256xbf16>, vector<8x256xf32> -> vector<8x256xf32>
    %41 = arith.addf %36, %40 : vector<8x256xf32>
    %c0_36 = arith.constant 0 : index
    %c33 = arith.constant 33 : index
    %42 = vector.load %arg6[%c0_36, %c33] : memref<24x320xbf16, #tpu.memory_space<vmem>>, vector<24x256xbf16>
    %c1_37 = arith.constant 1 : index
    %c0_38 = arith.constant 0 : index
    %43 = vector.load %arg3[%c1_37, %c0_38] : memref<2x256xbf16, #tpu.memory_space<vmem>>, vector<1x256xbf16>
    %44 = vector.broadcast %43 : vector<1x256xbf16> to vector<24x256xbf16>
    %45 = arith.mulf %42, %44 : vector<24x256xbf16>
    %c5 = arith.constant 5 : index
    %c0_39 = arith.constant 0 : index
    %c0_40 = arith.constant 0 : index
    %46 = vector.load %arg2[%c5, %c0_39, %c0_40] : memref<9x8x24xbf16, #tpu.memory_space<vmem>>, vector<1x8x24xbf16>
    %47 = vector.shape_cast %46 : vector<1x8x24xbf16> to vector<8x24xbf16>
    %cst_41 = arith.constant dense<0.000000e+00> : vector<8x256xf32>
    %48 = tpu.matmul %47, %45, %cst_41 {dimension_numbers = #tpu.dot_dimension_numbers<[1], [0], [0], [1], [0, 0, 1, 1], [], []>} : vector<8x24xbf16>, vector<24x256xbf16>, vector<8x256xf32> -> vector<8x256xf32>
    %49 = arith.addf %41, %48 : vector<8x256xf32>
    %c0_42 = arith.constant 0 : index
    %c47 = arith.constant 47 : index
    %50 = vector.load %arg6[%c0_42, %c47] : memref<24x320xbf16, #tpu.memory_space<vmem>>, vector<24x256xbf16>
    %c0_43 = arith.constant 0 : index
    %c0_44 = arith.constant 0 : index
    %51 = vector.load %arg3[%c0_43, %c0_44] : memref<2x256xbf16, #tpu.memory_space<vmem>>, vector<1x256xbf16>
    %52 = vector.broadcast %51 : vector<1x256xbf16> to vector<24x256xbf16>
    %53 = arith.mulf %50, %52 : vector<24x256xbf16>
    %c6 = arith.constant 6 : index
    %c0_45 = arith.constant 0 : index
    %c0_46 = arith.constant 0 : index
    %54 = vector.load %arg2[%c6, %c0_45, %c0_46] : memref<9x8x24xbf16, #tpu.memory_space<vmem>>, vector<1x8x24xbf16>
    %55 = vector.shape_cast %54 : vector<1x8x24xbf16> to vector<8x24xbf16>
    %cst_47 = arith.constant dense<0.000000e+00> : vector<8x256xf32>
    %56 = tpu.matmul %55, %53, %cst_47 {dimension_numbers = #tpu.dot_dimension_numbers<[1], [0], [0], [1], [0, 0, 1, 1], [], []>} : vector<8x24xbf16>, vector<24x256xbf16>, vector<8x256xf32> -> vector<8x256xf32>
    %57 = arith.addf %49, %56 : vector<8x256xf32>
    %c0_48 = arith.constant 0 : index
    %c48 = arith.constant 48 : index
    %58 = vector.load %arg6[%c0_48, %c48] : memref<24x320xbf16, #tpu.memory_space<vmem>>, vector<24x256xbf16>
    %c7 = arith.constant 7 : index
    %c0_49 = arith.constant 0 : index
    %c0_50 = arith.constant 0 : index
    %59 = vector.load %arg2[%c7, %c0_49, %c0_50] : memref<9x8x24xbf16, #tpu.memory_space<vmem>>, vector<1x8x24xbf16>
    %60 = vector.shape_cast %59 : vector<1x8x24xbf16> to vector<8x24xbf16>
    %cst_51 = arith.constant dense<0.000000e+00> : vector<8x256xf32>
    %61 = tpu.matmul %60, %58, %cst_51 {dimension_numbers = #tpu.dot_dimension_numbers<[1], [0], [0], [1], [0, 0, 1, 1], [], []>} : vector<8x24xbf16>, vector<24x256xbf16>, vector<8x256xf32> -> vector<8x256xf32>
    %62 = arith.addf %57, %61 : vector<8x256xf32>
    %c0_52 = arith.constant 0 : index
    %c49 = arith.constant 49 : index
    %63 = vector.load %arg6[%c0_52, %c49] : memref<24x320xbf16, #tpu.memory_space<vmem>>, vector<24x256xbf16>
    %c1_53 = arith.constant 1 : index
    %c0_54 = arith.constant 0 : index
    %64 = vector.load %arg3[%c1_53, %c0_54] : memref<2x256xbf16, #tpu.memory_space<vmem>>, vector<1x256xbf16>
    %65 = vector.broadcast %64 : vector<1x256xbf16> to vector<24x256xbf16>
    %66 = arith.mulf %63, %65 : vector<24x256xbf16>
    %c8 = arith.constant 8 : index
    %c0_55 = arith.constant 0 : index
    %c0_56 = arith.constant 0 : index
    %67 = vector.load %arg2[%c8, %c0_55, %c0_56] : memref<9x8x24xbf16, #tpu.memory_space<vmem>>, vector<1x8x24xbf16>
    %68 = vector.shape_cast %67 : vector<1x8x24xbf16> to vector<8x24xbf16>
    %cst_57 = arith.constant dense<0.000000e+00> : vector<8x256xf32>
    %69 = tpu.matmul %68, %66, %cst_57 {dimension_numbers = #tpu.dot_dimension_numbers<[1], [0], [0], [1], [0, 0, 1, 1], [], []>} : vector<8x24xbf16>, vector<24x256xbf16>, vector<8x256xf32> -> vector<8x256xf32>
    %70 = arith.addf %62, %69 : vector<8x256xf32>
    %cst_58 = arith.constant dense<0.000000e+00> : vector<8xf32>
    %71 = vector.multi_reduction <add>, %70, %cst_58 [1] : vector<8x256xf32> to vector<8xf32>
    %72 = vector.shape_cast %71 : vector<8xf32> to vector<8x1xf32>
    %c0_59 = arith.constant 0 : index
    %c0_60 = arith.constant 0 : index
    %c0_61 = arith.constant 0 : index
    %73 = vector.load %arg5[%c0_59, %c0_60, %c0_61] : memref<1x8x2xf32, #tpu.memory_space<vmem>>, vector<1x8x1xf32>
    %74 = vector.shape_cast %73 : vector<1x8x1xf32> to vector<8x1xf32>
    %75 = vector.shape_cast %72 : vector<8x1xf32> to vector<1x8x1xf32>
    tpu.vector_store %arg5[%c0_59, %c0_60, %c0_61], %75 {strides = array<i32>} : memref<1x8x2xf32, #tpu.memory_space<vmem>>, vector<1x8x1xf32>,
    %76 = arith.mulf %70, %70 : vector<8x256xf32>
    %cst_62 = arith.constant dense<0.000000e+00> : vector<8xf32>
    %77 = vector.multi_reduction <add>, %76, %cst_62 [1] : vector<8x256xf32> to vector<8xf32>
    %78 = vector.shape_cast %77 : vector<8xf32> to vector<8x1xf32>
    %c0_63 = arith.constant 0 : index
    %c0_64 = arith.constant 0 : index
    %c1_65 = arith.constant 1 : index
    %79 = vector.load %arg5[%c0_63, %c0_64, %c1_65] : memref<1x8x2xf32, #tpu.memory_space<vmem>>, vector<1x8x1xf32>
    %80 = vector.shape_cast %79 : vector<1x8x1xf32> to vector<8x1xf32>
    %81 = vector.shape_cast %78 : vector<8x1xf32> to vector<1x8x1xf32>
    tpu.vector_store %arg5[%c0_63, %c0_64, %c1_65], %81 {strides = array<i32>} : memref<1x8x2xf32, #tpu.memory_space<vmem>>, vector<1x8x1xf32>,
    %82 = arith.truncf %70 : vector<8x256xf32> to vector<8x256xbf16>
    %c0_66 = arith.constant 0 : index
    %c0_67 = arith.constant 0 : index
    %c0_68 = arith.constant 0 : index
    %83 = vector.load %arg4[%c0_66, %c0_67, %c0_68] : memref<1x8x256xbf16, #tpu.memory_space<vmem>>, vector<1x8x256xbf16>
    %84 = vector.shape_cast %83 : vector<1x8x256xbf16> to vector<8x256xbf16>
    %85 = vector.shape_cast %82 : vector<8x256xbf16> to vector<1x8x256xbf16>
    tpu.vector_store %arg4[%c0_66, %c0_67, %c0_68], %85 {strides = array<i32>} : memref<1x8x256xbf16, #tpu.memory_space<vmem>>, vector<1x8x256xbf16>,
    return
  }
  func.func @transform_0(%arg0: i32) -> (i32, i32, i32) {
    %c0_i32 = arith.constant 0 : i32
    %c0_i32_0 = arith.constant 0 : i32
    %c0_i32_1 = arith.constant 0 : i32
    return %arg0, %c0_i32, %c0_i32_0 : i32, i32, i32
  }
  func.func @transform_1(%arg0: i32) -> (i32, i32, i32) {
    %c0_i32 = arith.constant 0 : i32
    %c0_i32_0 = arith.constant 0 : i32
    %c0_i32_1 = arith.constant 0 : i32
    %c0_i32_2 = arith.constant 0 : i32
    return %c0_i32, %c0_i32_0, %c0_i32_1 : i32, i32, i32
  }
  func.func @transform_2(%arg0: i32) -> (i32, i32) {
    %c0_i32 = arith.constant 0 : i32
    %c0_i32_0 = arith.constant 0 : i32
    %c0_i32_1 = arith.constant 0 : i32
    return %c0_i32, %c0_i32_0 : i32, i32
  }
  func.func @transform_3(%arg0: i32) -> (i32, i32, i32) {
    %c0_i32 = arith.constant 0 : i32
    %c0_i32_0 = arith.constant 0 : i32
    %c0_i32_1 = arith.constant 0 : i32
    return %arg0, %c0_i32, %c0_i32_0 : i32, i32, i32
  }
  func.func @transform_4(%arg0: i32) -> (i32, i32, i32) {
    %c0_i32 = arith.constant 0 : i32
    %c0_i32_0 = arith.constant 0 : i32
    %c0_i32_1 = arith.constant 0 : i32
    return %arg0, %c0_i32, %c0_i32_0 : i32, i32, i32
  }
}

module attributes {stable_mosaic.version = 11 : i64} {
  func.func @_outc_kernel(%arg0: i32, %arg1: memref<2x8xbf16, #tpu.memory_space<vmem>>, %arg2: memref<2x1xf32, #tpu.memory_space<vmem>>, %arg3: memref<1x8x256xbf16, #tpu.memory_space<vmem>>, %arg4: memref<1x2x256xf32, #tpu.memory_space<vmem>>) attributes {dimension_semantics = [#tpu.dimension_semantics<parallel>], iteration_bounds = array<i64: 2>, scalar_prefetch = 0 : i64, scratch_operands = 0 : i64, tpu.core_type = #tpu.core_type<tc>, window_params = [{pipeline_mode = #tpu.pipeline_mode<synchronous>, transform_indices = @transform_0, window_bounds = array<i64: 2, 8>}, {pipeline_mode = #tpu.pipeline_mode<synchronous>, transform_indices = @transform_1, window_bounds = array<i64: 2, 1>}, {transform_indices = @transform_2, window_bounds = array<i64: 1, 8, 256>}, {transform_indices = @transform_3, window_bounds = array<i64: 1, 2, 256>}]} {
    %c0 = arith.constant 0 : index
    %c0_0 = arith.constant 0 : index
    %0 = vector.load %arg1[%c0, %c0_0] : memref<2x8xbf16, #tpu.memory_space<vmem>>, vector<2x8xbf16>
    %c0_1 = arith.constant 0 : index
    %c0_2 = arith.constant 0 : index
    %c0_3 = arith.constant 0 : index
    %1 = vector.load %arg3[%c0_1, %c0_2, %c0_3] : memref<1x8x256xbf16, #tpu.memory_space<vmem>>, vector<1x8x256xbf16>
    %2 = vector.shape_cast %1 : vector<1x8x256xbf16> to vector<8x256xbf16>
    %cst = arith.constant dense<0.000000e+00> : vector<2x256xf32>
    %3 = tpu.matmul %0, %2, %cst {dimension_numbers = #tpu.dot_dimension_numbers<[1], [0], [0], [1], [0, 0, 1, 1], [], []>} : vector<2x8xbf16>, vector<8x256xbf16>, vector<2x256xf32> -> vector<2x256xf32>
    %c0_4 = arith.constant 0 : index
    %c0_5 = arith.constant 0 : index
    %4 = vector.load %arg2[%c0_4, %c0_5] : memref<2x1xf32, #tpu.memory_space<vmem>>, vector<2x1xf32>
    %5 = vector.broadcast %4 : vector<2x1xf32> to vector<2x256xf32>
    %6 = arith.addf %3, %5 : vector<2x256xf32>
    %7 = arith.negf %6 : vector<2x256xf32>
    %8 = math.exp %7 : vector<2x256xf32>
    %cst_6 = arith.constant 1.000000e+00 : f32
    %9 = vector.broadcast %cst_6 : f32 to vector<2x256xf32>
    %10 = arith.addf %9, %8 : vector<2x256xf32>
    %11 = arith.divf %9, %10 : vector<2x256xf32>
    %c0_7 = arith.constant 0 : index
    %c0_8 = arith.constant 0 : index
    %c0_9 = arith.constant 0 : index
    %12 = vector.load %arg4[%c0_7, %c0_8, %c0_9] : memref<1x2x256xf32, #tpu.memory_space<vmem>>, vector<1x2x256xf32>
    %13 = vector.shape_cast %12 : vector<1x2x256xf32> to vector<2x256xf32>
    %14 = vector.shape_cast %11 : vector<2x256xf32> to vector<1x2x256xf32>
    tpu.vector_store %arg4[%c0_7, %c0_8, %c0_9], %14 {strides = array<i32>} : memref<1x2x256xf32, #tpu.memory_space<vmem>>, vector<1x2x256xf32>,
    return
  }
  func.func @transform_0(%arg0: i32) -> (i32, i32) {
    %c0_i32 = arith.constant 0 : i32
    %c0_i32_0 = arith.constant 0 : i32
    %c0_i32_1 = arith.constant 0 : i32
    return %c0_i32, %c0_i32_0 : i32, i32
  }
  func.func @transform_1(%arg0: i32) -> (i32, i32) {
    %c0_i32 = arith.constant 0 : i32
    %c0_i32_0 = arith.constant 0 : i32
    %c0_i32_1 = arith.constant 0 : i32
    return %c0_i32, %c0_i32_0 : i32, i32
  }
  func.func @transform_2(%arg0: i32) -> (i32, i32, i32) {
    %c0_i32 = arith.constant 0 : i32
    %c0_i32_0 = arith.constant 0 : i32
    %c0_i32_1 = arith.constant 0 : i32
    return %arg0, %c0_i32, %c0_i32_0 : i32, i32, i32
  }
  func.func @transform_3(%arg0: i32) -> (i32, i32, i32) {
    %c0_i32 = arith.constant 0 : i32
    %c0_i32_0 = arith.constant 0 : i32
    %c0_i32_1 = arith.constant 0 : i32
    return %arg0, %c0_i32, %c0_i32_0 : i32, i32, i32
  }
}

</mosaic_0001>

<bundles_post_ra>
// kernel: unet_forward.15
= control target key start
LH: loop header
LB: loop body
LE: loop exit
PB: predicated region body
PF: predicated region fallthrough
CT: control target
= control target key end

     0   :  { %s310_s12 = smov 0   ;;  %s333_s0 = inlined_call_operand.vmem [shape: f32[8,1], index: 0, kind: input, shape index: {}]   ;;  %s334_s1 = inlined_call_operand.vmem [shape: f32[8,1], index: 1, kind: input, shape index: {}]   ;;  %s335_s2 = inlined_call_operand.vmem [shape: bf16[2,8,256], index: 2, kind: input, shape index: {}]   ;;  %s336_s3 = inlined_call_operand.vmem [shape: bf16[2,8,256], index: 3, kind: output, shape index: {}]  }
   0x1 LB: > { %s256_s13 = sadd.s32 4294967295, %s287_s12   ;;  %p260_p0 = scmp.ge.s32.totalorder %s287_s12, 1  ;;  %s287_s12 = sphi %s310_s12, %s13_s12  }
   0x2   : > { %p137_p1 = scmp.lt.s32.totalorder %s287_s12, 3 }
   0x4   : > { %p138_p2 = pnand %p260_p0, %p137_p1 }
   0x5   : > { %v174_v0 = vld [vmem:[%s333_s0] sm:$0xff] (!%p138_p2)  ;;  %v289_v1 = vmov (!%p138_p2), 0   ;;  %p161_p3 = scmp.lt.s32.totalorder (!%p138_p2), %s256_s13, 1 }
   0x6   : > { %141 = sbr.rel (%p138_p2) target bundleno = 146 (0x92), region = 32  ;;  %280 = vset.pattern.permute.xlu0 (!%p138_p2), %v289_v1  ;;  %v182_v2 = vld [vmem:[%s334_s1] sm:$0xff] (!%p138_p2) }
   0x7   : > { %177 = vperm.xlu0 (!%p138_p2), %280, %v174_v0  }
   0xb   : > { %185 = vperm.xlu0 (!%p138_p2), %280, %v182_v2  }
   0xd   : > { %s338_s13 = smov (!%p161_p3, %s256_s13), 1 }
   0xe   : > { %s268_s18 = sshll.u32 %s338_s13, 3 }
   0xf   : > { %s165_s21 = scalar_lea.vmem %s335_s2, %s268_s18  ;;  %s170_s24 = scalar_lea.vmem %s336_s3, %s268_s18 }
  0x10   : > { %v171_v3 = vld [vmem:[%s165_s21] sm:$0xff] }
  0x11   : > { %v172_v4 = vunpack.c.l.bf16 %v171_v3  ;;  %v173_v5 = vunpack.c.h.bf16 %v171_v3 }
  0x86   : > { %v178_v6 = vpop.permute.xlu0 %177 }
  0x87   : > { %v180_v7 = vmul.f32 %v178_v6, %v172_v4  ;;  %v181_v8 = vmul.f32 %v178_v6, %v173_v5 }
  0x8a   : > { %v186_v9 = vpop.permute.xlu0 %185 }
  0x8b   : > { %v188_v10 = vadd.f32 %v186_v9, %v180_v7  ;;  %v189_v11 = vadd.f32 %v186_v9, %v181_v8 }
  0x8d   : > { %v190_v12 = vmax.f32 %v188_v10, 0.0  ;;  %v191_v13 = vmax.f32 %v189_v11, 0.0 }
  0x8f   : > { %v270_v14 = vpack.c.bf16 %v191_v13, %v190_v12 }
  0x91   : > { %200 = vst [vmem:[%s170_s24] sm:$0xff] %v270_v14 }
  0x92 PF: > { %s13_s12 = sadd.s32 1, %s287_s12  }
  0x93   : > { %p10_p4 = scmp.ge.s32.totalorder %s13_s12, 4  }
  0x95   :  { %12 = sbr.rel (!%p10_p4) target bundleno = 1 (0x1), region = 62 }

// kernel: unet_forward.14
= control target key start
LH: loop header
LB: loop body
LE: loop exit
PB: predicated region body
PF: predicated region fallthrough
CT: control target
= control target key end

     0   :  { %s1366_s15 = smov 0   ;;  %s1491_s0 = inlined_call_operand.vmem [shape: bf16[2,3,256], index: 0, kind: input, shape index: {}]   ;;  %s1492_s1 = inlined_call_operand.vmem [shape: bf16[9,8,3], index: 1, kind: input, shape index: {}]   ;;  %s1493_s2 = inlined_call_operand.vmem [shape: bf16[2,256], index: 2, kind: input, shape index: {}]   ;;  %s1494_s3 = inlined_call_operand.vmem [shape: bf16[2,8,256], index: 3, kind: output, shape index: {0}]   ;;  %s1495_s4 = inlined_call_operand.vmem [shape: f32[2,8,2], index: 4, kind: output, shape index: {1}]  }
   0x1 LB: > { %s1217_s16 = sadd.s32 4294967295, %s1319_s15   ;;  %p1221_p0 = scmp.ge.s32.totalorder %s1319_s15, 1  ;;  %s1319_s15 = sphi %s1366_s15, %s15_s15  }
   0x2   : > { %p165_p1 = scmp.lt.s32.totalorder %s1319_s15, 3 }
   0x4   : > { %p166_p2 = pnand %p1221_p0, %p165_p1 }
   0x5   : > { %p195_p3 = scmp.lt.s32.totalorder (!%p166_p2), %s1217_s16, 1  ;;  %v1227_v0 = vld.sshfl [vmem:[%s1493_s2] sm:$0x11 pattern:$0x75316420] (!%p166_p2)  ;;  %v256_v1 = vlaneseq (!%p166_p2)  ;;  %vm211_vm0 = vcmask (!%p166_p2), 254976  }
   0x6   : > { %169 = sbr.rel (%p166_p2) target bundleno = 684 (0x2ac), region = 32  ;;  %v1321_v2 = vmov (!%p166_p2), 1966171168   ;;  %v214_v5 = vld [vmem:[#allocation2] sm:$0x3] (!%p166_p2)  ;;  %vm217_vm2 = vcmask (!%p166_p2), 517376   ;;  %v252_v8 = vcombine.high (!%p166_p2), %v1227_v0, %v1227_v0 }
   0x7   : > { %v254_v3 = vunpack.c.l.s4 (!%p166_p2), %v1321_v2  ;;  %v257_v4 = vshrl.u32 (!%p166_p2), %v256_v1, 7  ;;  %v1322_v6 = vmov (!%p166_p2), 1983009808   ;;  %vm212_vm1 = vsmask.f32 (!%p166_p2), 1280  ;;  %s1323_s23 = smov (!%p166_p2), 32  }
   0x8   : > { %v285_v7 = vunpack.c.l.s4 (!%p166_p2), %v1322_v6  ;;  %vm213_vm3 = vmand (!%p166_p2), %vm211_vm0, %vm212_vm1  ;;  %v219_v10 = vld [vmem:[#allocation2 + $0x4] sm:$0x3] (!%p166_p2)  ;;  %s1324_s24 = smov (!%p166_p2), 15   ;;  %s1325_s25 = smov (!%p166_p2), 33   ;;  %vm229_vm5 = vcmask (!%p166_p2), 1041664   ;;  %vm231_vm6 = vcmask (!%p166_p2), 1043458  }
   0x9   : > { %v255_v9 = vunpack.c.0.s8 (!%p166_p2), %v254_v3  ;;  %v215_v11 = vsel (!%p166_p2), %vm213_vm3, 0, %v214_v5  ;;  %vm218_vm4 = vmand (!%p166_p2), %vm217_vm2, %vm212_vm1  ;;  %v272_v18 = vsub.s32 (!%p166_p2), 0, %v257_v4  ;;  %s1326_s26 = smov (!%p166_p2), 47   ;;  %s1327_s27 = smov (!%p166_p2), 17   ;;  %vm232_vm7 = vsmask.f32 (!%p166_p2), 3328 }
   0xa   : > { %216 = vst [vmem:[#allocation2] sm:$0x3] (!%p166_p2), %v215_v11  ;;  %v220_v14 = vsel (!%p166_p2), %vm218_vm4, 0, %v219_v10  ;;  %v286_v15 = vunpack.c.0.s8 (!%p166_p2), %v285_v7  ;;  %s1328_s28 = smov (!%p166_p2), 31   ;;  %s1329_s29 = smov (!%p166_p2), 49   ;;  %vm230_vm8 = vmand (!%p166_p2), %vm229_vm5, %vm212_vm1  ;;  %vm235_vm10 = vcmask (!%p166_p2), 259076  }
   0xb   : > { %v258_v13 = vsub.s32 (!%p166_p2), %v255_v9, %v257_v4  ;;  %221 = vst [vmem:[#allocation2 + $0x4] sm:$0x3] (!%p166_p2), %v220_v14  ;;  %vm233_vm9 = vmand (!%p166_p2), %vm231_vm6, %vm232_vm7  ;;  %vm236_vm11 = vsmask.f32 (!%p166_p2), 5376  ;;  %vm226_vm14 = vcmask (!%p166_p2), 261120   ;;  %vm769_vm0 = vcmask (!%p166_p2), 269312  }
   0xc   : > { %v1385_v23 = vsub.s32 (!%p166_p2), %v286_v15, %v257_v4  ;;  %vm234_vm12 = vmor (!%p166_p2), %vm233_vm9, %vm230_vm8  ;;  %v1330_v43 = vmov (!%p166_p2), 0   ;;  %vm294_vm1 = vcmask (!%p166_p2), 121856   ;;  %s1331_s30 = smov (!%p166_p2), 96   ;;  %vm857_vm2 = vcmask (!%p166_p2), 384000   ;;  %s1332_s5 = smov (!%p166_p2), 112  }
   0xd   : > { %s1497_s16 = smov (!%p195_p3, %s1217_s16), 1  ;;  %v259_v16 = vrot.slane %v1227_v0, %v258_v13  ;;  %v266_v17 = vrot.slane %v252_v8, %v258_v13  ;;  %vm237_vm13 = vmand %vm235_vm10, %vm236_vm11  ;;  %754 = vmatprep.mubr.bf16.mxu0 %v1330_v43  ;;  %373 = vmatprep.mubr.bf16.mxu1 %v1330_v43  ;;  %s1333_s6 = smov 95   ;;  %vm512_vm3 = vcmask 138240   ;;  %vm600_vm4 = vcmask 252928  }
   0xe   : > { %s1249_s19 = sshll.u32 %s1497_s16, 2  ;;  %vm238_vm15 = vmor %vm237_vm13, %vm234_vm12  ;;  %s1334_s7 = smov 113   ;;  %vm1026_vm5 = vcmask 400384   ;;  %vm331_vm6 = vcmask 1040384   ;;  %vm332_vm7 = vcmask 1041408   ;;  %vm710_vm8 = vcmask 785408  }
   0xf   : > { %s199_s22 = scalar_lea.vmem %s1491_s0, %s1249_s19  ;;  %v268_v19 = vpack.i.b16 %v259_v16, %v259_v16  ;;  %v275_v20 = vpack.i.b16 %v266_v17, %v266_v17  ;;  %v484_v21 = vshrl.u32 %v259_v16, 16  ;;  %v492_v22 = vshrl.u32 %v266_v17, 16  ;;  %s1335_s8 = smov 81  }
  0x10   : > { %v210_v12 = vld [vmem:[%s199_s22] sm:$0xf]  ;;  %s1336_s9 = smov 80   ;;  %s1337_s10 = smov 111   ;;  %vm324_vm9 = vcmask 916480   ;;  %vm327_vm10 = vcmask 23552  }
  0x11   : > { %223 = vrot.lane.b32.xlu0 %v210_v12, %s1323_s23  ;;  %v273_v24 = vrot.slane %v268_v19, %v272_v18  ;;  %v280_v25 = vrot.slane %v275_v20, %v272_v18  ;;  %v485_v26 = vpack.i.b16 %v484_v21, %v484_v21  ;;  %v493_v27 = vpack.i.b16 %v492_v22, %v492_v22  ;;  %s1338_s11 = smov 97   ;;  %s1339_s12 = smov 79  }
  0x12   : > { %v239_v35 = vld [vmem:[#allocation2] sm:$0x3f]  ;;  %vm798_vm11 = vcmask 777216   ;;  %vm405_vm12 = vcmask 924672   ;;  %vm886_vm13 = vcmask 662528  }
  0x13   : > { %v283_v28 = vcombine.low %v273_v24, %v280_v25  ;;  %v490_v29 = vrot.slane %v485_v26, %v272_v18  ;;  %v498_v30 = vrot.slane %v493_v27, %v272_v18 }
  0x15   : > { %v290_v31 = vrot.slane %v283_v28, %v1385_v23  ;;  %v501_v32 = vcombine.low %v490_v29, %v498_v30 }
  0x17   : > { %291 = vrot.lane.b32.xlu1 %v290_v31, %s1324_s24  ;;  %v508_v33 = vrot.slane %v501_v32, %v1385_v23 }
  0x19   : > { %766 = vrot.lane.b32.xlu0 %v508_v33, %s1325_s25 }
  0x1b   : > { %854 = vrot.lane.b32.xlu1 %v290_v31, %s1326_s26 }
  0x1d   : > { %509 = vrot.lane.b32.xlu0 %v508_v33, %s1327_s27 }
  0x1f   : > { %597 = vrot.lane.b32.xlu1 %v290_v31, %s1328_s28 }
  0x21   : > { %1023 = vrot.lane.b32.xlu0 %v508_v33, %s1329_s29 }
  0x83   : > { %v224_v34 = vpop.permute.xlu0 %223 }
  0x84   : > { %v225_v36 = vrot.slane %v224_v34, 6 }
  0x86   : > { %v227_v37 = vsel %vm226_vm14, %v225_v36, %v224_v34  ;;  %vm967_vm14 = vcmask 654336  }
  0x87   : > { %v240_v38 = vsel %vm238_vm15, %v227_v37, %v239_v35  ;;  %vm541_vm15 = vcmask 908288  }
  0x88   : > { %241 = vst [vmem:[#allocation2] sm:$0x3f] %v240_v38 }
  0x89   : > { %v292_v39 = vpop.permute.xlu1 %291 }
  0x8a   : > { %v293_v52 = vrot.slane %v292_v39, 6 }
  0x8b   : > { %v767_v41 = vpop.permute.xlu0 %766 }
  0x8c   : > { %v768_v44 = vrot.slane %v767_v41, 6  ;;  %v295_v58 = vsel %vm294_vm1, %v293_v52, %v292_v39  ;;  %vm1055_vm1 = vcmask 646144  }
  0x8d   : > { %v855_v54 = vpop.permute.xlu1 %854 }
  0x8e   : > { %v770_v48 = vsel %vm769_vm0, %v768_v44, %v767_v41  ;;  %v856_v59 = vrot.slane %v855_v54, 6  ;;  %vm629_vm0 = vcmask 793600  }
  0x8f   : > { %v242_v40 = vld [vmem:[#allocation2] sm:$0x3f]  ;;  %v510_v5 = vpop.permute.xlu0 %509 }
  0x90   : > { %v684_v42 = vld [vmem:[#allocation2] sm:$0x3f]  ;;  %v309_v51 = vrot.slane %v242_v40, %v1385_v23  ;;  %v302_v57 = vcombine.high %v242_v40, %v242_v40  ;;  %v297_v60 = vmul.bf16 %v295_v58, %v242_v40  ;;  %v858_v0 = vsel %vm857_vm2, %v856_v59, %v855_v54  ;;  %v1236_v58 = vld [vmem:[%s1492_s1 + $0x10] sm:$0xf] }
  0x91   : > { %v695_v45 = vrot.slane %v684_v42, %v1385_v23  ;;  %v688_v46 = vcombine.high %v684_v42, %v684_v42  ;;  %v765_v47 = vld [vmem:[#allocation2] sm:$0x3f]  ;;  %v511_v9 = vrot.slane %v510_v5, 6  ;;  %v598_v15 = vpop.permute.xlu1 %597  ;;  %vm1113_vm2 = vcmask 7168  }
  0x92   : > { %v772_v53 = vmul.bf16 %v770_v48, %v765_v47  ;;  %v317_v56 = vcombine.high %v309_v51, %v309_v51  ;;  %v316_v62 = vrot.slane %v302_v57, %v1385_v23  ;;  %v853_v1 = vld [vmem:[#allocation2] sm:$0x3f]  ;;  %v390_v2 = vrot.slane %v297_v60, %v1385_v23 }
  0x93   : > { %v703_v49 = vcombine.high %v695_v45, %v695_v45  ;;  %v702_v50 = vrot.slane %v688_v46, %v1385_v23  ;;  %v860_v3 = vmul.bf16 %v858_v0, %v853_v1  ;;  %v383_v6 = vcombine.high %v297_v60, %v297_v60  ;;  %v941_v14 = vld [vmem:[#allocation2] sm:$0x3f]  ;;  %v1024_v21 = vpop.permute.xlu0 %1023 }
  0x94   : > { %v783_v55 = vrot.slane %v772_v53, %v1385_v23  ;;  %v776_v61 = vcombine.high %v772_v53, %v772_v53  ;;  %v398_v8 = vcombine.high %v390_v2, %v390_v2  ;;  %v513_v13 = vsel %vm512_vm3, %v511_v9, %v510_v5  ;;  %v458_v16 = vld [vmem:[#allocation2] sm:$0x3f] }
  0x95   : > { %706 = vrot.lane.b32.xlu1 %v703_v49, %s1331_s30  ;;  %708 = vrot.lane.b32.xlu0 %v702_v50, %s1331_s30  ;;  %v871_v7 = vrot.slane %v860_v3, %v1385_v23  ;;  %v864_v10 = vcombine.high %v860_v3, %v860_v3  ;;  %v397_v12 = vrot.slane %v383_v6, %v1385_v23  ;;  %v599_v20 = vrot.slane %v598_v15, 6  ;;  %v596_v28 = vld [vmem:[#allocation2] sm:$0x3f] }
  0x96   : > { %v791_v63 = vcombine.high %v783_v55, %v783_v55  ;;  %v790_v4 = vrot.slane %v776_v61, %v1385_v23  ;;  %v515_v17 = vmul.bf16 %v513_v13, %v458_v16  ;;  %v952_v19 = vrot.slane %v941_v14, %v1385_v23  ;;  %v1022_v34 = vld [vmem:[#allocation2] sm:$0x3f] }
  0x97   : > { %v879_v11 = vcombine.high %v871_v7, %v871_v7  ;;  %v878_v18 = vrot.slane %v864_v10, %v1385_v23  ;;  %v945_v25 = vcombine.high %v941_v14, %v941_v14  ;;  %v601_v26 = vsel %vm600_vm4, %v599_v20, %v598_v15  ;;  %v1228_v5 = vld [vmem:[%s1492_s1 + $0x4] sm:$0xf]  ;;  %v1238_v10 = vld [vmem:[%s1492_s1 + $0x14] sm:$0xf] }
  0x98   : > { %v526_v22 = vrot.slane %v515_v17, %v1385_v23  ;;  %v960_v24 = vcombine.high %v952_v19, %v952_v19  ;;  %v1025_v27 = vrot.slane %v1024_v21, 6  ;;  %v519_v29 = vcombine.high %v515_v17, %v515_v17 }
  0x99   : > { %704 = vrot.lane.b32.xlu1 %v695_v45, %s1331_s30  ;;  %320 = vrot.lane.b32.xlu0 %v317_v56, %s1332_s5  ;;  %v603_v30 = vmul.bf16 %v601_v26, %v596_v28  ;;  %v959_v31 = vrot.slane %v945_v25, %v1385_v23  ;;  %v1340_v46 = vmov 65535   ;;  %vm1120_vm3 = vcmask 15368  }
  0x9a   : > { %v534_v32 = vcombine.high %v526_v22, %v526_v22  ;;  %v1027_v33 = vsel %vm1026_vm5, %v1025_v27, %v1024_v21  ;;  %v533_v37 = vrot.slane %v519_v29, %v1385_v23  ;;  %v333_v47 = vsel %vm331_vm6, 4294967295, %v1340_v46  ;;  %v298_v21 = vld [vmem:[%s1492_s1] sm:$0xf]  ;;  %v1240_v27 = vld [vmem:[%s1492_s1 + $0x18] sm:$0xf] }
  0x9b   : > { %v614_v35 = vrot.slane %v603_v30, %v1385_v23  ;;  %v1029_v36 = vmul.bf16 %v1027_v33, %v1022_v34  ;;  %v607_v38 = vcombine.high %v603_v30, %v603_v30  ;;  %v1410_v48 = vsel %vm332_vm7, %v333_v47, 0 }
  0x9d   : > { %322 = vrot.lane.b32.xlu1 %v316_v62, %s1332_s5  ;;  %794 = vrot.lane.b32.xlu0 %v791_v63, %s1333_s6  ;;  %v1040_v39 = vrot.slane %v1029_v36, %v1385_v23  ;;  %v622_v40 = vcombine.high %v614_v35, %v614_v35  ;;  %v1033_v41 = vcombine.high %v1029_v36, %v1029_v36 }
  0x9e   : > { %v621_v42 = vrot.slane %v607_v38, %v1385_v23 }
  0x9f   : > { %v1048_v44 = vcombine.high %v1040_v39, %v1040_v39  ;;  %v1047_v45 = vrot.slane %v1033_v41, %v1385_v23 }
  0xa1   : > { %318 = vrot.lane.b32.xlu0 %v309_v51, %s1332_s5  ;;  %796 = vrot.lane.b32.xlu1 %v790_v4, %s1333_s6 }
  0xa5   : > { %401 = vrot.lane.b32.xlu0 %v398_v8, %s1334_s7  ;;  %792 = vrot.lane.b32.xlu1 %v783_v55, %s1333_s6 }
  0xa9   : > { %882 = vrot.lane.b32.xlu0 %v879_v11, %s1335_s8  ;;  %403 = vrot.lane.b32.xlu1 %v397_v12, %s1334_s7 }
  0xad   : > { %399 = vrot.lane.b32.xlu0 %v390_v2, %s1334_s7  ;;  %884 = vrot.lane.b32.xlu1 %v878_v18, %s1335_s8  ;;  %s1250_s7 = sshll.u32 %s1497_s16, 3 }
  0xae   : > { %s208_s16 = scalar_lea.vmem %s1495_s4, %s1250_s7 }
  0xb1   : > { %963 = vrot.lane.b32.xlu0 %v960_v24, %s1336_s9  ;;  %880 = vrot.lane.b32.xlu1 %v871_v7, %s1335_s8 }
  0xb5   : > { %965 = vrot.lane.b32.xlu1 %v959_v31, %s1336_s9  ;;  %537 = vrot.lane.b32.xlu0 %v534_v32, %s1337_s10 }
  0xb9   : > { %535 = vrot.lane.b32.xlu0 %v526_v22, %s1337_s10  ;;  %539 = vrot.lane.b32.xlu1 %v533_v37, %s1337_s10  ;;  %s204_s10 = scalar_lea.vmem %s1494_s3, %s1250_s7 }
  0xbd   : > { %625 = vrot.lane.b32.xlu0 %v622_v40, %s1338_s11  ;;  %961 = vrot.lane.b32.xlu1 %v952_v19, %s1336_s9 }
  0xc1   : > { %627 = vrot.lane.b32.xlu1 %v621_v42, %s1338_s11  ;;  %1051 = vrot.lane.b32.xlu0 %v1048_v44, %s1339_s12  ;;  %v1242_v44 = vld [vmem:[%s1492_s1 + $0x1c] sm:$0xf] }
  0xc5   : > { %623 = vrot.lane.b32.xlu0 %v614_v35, %s1338_s11  ;;  %1053 = vrot.lane.b32.xlu1 %v1047_v45, %s1339_s12 }
  0xc9   : > { %1049 = vrot.lane.b32.xlu1 %v1040_v39, %s1339_s12  ;;  %v1232_v39 = vld [vmem:[%s1492_s1 + $0x8] sm:$0xf] }
 0x107   : > { %v707_v49 = vpop.permute.xlu1 %706  ;;  %v709_v50 = vpop.permute.xlu0 %708 }
 0x108   : > { %v712_v51 = vsel %vm710_vm8, %v707_v49, %v709_v50 }
 0x109   : > { %v720_v52 = vand.u32 %v712_v51, %v1410_v48 }
 0x10b   : > { %v705_v53 = vpop.permute.xlu1 %704  ;;  %722 = vmatprep.subr.bf16.mxu0 %v720_v52  ;;  %v321_v54 = vpop.permute.xlu0 %320 }
 0x10c   : > { %v711_v55 = vsel %vm710_vm8, %v705_v53, %v707_v49 }
 0x10d   : > { %v717_v23 = vand.u32 %v711_v55, %v1410_v48 }
 0x10f   : > { %v323_v56 = vpop.permute.xlu1 %322  ;;  %723 = vmatpush1.bf16.msra.mxu0 %v717_v23  ;;  %v795_v57 = vpop.permute.xlu0 %794  ;;  %v1234_v23 = vld [vmem:[%s1492_s1 + $0xc] sm:$0xf] }
 0x110   : > { %v326_v59 = vsel %vm324_vm9, %v321_v54, %v323_v56 }
 0x111   : > { %v339_v60 = vand.u32 %v1410_v48, %v326_v59 }
 0x112   : > { %1237 = vmatmul.mubr.msk.bf16.vlgmr.msra.gmra.mrb[0].mxu0 %vm327_vm10, %v1236_v58 }
 0x113   : > { %v797_v61 = vpop.permute.xlu1 %796  ;;  %341 = vmatprep.subr.bf16.mxu1 %v339_v60  ;;  %v319_v62 = vpop.permute.xlu0 %318  ;;  %842 = vmatprep.mubr.bf16.mxu0 %v1330_v43 }
 0x114   : > { %v800_v63 = vsel %vm798_vm11, %v795_v57, %v797_v61  ;;  %v325_v0 = vsel %vm324_vm9, %v319_v62, %v321_v54 }
 0x115   : > { %v808_v1 = vand.u32 %v800_v63, %v1410_v48  ;;  %v336_v2 = vand.u32 %v1410_v48, %v325_v0 }
 0x117   : > { %v793_v3 = vpop.permute.xlu1 %792  ;;  %342 = vmatpush1.bf16.msra.mxu1 %v336_v2  ;;  %810 = vmatprep.subr.bf16.mxu0 %v808_v1  ;;  %v402_v4 = vpop.permute.xlu0 %401 }
 0x118   : > { %v799_v6 = vsel %vm798_vm11, %v793_v3, %v795_v57 }
 0x119   : > { %v805_v7 = vand.u32 %v799_v6, %v1410_v48 }
 0x11a   : > { %1229 = vmatmul.mubr.msk.bf16.vlgmr.msra.gmra.mrb[0].mxu1 %vm327_vm10, %v1228_v5 }
 0x11b   : > { %v404_v8 = vpop.permute.xlu1 %403  ;;  %811 = vmatpush1.bf16.msra.mxu0 %v805_v7  ;;  %v883_v9 = vpop.permute.xlu0 %882  ;;  %449 = vmatprep.mubr.bf16.mxu1 %v1330_v43 }
 0x11c   : > { %v407_v11 = vsel %vm405_vm12, %v402_v4, %v404_v8 }
 0x11d   : > { %v415_v12 = vand.u32 %v407_v11, %v1410_v48 }
 0x11e   : > { %1239 = vmatmul.mubr.msk.bf16.vlgmr.msra.gmra.mrb[0].mxu0 %vm327_vm10, %v1238_v10 }
 0x11f   : > { %v885_v13 = vpop.permute.xlu1 %884  ;;  %417 = vmatprep.subr.bf16.mxu1 %v415_v12  ;;  %v400_v14 = vpop.permute.xlu0 %399  ;;  %930 = vmatprep.mubr.bf16.mxu0 %v1330_v43 }
 0x120   : > { %v888_v15 = vsel %vm886_vm13, %v883_v9, %v885_v13  ;;  %v406_v16 = vsel %vm405_vm12, %v400_v14, %v402_v4 }
 0x121   : > { %v896_v17 = vand.u32 %v888_v15, %v1410_v48  ;;  %v412_v18 = vand.u32 %v406_v16, %v1410_v48 }
 0x123   : > { %v881_v19 = vpop.permute.xlu1 %880  ;;  %418 = vmatpush1.bf16.msra.mxu1 %v412_v18  ;;  %898 = vmatprep.subr.bf16.mxu0 %v896_v17  ;;  %v964_v20 = vpop.permute.xlu0 %963 }
 0x124   : > { %v887_v22 = vsel %vm886_vm13, %v881_v19, %v883_v9 }
 0x125   : > { %v893_v24 = vand.u32 %v887_v22, %v1410_v48 }
 0x126   : > { %1230 = vmatmul.mubr.msk.bf16.vlgmr.msra.gmra.mrb[0].mxu1 %vm327_vm10, %v298_v21 }
 0x127   : > { %v966_v25 = vpop.permute.xlu1 %965  ;;  %899 = vmatpush1.bf16.msra.mxu0 %v893_v24  ;;  %v538_v26 = vpop.permute.xlu0 %537  ;;  %585 = vmatprep.mubr.bf16.mxu1 %v1330_v43 }
 0x128   : > { %v969_v28 = vsel %vm967_vm14, %v964_v20, %v966_v25 }
 0x129   : > { %v977_v29 = vand.u32 %v969_v28, %v1410_v48 }
 0x12a   : > { %1241 = vmatmul.mubr.msk.bf16.vlgmr.msra.gmra.mrb[0].mxu0 %vm327_vm10, %v1240_v27 }
 0x12b   : > { %v540_v30 = vpop.permute.xlu1 %539  ;;  %979 = vmatprep.subr.bf16.mxu0 %v977_v29  ;;  %v536_v31 = vpop.permute.xlu0 %535  ;;  %1011 = vmatprep.mubr.bf16.mxu0 %v1330_v43 }
 0x12c   : > { %v543_v32 = vsel %vm541_vm15, %v538_v26, %v540_v30  ;;  %v542_v33 = vsel %vm541_vm15, %v536_v31, %v538_v26 }
 0x12d   : > { %v551_v34 = vand.u32 %v543_v32, %v1410_v48  ;;  %v548_v35 = vand.u32 %v542_v33, %v1410_v48 }
 0x12f   : > { %v962_v36 = vpop.permute.xlu1 %961  ;;  %553 = vmatprep.subr.bf16.mxu1 %v551_v34  ;;  %v626_v37 = vpop.permute.xlu0 %625 }
 0x130   : > { %v968_v38 = vsel %vm967_vm14, %v962_v36, %v964_v20  ;;  %554 = vmatpush1.bf16.msra.mxu1 %v548_v35 }
 0x131   : > { %v974_v40 = vand.u32 %v968_v38, %v1410_v48 }
 0x133   : > { %v628_v41 = vpop.permute.xlu1 %627  ;;  %1233 = vmatmul.mubr.msk.bf16.vlgmr.msra.gmra.mrb[0].mxu1 %vm327_vm10, %v1232_v39  ;;  %980 = vmatpush1.bf16.msra.mxu0 %v974_v40  ;;  %v1052_v42 = vpop.permute.xlu0 %1051 }
 0x134   : > { %v631_v45 = vsel %vm629_vm0, %v626_v37, %v628_v41  ;;  %673 = vmatprep.mubr.bf16.mxu1 %v1330_v43 }
 0x135   : > { %v639_v46 = vand.u32 %v631_v45, %v1410_v48 }
 0x136   : > { %1243 = vmatmul.mubr.msk.bf16.vlgmr.msra.gmra.mrb[0].mxu0 %vm327_vm10, %v1242_v44 }
 0x137   : > { %v1054_v47 = vpop.permute.xlu1 %1053  ;;  %641 = vmatprep.subr.bf16.mxu1 %v639_v46  ;;  %v624_v49 = vpop.permute.xlu0 %623  ;;  %1099 = vmatprep.mubr.bf16.mxu0 %v1330_v43  ;;  %v1244_v43 = vld [vmem:[%s1492_s1 + $0x20] sm:$0xf] }
 0x138   : > { %v1057_v50 = vsel %vm1055_vm1, %v1052_v42, %v1054_v47  ;;  %v630_v51 = vsel %vm629_vm0, %v624_v49, %v626_v37 }
 0x139   : > { %v1065_v52 = vand.u32 %v1057_v50, %v1410_v48  ;;  %v636_v53 = vand.u32 %v630_v51, %v1410_v48 }
 0x13b   : > { %v1050_v54 = vpop.permute.xlu1 %1049  ;;  %642 = vmatpush1.bf16.msra.mxu1 %v636_v53  ;;  %1067 = vmatprep.subr.bf16.mxu0 %v1065_v52 }
 0x13c   : > { %v1056_v55 = vsel %vm1055_vm1, %v1050_v54, %v1052_v42 }
 0x13d   : > { %v1062_v56 = vand.u32 %v1056_v55, %v1410_v48 }
 0x13f   : > { %1235 = vmatmul.mubr.msk.bf16.vlgmr.msra.gmra.mrb[0].mxu1 %vm327_vm10, %v1234_v23  ;;  %1068 = vmatpush1.bf16.msra.mxu0 %v1062_v56 }
 0x142   : > { %1245 = vmatmul.mubr.msk.bf16.vlgmr.msra.gmra.mrb[0].mxu0 %vm327_vm10, %v1244_v43 }
 0x212   : > { %v675_v57 = vpop.f32.mrb[0].mxu1 }
 0x213   : > { %v677_v58 = vpop.f32.mrb[1].mxu1 }
 0x214   : > { %v679_v59 = vpop.f32.mrb[2].mxu1 }
 0x215   : > { %v680_v60 = vpop.f32.mrb[3].mxu1  ;;  %v1101_v61 = vpop.f32.mrb[0].mxu0 }
 0x216   : > { %v1252_v62 = vadd.f32 %v1101_v61, %v675_v57  ;;  %v1103_v63 = vpop.f32.mrb[1].mxu0 }
 0x217   : > { %v1253_v0 = vadd.f32 %v1103_v63, %v677_v58  ;;  %v1105_v1 = vpop.f32.mrb[2].mxu0 }
 0x218   : > { %v1106_v48 = vpop.f32.mrb[3].mxu0  ;;  %v1115_v2 = vmul.f32 %v1252_v62, %v1252_v62 }
 0x219   : > { %v1251_v3 = vpack.c.bf16 %v1253_v0, %v1252_v62  ;;  %v1110_v4 = vadd.f32 %v1253_v0, %v1252_v62  ;;  %v1116_v5 = vmul.f32 %v1253_v0, %v1253_v0 }
 0x21b   : > { %1111 = vadd.xlane.f32.xlu0 %v1110_v4  ;;  %v1117_v6 = vadd.f32 %v1116_v5, %v1115_v2  ;;  %1130 = vst [vmem:[%s204_s10] sm:$0xff] %v1251_v3 }
 0x21d   : > { %1118 = vadd.xlane.f32.xlu1 %v1117_v6 }
 0x2a8   : > { %v1112_v7 = vpop.xlane.xlu0 %1111 }
 0x2a9   : > { %1114 = vst.msk [vmem:[%s208_s16] sm:$0xff] %vm1113_vm2, %v1112_v7 }
 0x2aa   : > { %v1119_v8 = vpop.xlane.xlu1 %1118 }
 0x2ab   : > { %1121 = vst.msk [vmem:[%s208_s16] sm:$0xff] %vm1120_vm3, %v1119_v8 }
 0x2ac PF: > { %s15_s15 = sadd.s32 1, %s1319_s15  }
 0x2ad   : > { %p12_p4 = scmp.ge.s32.totalorder %s15_s15, 4  }
 0x2af   :  { %14 = sbr.rel (!%p12_p4) target bundleno = 1 (0x1), region = 82 }

// kernel: unet_forward.16
= control target key start
LH: loop header
LB: loop body
LE: loop exit
PB: predicated region body
PF: predicated region fallthrough
CT: control target
= control target key end

     0   :  { %s1290_s15 = smov 0   ;;  %s1414_s0 = inlined_call_operand.vmem [shape: bf16[2,8,256], index: 0, kind: input, shape index: {}]   ;;  %s1415_s1 = inlined_call_operand.vmem [shape: bf16[9,8,8], index: 1, kind: input, shape index: {}]   ;;  %s1416_s2 = inlined_call_operand.vmem [shape: bf16[2,256], index: 2, kind: input, shape index: {}]   ;;  %s1417_s3 = inlined_call_operand.vmem [shape: bf16[2,8,256], index: 3, kind: output, shape index: {0}]   ;;  %s1418_s4 = inlined_call_operand.vmem [shape: f32[2,8,2], index: 4, kind: output, shape index: {1}]  }
   0x1 LB: > { %s1109_s16 = sadd.s32 4294967295, %s1245_s15   ;;  %p1113_p0 = scmp.ge.s32.totalorder %s1245_s15, 1  ;;  %s1245_s15 = sphi %s1290_s15, %s15_s15  }
   0x2   : > { %p165_p1 = scmp.lt.s32.totalorder %s1245_s15, 3 }
   0x4   : > { %p166_p2 = pnand %p1113_p0, %p165_p1 }
   0x5   : > { %p195_p3 = scmp.lt.s32.totalorder (!%p166_p2), %s1109_s16, 1  ;;  %v1119_v0 = vld.sshfl [vmem:[%s1416_s2] sm:$0x11 pattern:$0x75316420] (!%p166_p2)  ;;  %v243_v1 = vlaneseq (!%p166_p2)  ;;  %vm211_vm0 = vcmask (!%p166_p2), 257024  }
   0x6   : > { %169 = sbr.rel (%p166_p2) target bundleno = 678 (0x2a6), region = 32  ;;  %v1247_v2 = vmov (!%p166_p2), 1966171168   ;;  %v1248_v5 = vmov (!%p166_p2), 0   ;;  %vm213_vm1 = vcmask (!%p166_p2), 519424   ;;  %v239_v6 = vcombine.high (!%p166_p2), %v1119_v0, %v1119_v0  ;;  %s1249_s23 = smov (!%p166_p2), 32  }
   0x7   : > { %v241_v3 = vunpack.c.l.s4 (!%p166_p2), %v1247_v2  ;;  %v244_v4 = vshrl.u32 (!%p166_p2), %v243_v1, 7  ;;  %212 = vst.msk [vmem:[#allocation2] sm:$0xf] (!%p166_p2), %vm211_vm0, %v1248_v5  ;;  %688 = vmatprep.mubr.bf16.mxu0 (!%p166_p2), %v1248_v5  ;;  %345 = vmatprep.mubr.bf16.mxu1 (!%p166_p2), %v1248_v5  ;;  %s1250_s24 = smov (!%p166_p2), 15   ;;  %s1251_s25 = smov (!%p166_p2), 33   ;;  %vm223_vm2 = vcmask (!%p166_p2), 1043712  }
   0x8   : > { %214 = vst.msk [vmem:[#allocation2 + $0x8] sm:$0xf] (!%p166_p2), %vm213_vm1, %v1248_v5  ;;  %s1252_s26 = smov (!%p166_p2), 47   ;;  %s1253_s27 = smov (!%p166_p2), 17   ;;  %vm224_vm3 = vcmask (!%p166_p2), 1047556   ;;  %vm219_vm4 = vcmask (!%p166_p2), 261120  }
   0x9   : > { %v242_v7 = vunpack.c.0.s8 (!%p166_p2), %v241_v3  ;;  %v259_v12 = vsub.s32 (!%p166_p2), 0, %v244_v4  ;;  %s1254_s28 = smov (!%p166_p2), 31   ;;  %s1255_s29 = smov (!%p166_p2), 49   ;;  %vm225_vm5 = vmor (!%p166_p2), %vm224_vm3, %vm223_vm2  ;;  %vm702_vm6 = vcmask (!%p166_p2), 269312   ;;  %vm276_vm7 = vcmask (!%p166_p2), 121856  }
   0xa   : > { %s1256_s30 = smov (!%p166_p2), 96   ;;  %s1257_s5 = smov (!%p166_p2), 112   ;;  %vm782_vm8 = vcmask (!%p166_p2), 384000   ;;  %vm469_vm9 = vcmask (!%p166_p2), 138240   ;;  %vm551_vm10 = vcmask (!%p166_p2), 252928   ;;  %vm925_vm11 = vcmask (!%p166_p2), 400384  }
   0xb   : > { %v245_v9 = vsub.s32 (!%p166_p2), %v242_v7, %v244_v4  ;;  %s1258_s6 = smov (!%p166_p2), 95   ;;  %s1259_s7 = smov (!%p166_p2), 113   ;;  %vm644_vm12 = vcmask (!%p166_p2), 785408   ;;  %vm306_vm13 = vcmask (!%p166_p2), 1043456   ;;  %vm299_vm14 = vcmask (!%p166_p2), 916480  }
   0xc   : > { %s1260_s8 = smov (!%p166_p2), 81   ;;  %s1261_s9 = smov (!%p166_p2), 111   ;;  %vm302_vm15 = vcmask (!%p166_p2), 64512   ;;  %vm368_vm1 = vcmask (!%p166_p2), 924672   ;;  %vm804_vm2 = vcmask (!%p166_p2), 662528   ;;  %vm867_vm3 = vcmask (!%p166_p2), 654336  }
   0xd   : > { %s1420_s16 = smov (!%p195_p3, %s1109_s16), 1  ;;  %v246_v10 = vrot.slane %v1119_v0, %v245_v9  ;;  %v253_v11 = vrot.slane %v239_v6, %v245_v9  ;;  %s1262_s10 = smov 80  }
   0xe   : > { %s1306_s19 = sshll.u32 %s1420_s16, 3  ;;  %s1263_s11 = smov 97  }
   0xf   : > { %s199_s22 = scalar_lea.vmem %s1414_s0, %s1306_s19  ;;  %v255_v13 = vpack.i.b16 %v246_v10, %v246_v10  ;;  %v262_v14 = vpack.i.b16 %v253_v11, %v253_v11  ;;  %v446_v15 = vshrl.u32 %v246_v10, 16  ;;  %v454_v16 = vshrl.u32 %v253_v11, 16  ;;  %s1264_s12 = smov 79  }
  0x10   : > { %v210_v8 = vld [vmem:[%s199_s22] sm:$0xff] }
  0x11   : > { %216 = vrot.lane.b32.xlu0 %v210_v8, %s1249_s23  ;;  %v260_v17 = vrot.slane %v255_v13, %v259_v12  ;;  %v267_v18 = vrot.slane %v262_v14, %v259_v12  ;;  %v447_v19 = vpack.i.b16 %v446_v15, %v446_v15  ;;  %v455_v20 = vpack.i.b16 %v454_v16, %v454_v16 }
  0x13   : > { %v1120_v21 = vcombine.low %v260_v17, %v267_v18  ;;  %v452_v22 = vrot.slane %v447_v19, %v259_v12  ;;  %v460_v23 = vrot.slane %v455_v20, %v259_v12 }
  0x15   : > { %273 = vrot.lane.b32.xlu1 %v1120_v21, %s1250_s24  ;;  %v1133_v24 = vcombine.low %v452_v22, %v460_v23 }
  0x17   : > { %699 = vrot.lane.b32.xlu0 %v1133_v24, %s1251_s25 }
  0x19   : > { %779 = vrot.lane.b32.xlu1 %v1120_v21, %s1252_s26 }
  0x1b   : > { %466 = vrot.lane.b32.xlu0 %v1133_v24, %s1253_s27 }
  0x1d   : > { %548 = vrot.lane.b32.xlu1 %v1120_v21, %s1254_s28 }
  0x1f   : > { %922 = vrot.lane.b32.xlu0 %v1133_v24, %s1255_s29 }
  0x83   : > { %v217_v25 = vpop.permute.xlu0 %216 }
  0x84   : > { %v218_v26 = vrot.slane %v217_v25, 4 }
  0x86   : > { %v220_v27 = vsel %vm219_vm4, %v218_v26, %v217_v25  ;;  %227 = vst.msk [vmem:[#allocation2 + $0x8] sm:$0xf] %vm211_vm0, %v218_v26  ;;  %vm724_vm0 = vcmask 777216   ;;  %vm491_vm4 = vcmask 908288  }
  0x87   : > { %226 = vst.msk [vmem:[#allocation2] sm:$0xff] %vm225_vm5, %v220_v27  ;;  %v274_v35 = vpop.permute.xlu1 %273  ;;  %v1146_v27 = vld [vmem:[%s1415_s1 + $0x10] sm:$0xf]  ;;  %vm573_vm5 = vcmask 793600  }
  0x88   : > { %v275_v38 = vrot.slane %v274_v35, 4 }
  0x89   : > { %v700_v30 = vpop.permute.xlu0 %699 }
  0x8a   : > { %v701_v34 = vrot.slane %v700_v30, 4  ;;  %v277_v42 = vsel %vm276_vm7, %v275_v38, %v274_v35  ;;  %vm1005_vm7 = vcmask 7168  }
  0x8b   : > { %v780_v43 = vpop.permute.xlu1 %779 }
  0x8c   : > { %v703_v39 = vsel %vm702_vm6, %v701_v34, %v700_v30  ;;  %v781_v46 = vrot.slane %v780_v43, 4  ;;  %vm947_vm6 = vcmask 646144  }
  0x8d   : > { %v1313_v28 = vld [vmem:[#allocation2 + $0x8] sm:$0xf]  ;;  %v467_v52 = vpop.permute.xlu0 %466 }
  0x8e   : > { %v1315_v29 = vld [vmem:[#allocation2] sm:$0xff]  ;;  %v1319_v31 = vcombine.low %v1313_v28, %v1313_v28  ;;  %v229_v33 = vld [vmem:[#allocation2 + $0x8] sm:$0xf]  ;;  %v707_v40 = vmul.bf16 %v701_v34, %v1313_v28  ;;  %v783_v50 = vsel %vm782_vm8, %v781_v46, %v780_v43  ;;  %v468_v55 = vrot.slane %v467_v52, 4 }
  0x8f   : > { %v1323_v32 = vcombine.high %v1315_v29, %v1315_v29  ;;  %v1147_v36 = vcombine.low %v1315_v29, %v1315_v29  ;;  %v1124_v37 = vcombine.low %v229_v33, %v229_v33  ;;  %v706_v41 = vmul.bf16 %v703_v39, %v1315_v29  ;;  %v549_v61 = vpop.permute.xlu1 %548  ;;  %v1121_v34 = vld [vmem:[%s1415_s1 + $0x4] sm:$0xf] }
  0x90   : > { %642 = vrot.lane.b32.xlu1 %v1319_v31, %s1256_s30  ;;  %v1155_v44 = vcombine.low %v707_v40, %v707_v40  ;;  %v280_v45 = vmul.bf16 %v277_v42, %v1315_v29  ;;  %v281_v49 = vmul.bf16 %v275_v38, %v229_v33  ;;  %v786_v53 = vmul.bf16 %v783_v50, %v1315_v29 }
  0x91   : > { %640 = vrot.lane.b32.xlu0 %v1323_v32, %s1256_s30  ;;  %v1154_v47 = vcombine.high %v706_v41, %v706_v41  ;;  %v1153_v48 = vcombine.low %v706_v41, %v706_v41  ;;  %v787_v57 = vmul.bf16 %v781_v46, %v1313_v28  ;;  %v474_v59 = vmul.bf16 %v468_v55, %v229_v33  ;;  %v923_v4 = vpop.permute.xlu0 %922  ;;  %v1152_v41 = vld [vmem:[%s1415_s1 + $0x14] sm:$0xf] }
  0x92   : > { %v1127_v51 = vcombine.low %v280_v45, %v280_v45  ;;  %v1128_v54 = vcombine.high %v280_v45, %v280_v45  ;;  %v1129_v56 = vcombine.low %v281_v49, %v281_v49  ;;  %v1159_v58 = vcombine.low %v786_v53, %v786_v53 }
  0x93   : > { %v1160_v60 = vcombine.high %v786_v53, %v786_v53  ;;  %v1161_v62 = vcombine.low %v787_v57, %v787_v57  ;;  %v1137_v63 = vcombine.low %v474_v59, %v474_v59  ;;  %v470_v0 = vsel %vm469_vm9, %v468_v55, %v467_v52  ;;  %v1158_v55 = vld [vmem:[%s1415_s1 + $0x18] sm:$0xf] }
  0x94   : > { %638 = vrot.lane.b32.xlu1 %v1147_v36, %s1256_s30  ;;  %v550_v1 = vrot.slane %v549_v61, 4  ;;  %v473_v2 = vmul.bf16 %v470_v0, %v1315_v29  ;;  %v924_v7 = vrot.slane %v923_v4, 4  ;;  %vm1012_vm8 = vcmask 15368  }
  0x95   : > { %297 = vrot.lane.b32.xlu0 %v1124_v37, %s1257_s5 }
  0x96   : > { %v552_v3 = vsel %vm551_vm10, %v550_v1, %v549_v61  ;;  %v1135_v8 = vcombine.low %v473_v2, %v473_v2  ;;  %v1136_v9 = vcombine.high %v473_v2, %v473_v2  ;;  %v556_v10 = vmul.bf16 %v550_v1, %v1313_v28 }
  0x97   : > { %v555_v6 = vmul.bf16 %v552_v3, %v1315_v29  ;;  %v926_v11 = vsel %vm925_vm11, %v924_v7, %v923_v4  ;;  %v930_v16 = vmul.bf16 %v924_v7, %v1313_v28  ;;  %v1134_v4 = vld [vmem:[%s1415_s1 + $0x8] sm:$0xf] }
  0x98   : > { %295 = vrot.lane.b32.xlu1 %v1323_v32, %s1257_s5  ;;  %v929_v13 = vmul.bf16 %v926_v11, %v1315_v29  ;;  %v1143_v15 = vcombine.low %v556_v10, %v556_v10 }
  0x99   : > { %293 = vrot.lane.b32.xlu0 %v1147_v36, %s1257_s5  ;;  %v1141_v12 = vcombine.low %v555_v6, %v555_v6  ;;  %v1142_v14 = vcombine.high %v555_v6, %v555_v6  ;;  %v1170_v19 = vcombine.low %v930_v16, %v930_v16  ;;  %v1164_v6 = vld [vmem:[%s1415_s1 + $0x1c] sm:$0xf] }
  0x9a   : > { %v1168_v17 = vcombine.low %v929_v13, %v929_v13  ;;  %v1169_v18 = vcombine.high %v929_v13, %v929_v13 }
  0x9c   : > { %722 = vrot.lane.b32.xlu1 %v1155_v44, %s1258_s6 }
  0x9d   : > { %720 = vrot.lane.b32.xlu0 %v1154_v47, %s1258_s6 }
  0xa0   : > { %718 = vrot.lane.b32.xlu1 %v1153_v48, %s1258_s6  ;;  %v282_v48 = vld [vmem:[%s1415_s1] sm:$0xf] }
  0xa1   : > { %362 = vrot.lane.b32.xlu0 %v1127_v51, %s1259_s7 }
  0xa4   : > { %364 = vrot.lane.b32.xlu1 %v1128_v54, %s1259_s7 }
  0xa5   : > { %366 = vrot.lane.b32.xlu0 %v1129_v56, %s1259_s7 }
  0xa8   : > { %798 = vrot.lane.b32.xlu1 %v1159_v58, %s1260_s8 }
  0xa9   : > { %800 = vrot.lane.b32.xlu0 %v1160_v60, %s1260_s8 }
  0xac   : > { %802 = vrot.lane.b32.xlu1 %v1161_v62, %s1260_s8 }
  0xad   : > { %489 = vrot.lane.b32.xlu0 %v1137_v63, %s1261_s9 }
  0xb0   : > { %861 = vrot.lane.b32.xlu1 %v1147_v36, %s1262_s10 }
  0xb1   : > { %863 = vrot.lane.b32.xlu0 %v1323_v32, %s1262_s10 }
  0xb4   : > { %865 = vrot.lane.b32.xlu1 %v1319_v31, %s1262_s10 }
  0xb5   : > { %485 = vrot.lane.b32.xlu0 %v1135_v8, %s1261_s9 }
  0xb8   : > { %487 = vrot.lane.b32.xlu1 %v1136_v9, %s1261_s9  ;;  %s204_s9 = scalar_lea.vmem %s1417_s3, %s1306_s19 }
  0xb9   : > { %567 = vrot.lane.b32.xlu0 %v1141_v12, %s1263_s11 }
  0xbc   : > { %569 = vrot.lane.b32.xlu1 %v1142_v14, %s1263_s11 }
  0xbd   : > { %571 = vrot.lane.b32.xlu0 %v1143_v15, %s1263_s11 }
  0xc0   : > { %941 = vrot.lane.b32.xlu1 %v1168_v17, %s1264_s12 }
  0xc1   : > { %943 = vrot.lane.b32.xlu0 %v1169_v18, %s1264_s12  ;;  %v1140_v18 = vld [vmem:[%s1415_s1 + $0xc] sm:$0xf] }
  0xc4   : > { %945 = vrot.lane.b32.xlu1 %v1170_v19, %s1264_s12  ;;  %v1167_v19 = vld [vmem:[%s1415_s1 + $0x20] sm:$0xf]  ;;  %s208_s12 = scalar_lea.vmem %s1418_s4, %s1306_s19 }
 0x102   : > { %v643_v20 = vpop.permute.xlu1 %642 }
 0x103   : > { %v641_v21 = vpop.permute.xlu0 %640 }
 0x104   : > { %v646_v22 = vsel %vm644_vm12, %v641_v21, %v643_v20 }
 0x105   : > { %1150 = vmatprep.subr.msk.bf16.mxu0 %vm306_vm13, %v646_v22 }
 0x106   : > { %v639_v23 = vpop.permute.xlu1 %638 }
 0x107   : > { %v298_v24 = vpop.permute.xlu0 %297  ;;  %v645_v25 = vsel %vm644_vm12, %v639_v23, %v641_v21 }
 0x108   : > { %v651_v26 = vsel %vm306_vm13, %v645_v25, 0 }
 0x109   : > { %657 = vmatpush1.bf16.msra.mxu0 %v651_v26 }
 0x10a   : > { %v296_v28 = vpop.permute.xlu1 %295 }
 0x10b   : > { %v294_v29 = vpop.permute.xlu0 %293  ;;  %v301_v30 = vsel %vm299_vm14, %v296_v28, %v298_v24 }
 0x10c   : > { %1125 = vmatprep.subr.msk.bf16.mxu1 %vm306_vm13, %v301_v30  ;;  %1151 = vmatmul.mubr.msk.bf16.vlgmr.msra.gmra.mrb[0].mxu0 %vm302_vm15, %v1146_v27  ;;  %v300_v31 = vsel %vm299_vm14, %v294_v29, %v296_v28 }
 0x10d   : > { %v308_v32 = vsel %vm306_vm13, %v300_v31, 0  ;;  %768 = vmatprep.mubr.bf16.mxu0 %v1248_v5 }
 0x10e   : > { %v723_v33 = vpop.permute.xlu1 %722  ;;  %314 = vmatpush1.bf16.msra.mxu1 %v308_v32 }
 0x10f   : > { %v721_v35 = vpop.permute.xlu0 %720 }
 0x110   : > { %v726_v36 = vsel %vm724_vm0, %v721_v35, %v723_v33 }
 0x111   : > { %1156 = vmatprep.subr.msk.bf16.mxu0 %vm306_vm13, %v726_v36  ;;  %1126 = vmatmul.mubr.msk.bf16.vlgmr.msra.gmra.mrb[0].mxu1 %vm302_vm15, %v1121_v34 }
 0x112   : > { %v719_v37 = vpop.permute.xlu1 %718  ;;  %412 = vmatprep.mubr.bf16.mxu1 %v1248_v5 }
 0x113   : > { %v725_v38 = vsel %vm724_vm0, %v719_v37, %v721_v35  ;;  %v363_v39 = vpop.permute.xlu0 %362 }
 0x114   : > { %v731_v40 = vsel %vm306_vm13, %v725_v38, 0 }
 0x115   : > { %737 = vmatpush1.bf16.msra.mxu0 %v731_v40 }
 0x116   : > { %v365_v42 = vpop.permute.xlu1 %364 }
 0x117   : > { %v369_v43 = vsel %vm368_vm1, %v363_v39, %v365_v42  ;;  %v367_v44 = vpop.permute.xlu0 %366 }
 0x118   : > { %v375_v45 = vsel %vm306_vm13, %v369_v43, 0  ;;  %v370_v46 = vsel %vm368_vm1, %v365_v42, %v367_v44  ;;  %1157 = vmatmul.mubr.msk.bf16.vlgmr.msra.gmra.mrb[0].mxu0 %vm302_vm15, %v1152_v41 }
 0x119   : > { %1130 = vmatprep.subr.msk.bf16.mxu1 %vm306_vm13, %v370_v46  ;;  %848 = vmatprep.mubr.bf16.mxu0 %v1248_v5 }
 0x11a   : > { %v799_v47 = vpop.permute.xlu1 %798  ;;  %381 = vmatpush1.bf16.msra.mxu1 %v375_v45 }
 0x11b   : > { %v801_v49 = vpop.permute.xlu0 %800 }
 0x11c   : > { %v805_v50 = vsel %vm804_vm2, %v799_v47, %v801_v49 }
 0x11d   : > { %1131 = vmatmul.mubr.msk.bf16.vlgmr.msra.gmra.mrb[0].mxu1 %vm302_vm15, %v282_v48  ;;  %v811_v54 = vsel %vm306_vm13, %v805_v50, 0 }
 0x11e   : > { %v803_v51 = vpop.permute.xlu1 %802  ;;  %535 = vmatprep.mubr.bf16.mxu1 %v1248_v5 }
 0x11f   : > { %v806_v52 = vsel %vm804_vm2, %v801_v49, %v803_v51  ;;  %v490_v53 = vpop.permute.xlu0 %489 }
 0x120   : > { %1162 = vmatprep.subr.msk.bf16.mxu0 %vm306_vm13, %v806_v52 }
 0x121   : > { %817 = vmatpush1.bf16.msra.mxu0 %v811_v54 }
 0x122   : > { %v862_v56 = vpop.permute.xlu1 %861 }
 0x123   : > { %v864_v57 = vpop.permute.xlu0 %863 }
 0x124   : > { %1163 = vmatmul.mubr.msk.bf16.vlgmr.msra.gmra.mrb[0].mxu0 %vm302_vm15, %v1158_v55  ;;  %v868_v58 = vsel %vm867_vm3, %v862_v56, %v864_v57 }
 0x125   : > { %911 = vmatprep.mubr.bf16.mxu0 %v1248_v5  ;;  %v874_v62 = vsel %vm306_vm13, %v868_v58, 0 }
 0x126   : > { %v866_v59 = vpop.permute.xlu1 %865 }
 0x127   : > { %v869_v60 = vsel %vm867_vm3, %v864_v57, %v866_v59  ;;  %v486_v61 = vpop.permute.xlu0 %485 }
 0x128   : > { %1165 = vmatprep.subr.msk.bf16.mxu0 %vm306_vm13, %v869_v60 }
 0x129   : > { %880 = vmatpush1.bf16.msra.mxu0 %v874_v62 }
 0x12a   : > { %v488_v63 = vpop.permute.xlu1 %487 }
 0x12b   : > { %v492_v0 = vsel %vm491_vm4, %v486_v61, %v488_v63  ;;  %v493_v1 = vsel %vm491_vm4, %v488_v63, %v490_v53  ;;  %v568_v2 = vpop.permute.xlu0 %567 }
 0x12c   : > { %v498_v3 = vsel %vm306_vm13, %v492_v0, 0  ;;  %1138 = vmatprep.subr.msk.bf16.mxu1 %vm306_vm13, %v493_v1 }
 0x12d   : > { %504 = vmatpush1.bf16.msra.mxu1 %v498_v3 }
 0x12e   : > { %v570_v7 = vpop.permute.xlu1 %569 }
 0x12f   : > { %v574_v8 = vsel %vm573_vm5, %v568_v2, %v570_v7  ;;  %v572_v9 = vpop.permute.xlu0 %571 }
 0x130   : > { %v580_v10 = vsel %vm306_vm13, %v574_v8, 0  ;;  %v575_v11 = vsel %vm573_vm5, %v570_v7, %v572_v9  ;;  %1139 = vmatmul.mubr.msk.bf16.vlgmr.msra.gmra.mrb[0].mxu1 %vm302_vm15, %v1134_v4  ;;  %1166 = vmatmul.mubr.msk.bf16.vlgmr.msra.gmra.mrb[0].mxu0 %vm302_vm15, %v1164_v6 }
 0x131   : > { %1144 = vmatprep.subr.msk.bf16.mxu1 %vm306_vm13, %v575_v11  ;;  %617 = vmatprep.mubr.bf16.mxu1 %v1248_v5 }
 0x132   : > { %v942_v12 = vpop.permute.xlu1 %941  ;;  %586 = vmatpush1.bf16.msra.mxu1 %v580_v10  ;;  %991 = vmatprep.mubr.bf16.mxu0 %v1248_v5 }
 0x133   : > { %v944_v13 = vpop.permute.xlu0 %943 }
 0x134   : > { %v948_v14 = vsel %vm947_vm6, %v942_v12, %v944_v13 }
 0x135   : > { %v954_v17 = vsel %vm306_vm13, %v948_v14, 0 }
 0x136   : > { %v946_v15 = vpop.permute.xlu1 %945 }
 0x137   : > { %v949_v16 = vsel %vm947_vm6, %v944_v13, %v946_v15 }
 0x138   : > { %1171 = vmatprep.subr.msk.bf16.mxu0 %vm306_vm13, %v949_v16 }
 0x139   : > { %960 = vmatpush1.bf16.msra.mxu0 %v954_v17 }
 0x13c   : > { %1145 = vmatmul.mubr.msk.bf16.vlgmr.msra.gmra.mrb[0].mxu1 %vm302_vm15, %v1140_v18  ;;  %1172 = vmatmul.mubr.msk.bf16.vlgmr.msra.gmra.mrb[0].mxu0 %vm302_vm15, %v1167_v19 }
 0x20f   : > { %v619_v5 = vpop.f32.mrb[0].mxu1  ;;  %v993_v20 = vpop.f32.mrb[0].mxu0 }
 0x210   : > { %v1179_v21 = vadd.f32 %v993_v20, %v619_v5  ;;  %v621_v22 = vpop.f32.mrb[1].mxu1  ;;  %v995_v23 = vpop.f32.mrb[1].mxu0 }
 0x211   : > { %v1180_v24 = vadd.f32 %v995_v23, %v621_v22  ;;  %v623_v25 = vpop.f32.mrb[2].mxu1  ;;  %v997_v26 = vpop.f32.mrb[2].mxu0 }
 0x212   : > { %v624_v27 = vpop.f32.mrb[3].mxu1  ;;  %v998_v28 = vpop.f32.mrb[3].mxu0  ;;  %v1007_v29 = vmul.f32 %v1179_v21, %v1179_v21 }
 0x213   : > { %v1178_v30 = vpack.c.bf16 %v1180_v24, %v1179_v21  ;;  %v1002_v31 = vadd.f32 %v1180_v24, %v1179_v21  ;;  %v1008_v32 = vmul.f32 %v1180_v24, %v1180_v24 }
 0x215   : > { %1022 = vst [vmem:[%s204_s9] sm:$0xff] %v1178_v30  ;;  %1003 = vadd.xlane.f32.xlu0 %v1002_v31  ;;  %v1009_v33 = vadd.f32 %v1008_v32, %v1007_v29 }
 0x217   : > { %1010 = vadd.xlane.f32.xlu1 %v1009_v33 }
 0x2a2   : > { %v1004_v34 = vpop.xlane.xlu0 %1003 }
 0x2a3   : > { %1006 = vst.msk [vmem:[%s208_s12] sm:$0xff] %vm1005_vm7, %v1004_v34 }
 0x2a4   : > { %v1011_v35 = vpop.xlane.xlu1 %1010 }
 0x2a5   : > { %1013 = vst.msk [vmem:[%s208_s12] sm:$0xff] %vm1012_vm8, %v1011_v35 }
 0x2a6 PF: > { %s15_s15 = sadd.s32 1, %s1245_s15  }
 0x2a7   : > { %p12_p4 = scmp.ge.s32.totalorder %s15_s15, 4  }
 0x2a9   :  { %14 = sbr.rel (!%p12_p4) target bundleno = 1 (0x1), region = 82 }

// kernel: unet_forward.18
= control target key start
LH: loop header
LB: loop body
LE: loop exit
PB: predicated region body
PF: predicated region fallthrough
CT: control target
= control target key end

     0   :  { %s1496_s18 = smov 0   ;;  %s1659_s0 = inlined_call_operand.vmem [shape: bf16[2,8,256], index: 0, kind: input, shape index: {}]   ;;  %s1660_s1 = inlined_call_operand.vmem [shape: bf16[9,16,8], index: 1, kind: input, shape index: {}]   ;;  %s1661_s2 = inlined_call_operand.vmem [shape: bf16[2,64], index: 2, kind: input, shape index: {}]   ;;  %s1662_s3 = inlined_call_operand.vmem [shape: bf16[256,64], index: 3, kind: input, shape index: {}]   ;;  %s1663_s4 = inlined_call_operand.vmem [shape: bf16[2,16,64], index: 4, kind: output, shape index: {0}]   ;;  %s1664_s5 = inlined_call_operand.vmem [shape: f32[2,16,2], index: 5, kind: output, shape index: {1}]  }
   0x1 LB: > { %s1177_s19 = sadd.s32 4294967295, %s1444_s18   ;;  %p1181_p0 = scmp.ge.s32.totalorder %s1444_s18, 1  ;;  %s1444_s18 = sphi %s1496_s18, %s16_s18  }
   0x2   : > { %p190_p1 = scmp.lt.s32.totalorder %s1444_s18, 3 }
   0x4   : > { %p191_p2 = pnand %p1181_p0, %p190_p1 }
   0x5   : > { %p223_p3 = scmp.lt.s32.totalorder (!%p191_p2), %s1177_s19, 1  ;;  %vm239_vm0 = vcmask (!%p191_p2), 191488   ;;  %v1446_v0 = vmov (!%p191_p2), 0   ;;  %s1447_s24 = smov (!%p191_p2), 127   ;;  %v1412_v3 = vld [vmem:[%s1662_s3 + $0x40] sm:$0xff] (!%p191_p2)   ;;  %v1414_v5 = vld [vmem:[%s1662_s3 + $0x48] sm:$0xff] (!%p191_p2)   ;;  %v467_v36 = vlaneseq (!%p191_p2) }
   0x6   : > { %194 = sbr.rel (%p191_p2) target bundleno = 1222 (0x4c6), region = 36  ;;  %240 = vst.msk [vmem:[#allocation3 + $0x8] sm:$0xf] (!%p191_p2), %vm239_vm0, %v1446_v0  ;;  %v1413_v4 = vld [vmem:[%s1662_s3] sm:$0xff] (!%p191_p2)   ;;  %1260 = vmatprep.subr.bf16.mxu0 (!%p191_p2), %v1412_v3  ;;  %v1415_v6 = vld [vmem:[%s1662_s3 + $0x8] sm:$0xff] (!%p191_p2)   ;;  %v1416_v7 = vld [vmem:[%s1662_s3 + $0x50] sm:$0xff] (!%p191_p2)  }
   0x7   : > { %1261 = vmatpush3.bf16.msra.mxu0 (!%p191_p2), %v1413_v4  ;;  %v1417_v8 = vld [vmem:[%s1662_s3 + $0x10] sm:$0xff] (!%p191_p2)   ;;  %v1418_v9 = vld [vmem:[%s1662_s3 + $0x58] sm:$0xff] (!%p191_p2)   ;;  %v1420_v11 = vld [vmem:[%s1662_s3 + $0x60] sm:$0xff] (!%p191_p2)   ;;  %vm253_vm1 = vcmask (!%p191_p2), 1043456   ;;  %vm255_vm2 = vcmask (!%p191_p2), 1039360   ;;  %s1448_s10 = smov (!%p191_p2), 112  }
   0x8   : > { %1262 = vmatprep.subr.bf16.mxu0 (!%p191_p2), %v1414_v5  ;;  %v1419_v10 = vld [vmem:[%s1662_s3 + $0x18] sm:$0xff] (!%p191_p2)   ;;  %v1421_v12 = vld [vmem:[%s1662_s3 + $0x20] sm:$0xff] (!%p191_p2)   ;;  %v1422_v13 = vld [vmem:[%s1662_s3 + $0x68] sm:$0xff] (!%p191_p2)   ;;  %vm270_vm3 = vcmask (!%p191_p2), 916480   ;;  %v468_v38 = vshrl.u32 (!%p191_p2), %v467_v36, 7  ;;  %s1449_s13 = smov (!%p191_p2), 9  }
   0x9   : > { %v1423_v14 = vld [vmem:[%s1662_s3 + $0x28] sm:$0xff] (!%p191_p2)   ;;  %v1424_v16 = vld [vmem:[%s1662_s3 + $0x70] sm:$0xff] (!%p191_p2)   ;;  %v1426_v19 = vld [vmem:[%s1662_s3 + $0x78] sm:$0xff] (!%p191_p2)   ;;  %s1450_s14 = smov (!%p191_p2), 17   ;;  %vm450_vm4 = vcmask (!%p191_p2), 125952   ;;  %vm452_vm5 = vcmask (!%p191_p2), 781952  }
   0xa   : > { %v1425_v17 = vld [vmem:[%s1662_s3 + $0x30] sm:$0xff] (!%p191_p2)   ;;  %v1427_v20 = vld [vmem:[%s1662_s3 + $0x38] sm:$0xff] (!%p191_p2)   ;;  %v463_v37 = vld [vmem:[%s1661_s2] sm:$0x1] (!%p191_p2)  ;;  %v469_v40 = vsub.s32 (!%p191_p2), 0, %v468_v38  ;;  %s1451_s15 = smov (!%p191_p2), 16  }
   0xb   : > { %1263 = vmatpush3.bf16.msra.mxu0 (!%p191_p2), %v1415_v6  ;;  %v599_v39 = vshrl.u32 (!%p191_p2), %v463_v37, 16  ;;  %v465_v42 = vpack.i.b16 (!%p191_p2), %v463_v37, %v463_v37  ;;  %451 = vst.msk [vmem:[#allocation2] sm:$0xf] (!%p191_p2), %vm450_vm4, %v1446_v0  ;;  %s1452_s16 = smov (!%p191_p2), 15   ;;  %s1453_s17 = smov (!%p191_p2), 23   ;;  %vm460_vm6 = vcmask (!%p191_p2), 650368  }
   0xc   : > { %1264 = vmatprep.subr.bf16.mxu0 (!%p191_p2), %v1416_v7  ;;  %453 = vst.msk [vmem:[#allocation2] sm:$0xf] (!%p191_p2), %vm452_vm5, %v1446_v0  ;;  %s1454_s21 = smov (!%p191_p2), 7   ;;  %v1455_v54 = vmov (!%p191_p2), 0.0   ;;  %vm1456_vm7 = vmmov (!%p191_p2), 0   ;;  %s1457_s22 = smov (!%p191_p2), 113  }
   0xd   : > { %s1666_s19 = smov (!%p223_p3, %s1177_s19), 1  ;;  %v244_v2 = vld [vmem:[#allocation3 + $0x8] sm:$0xf]  ;;  %v600_v41 = vpack.i.b16 %v599_v39, %v599_v39  ;;  %v470_v44 = vrot.slane %v465_v42, %v469_v40  ;;  %1312 = vmatprep.subr.bf16.mxu1 %v1455_v54  ;;  %1314 = vmatprep.mubr.msk.bf16.mxu1 %vm1456_vm7, %v1455_v54  ;;  %s1460_s25 = smov 111   ;;  %vm493_vm8 = vcmask 64512   ;;  %v1437_v37 = vld [vmem:[%s1660_s1 + $0x40] sm:$0xff]  }
   0xe   : > { %s1254_s20 = sshll.u32 %s1666_s19, 3  ;;  %s1461_s26 = smov 120   ;;  %vm1057_vm9 = vcmask 523264   ;;  %vm1086_vm10 = vcmask 519168   ;;  %vm1064_vm11 = vcmask 7168   ;;  %vm1075_vm12 = vcmask 15368  }
   0xf   : > { %s227_s23 = scalar_lea.vmem %s1659_s0, %s1254_s20  ;;  %1265 = vmatpush3.bf16.msra.mxu0 %v1417_v8  ;;  %v605_v43 = vrot.slane %v600_v41, %v469_v40  ;;  %v1207_v52 = vcombine.low %v470_v44, %v470_v44  ;;  %s1462_s27 = smov 105  }
  0x10   : > { %v241_v1 = vld [vmem:[%s227_s23] sm:$0xff]  ;;  %1266 = vmatprep.subr.bf16.mxu0 %v1418_v9  ;;  %s1458_s23 = smov 119   ;;  %s1463_s28 = smov 121  }
  0x11   : > { %247 = vrot.lane.b32.xlu0 %v241_v1, %s1447_s24  ;;  %v1216_v45 = vcombine.low %v605_v43, %v605_v43  ;;  %s1464_s29 = smov 104   ;;  %s1465_s7 = smov 103  }
  0x13   : > { %1267 = vmatpush3.bf16.msra.mxu0 %v1419_v10 }
  0x14   : > { %1268 = vmatprep.subr.bf16.mxu0 %v1420_v11  ;;  %v1429_v11 = vld [vmem:[%s1660_s1 + $0x10] sm:$0xff]  }
  0x15   : > { %249 = vrot.lane.b32.xlu0 %v244_v2, %s1447_s24  ;;  %s1459_s24 = smov 25  }
  0x17   : > { %1269 = vmatpush3.bf16.msra.mxu0 %v1421_v12 }
  0x18   : > { %1270 = vmatprep.subr.bf16.mxu0 %v1422_v13 }
  0x1b   : > { %1271 = vmatpush3.bf16.msra.mxu0 %v1423_v14 }
  0x1c   : > { %1272 = vmatprep.subr.bf16.mxu0 %v1424_v16 }
  0x1f   : > { %1273 = vmatpush3.bf16.msra.mxu0 %v1425_v17 }
  0x20   : > { %1274 = vmatprep.subr.bf16.mxu0 %v1426_v19  ;;  %v1430_v19 = vld [vmem:[%s1660_s1 + $0x8] sm:$0xff]  }
  0x23   : > { %1275 = vmatpush3.bf16.msra.mxu0 %v1427_v20 }
  0x24   : > { %1300 = vmatprep.subr.bf16.mxu0 %v1455_v54 }
  0x83   : > { %v248_v15 = vpop.permute.xlu0 %247 }
  0x84   : > { %v251_v21 = vrot.slane %v248_v15, 4 }
  0x87   : > { %v250_v18 = vpop.permute.xlu0 %249 }
  0x88   : > { %v252_v22 = vrot.slane %v250_v18, 4  ;;  %v260_v26 = vmax.bf16 %v250_v18, %v244_v2 }
  0x8a   : > { %v254_v23 = vsel %vm253_vm1, %v251_v21, %v252_v22  ;;  %v1431_v22 = vld [vmem:[%s1660_s1 + $0x18] sm:$0xff]  }
  0x8b   : > { %v256_v24 = vsel %vm255_vm2, %v248_v15, %v254_v23 }
  0x8c   : > { %v258_v25 = vmax.bf16 %v256_v24, %v241_v1 }
  0x8e   : > { %263 = vrot.lane.b32.xlu1 %v258_v25, %s1448_s10 }
  0x92   : > { %265 = vrot.lane.b32.xlu1 %v260_v26, %s1448_s10  ;;  %v1432_v26 = vld [vmem:[%s1660_s1 + $0x20] sm:$0xff]  }
  0x96   : > { %609 = vrot.lane.b32.xlu1 %v1216_v45, %s1449_s13 }
  0x9a   : > { %800 = vrot.lane.b32.xlu1 %v1216_v45, %s1450_s14 }
 0x100   : > { %v264_v27 = vpop.permute.xlu1 %263 }
 0x101   : > { %v267_v29 = vrot.slane %v264_v27, 4 }
 0x104   : > { %v266_v28 = vpop.permute.xlu1 %265 }
 0x105   : > { %v268_v30 = vrot.slane %v266_v28, 4  ;;  %v1433_v28 = vld [vmem:[%s1660_s1 + $0x28] sm:$0xff]  }
 0x107   : > { %v269_v31 = vsel %vm253_vm1, %v267_v29, %v268_v30 }
 0x108   : > { %v271_v32 = vsel %vm270_vm3, %v264_v27, %v269_v31  ;;  %v610_v55 = vpop.permute.xlu1 %609  ;;  %v1434_v31 = vld [vmem:[%s1660_s1 + $0x30] sm:$0xff]  }
 0x109   : > { %v273_v33 = vmax.bf16 %v271_v32, %v258_v25  ;;  %v1436_v25 = vld [vmem:[%s1660_s1] sm:$0xff]  }
 0x10b   : > { %v1189_v34 = vcombine.high %v273_v33, %v273_v33  ;;  %v1188_v35 = vcombine.low %v273_v33, %v273_v33 }
 0x10c   : > { %v801_v58 = vpop.permute.xlu1 %800 }
 0x10d   : > { %441 = vmatprep.mubr.bf16.mxu0 %v1189_v34  ;;  %v1435_v34 = vld [vmem:[%s1660_s1 + $0x38] sm:$0xff]  }
 0x10e   : > { %442 = vmatmul.mubr.bf16.vlgmr.msra.gmra.mrb[0].mxu0 %v1188_v35 }
 0x10f   : > { %1302 = vmatprep.mubr.msk.bf16.mxu0 %vm1456_vm7, %v1455_v54 }
 0x1e1   : > { %v1276_v46 = vpop.f32.mrb[0].mxu0 }
 0x1e2   : > { %v1277_v47 = vpop.f32.mrb[1].mxu0 }
 0x1e3   : > { %v1278_v48 = vadd.f32 %v1277_v47, %v1276_v46  ;;  %v1279_v49 = vpop.f32.mrb[2].mxu0 }
 0x1e4   : > { %v1280_v50 = vpop.f32.mrb[3].mxu0 }
 0x1e5   : > { %v1257_v51 = vpack.c.bf16 %v1278_v48, %v1278_v48 }
 0x1e7   : > { %457 = vrot.lane.b32.xlu0 %v1257_v51, %s1451_s15 }
 0x1eb   : > { %675 = vrot.lane.b32.xlu0 %v1207_v52, %s1452_s16 }
 0x1ef   : > { %866 = vrot.lane.b32.xlu0 %v1207_v52, %s1453_s17 }
 0x1f3   : > { %474 = vrot.lane.b32.xlu0 %v1207_v52, %s1454_s21 }
 0x259   : > { %v458_v53 = vpop.permute.xlu0 %457 }
 0x25a   : > { %461 = vst.msk [vmem:[#allocation2] sm:$0xf] %vm460_vm6, %v458_v53 }
 0x25d   : > { %v676_v56 = vpop.permute.xlu0 %675 }
 0x261   : > { %v462_v57 = vld [vmem:[#allocation2] sm:$0xf]  ;;  %v867_v61 = vpop.permute.xlu0 %866 }
 0x262   : > { %v678_v59 = vmul.bf16 %v676_v56, %v462_v57  ;;  %v612_v60 = vmul.bf16 %v610_v55, %v462_v57  ;;  %v803_v0 = vmul.bf16 %v801_v58, %v462_v57  ;;  %v869_v3 = vmul.bf16 %v867_v61, %v462_v57 }
 0x263   : > { %v1211_v5 = vcombine.low %v462_v57, %v462_v57 }
 0x264   : > { %v1225_v62 = vcombine.low %v678_v59, %v678_v59  ;;  %v1220_v63 = vcombine.low %v612_v60, %v612_v60  ;;  %v1234_v1 = vcombine.low %v803_v0, %v803_v0  ;;  %v1239_v6 = vcombine.low %v869_v3, %v869_v3 }
 0x265   : > { %v475_v2 = vpop.permute.xlu0 %474 }
 0x266   : > { %690 = vrot.lane.b32.xlu0 %v1225_v62, %s1457_s22  ;;  %624 = vrot.lane.b32.xlu1 %v1220_v63, %s1458_s23  ;;  %v477_v4 = vmul.bf16 %v475_v2, %v462_v57 }
 0x268   : > { %v1214_v7 = vcombine.low %v477_v4, %v477_v4 }
 0x26a   : > { %991 = vrot.lane.b32.xlu1 %v1216_v45, %s1459_s24  ;;  %815 = vrot.lane.b32.xlu0 %v1234_v1, %s1460_s25 }
 0x26e   : > { %749 = vrot.lane.b32.xlu1 %v1211_v5, %s1448_s10  ;;  %491 = vrot.lane.b32.xlu0 %v1211_v5, %s1461_s26 }
 0x272   : > { %881 = vrot.lane.b32.xlu1 %v1239_v6, %s1462_s27  ;;  %550 = vrot.lane.b32.xlu0 %v1214_v7, %s1463_s28 }
 0x276   : > { %940 = vrot.lane.b32.xlu1 %v1211_v5, %s1464_s29  ;;  %s232_s29 = scalar_lea.vmem %s1663_s4, %s1254_s20  ;;  %s1256_s20 = sshll.u32 %s1666_s19, 4 }
 0x2d8   : > { %v691_v8 = vpop.permute.xlu0 %690  ;;  %v625_v9 = vpop.permute.xlu1 %624 }
 0x2d9   : > { %v630_v10 = vsel %vm253_vm1, %v625_v9, 0  ;;  %v696_v14 = vsel %vm253_vm1, %v691_v8, 0 }
 0x2da   : > { %1313 = vmatpush3.bf16.msra.mxu1 %v630_v10 }
 0x2db   : > { %1318 = vmatprep.subr.bf16.mxu1 %v1455_v54 }
 0x2dc   : > { %v816_v12 = vpop.permute.xlu0 %815  ;;  %v992_v13 = vpop.permute.xlu1 %991 }
 0x2dd   : > { %v994_v15 = vmul.bf16 %v992_v13, %v462_v57  ;;  %1315 = vmatmul.mubr.msk.bf16.vlgmr.msra.gmra.mrb[0].mxu1 %vm493_vm8, %v1429_v11  ;;  %v821_v27 = vsel %vm253_vm1, %v816_v12, 0 }
 0x2de   : > { %1319 = vmatpush3.bf16.msra.mxu1 %v696_v14  ;;  %1320 = vmatprep.mubr.msk.bf16.mxu1 %vm1456_vm7, %v1455_v54 }
 0x2df   : > { %v1248_v16 = vcombine.low %v994_v15, %v994_v15  ;;  %1324 = vmatprep.subr.bf16.mxu1 %v1455_v54 }
 0x2e0   : > { %v492_v17 = vpop.permute.xlu0 %491  ;;  %v750_v23 = vpop.permute.xlu1 %749 }
 0x2e1   : > { %v499_v18 = vsel %vm253_vm1, %v492_v17, 0  ;;  %1006 = vrot.lane.b32.xlu1 %v1248_v16, %s1465_s7  ;;  %v755_v24 = vsel %vm253_vm1, %v750_v23, 0  ;;  %s237_s7 = scalar_lea.vmem %s1664_s5, %s1256_s20 }
 0x2e2   : > { %1301 = vmatpush3.bf16.msra.mxu0 %v499_v18 }
 0x2e3   : > { %1306 = vmatprep.subr.bf16.mxu0 %v1455_v54 }
 0x2e4   : > { %v551_v20 = vpop.permute.xlu0 %550  ;;  %v882_v29 = vpop.permute.xlu1 %881 }
 0x2e5   : > { %v556_v21 = vsel %vm253_vm1, %v551_v20, 0  ;;  %1303 = vmatmul.mubr.msk.bf16.vlgmr.msra.gmra.mrb[4].mxu0 %vm493_vm8, %v1430_v19  ;;  %v887_v30 = vsel %vm253_vm1, %v882_v29, 0 }
 0x2e6   : > { %1307 = vmatpush3.bf16.msra.mxu0 %v556_v21  ;;  %1308 = vmatprep.mubr.msk.bf16.mxu0 %vm1456_vm7, %v1455_v54 }
 0x2e8   : > { %v941_v32 = vpop.permute.xlu1 %940 }
 0x2e9   : > { %1321 = vmatmul.mubr.msk.bf16.vlgmr.msra.gmra.mrb[0].mxu1 %vm493_vm8, %v1431_v22  ;;  %v946_v33 = vsel %vm253_vm1, %v941_v32, 0 }
 0x2ea   : > { %1325 = vmatpush3.bf16.msra.mxu1 %v755_v24  ;;  %1326 = vmatprep.mubr.msk.bf16.mxu1 %vm1456_vm7, %v1455_v54 }
 0x2eb   : > { %1330 = vmatprep.subr.bf16.mxu1 %v1455_v54 }
 0x2f1   : > { %1309 = vmatmul.mubr.msk.bf16.vlgmr.msra.gmra.mrb[4].mxu0 %vm493_vm8, %v1436_v25 }
 0x2f5   : > { %1327 = vmatmul.mubr.msk.bf16.vlgmr.msra.gmra.mrb[0].mxu1 %vm493_vm8, %v1432_v26 }
 0x2f6   : > { %1331 = vmatpush3.bf16.msra.mxu1 %v821_v27  ;;  %1332 = vmatprep.mubr.msk.bf16.mxu1 %vm1456_vm7, %v1455_v54 }
 0x2f7   : > { %1336 = vmatprep.subr.bf16.mxu1 %v1455_v54 }
 0x301   : > { %1333 = vmatmul.mubr.msk.bf16.vlgmr.msra.gmra.mrb[0].mxu1 %vm493_vm8, %v1433_v28 }
 0x302   : > { %1337 = vmatpush3.bf16.msra.mxu1 %v887_v30  ;;  %1338 = vmatprep.mubr.msk.bf16.mxu1 %vm1456_vm7, %v1455_v54 }
 0x303   : > { %1342 = vmatprep.subr.bf16.mxu1 %v1455_v54 }
 0x30d   : > { %1339 = vmatmul.mubr.msk.bf16.vlgmr.msra.gmra.mrb[0].mxu1 %vm493_vm8, %v1434_v31 }
 0x30e   : > { %1343 = vmatpush3.bf16.msra.mxu1 %v946_v33  ;;  %1344 = vmatprep.mubr.msk.bf16.mxu1 %vm1456_vm7, %v1455_v54 }
 0x30f   : > { %1348 = vmatprep.subr.bf16.mxu1 %v1455_v54 }
 0x319   : > { %1345 = vmatmul.mubr.msk.bf16.vlgmr.msra.gmra.mrb[0].mxu1 %vm493_vm8, %v1435_v34 }
 0x31a   : > { %1350 = vmatprep.mubr.msk.bf16.mxu1 %vm1456_vm7, %v1455_v54 }
 0x353   : > { %v1007_v35 = vpop.permute.xlu1 %1006 }
 0x354   : > { %v1012_v36 = vsel %vm253_vm1, %v1007_v35, 0 }
 0x355   : > { %1349 = vmatpush3.bf16.msra.mxu1 %v1012_v36 }
 0x358   : > { %1351 = vmatmul.mubr.msk.bf16.vlgmr.msra.gmra.mrb[0].mxu1 %vm493_vm8, %v1437_v37 }
 0x3c4   : > { %v592_v38 = vpop.f32.mrb[4].mxu0 }
 0x3c5   : > { %v1310_v39 = vpop.f32.mrb[5].mxu0 }
 0x3c6   : > { %v595_v40 = vpop.f32.mrb[6].mxu0 }
 0x3c7   : > { %v1311_v41 = vpop.f32.mrb[7].mxu0 }
 0x42b   : > { %v1048_v42 = vpop.f32.mrb[0].mxu1 }
 0x42c   : > { %v1354_v43 = vadd.f32 %v1048_v42, %v592_v38  ;;  %v1352_v44 = vpop.f32.mrb[1].mxu1 }
 0x42d   : > { %v1051_v45 = vpop.f32.mrb[2].mxu1 }
 0x42e   : > { %v1258_v46 = vpack.c.bf16 %v1354_v43, %v1354_v43  ;;  %v1355_v47 = vadd.f32 %v1051_v45, %v595_v40  ;;  %v1353_v48 = vpop.f32.mrb[3].mxu1  ;;  %v1058_v49 = vsel %vm1057_vm9, %v1354_v43, 0.0  ;;  %v1067_v50 = vmul.f32 %v1354_v43, %v1354_v43 }
 0x42f   : > { %1059 = vadd.xlane.f32.xlu0 %v1058_v49 }
 0x430   : > { %1087 = vst.msk [vmem:[%s232_s29] sm:$0xf] %vm1086_vm10, %v1258_v46  ;;  %v1259_v51 = vpack.c.bf16 %v1355_v47, %v1355_v47  ;;  %v1061_v52 = vsel %vm1057_vm9, %v1355_v47, 0.0  ;;  %v1069_v53 = vsel %vm1057_vm9, %v1067_v50, 0.0  ;;  %v1068_v54 = vmul.f32 %v1355_v47, %v1355_v47 }
 0x431   : > { %1062 = vadd.xlane.f32.xlu1 %v1061_v52 }
 0x432   : > { %1088 = vst.msk [vmem:[%s232_s29 + $0x4] sm:$0xf] %vm1086_vm10, %v1259_v51  ;;  %v1072_v55 = vsel %vm1057_vm9, %v1068_v54, 0.0 }
 0x433   : > { %1070 = vadd.xlane.f32.xlu0 %v1069_v53 }
 0x437   : > { %1073 = vadd.xlane.f32.xlu0 %v1072_v55 }
 0x4bc   : > { %v1060_v56 = vpop.xlane.xlu0 %1059 }
 0x4bd   : > { %1065 = vst.msk [vmem:[%s237_s7] sm:$0xff] %vm1064_vm11, %v1060_v56 }
 0x4be   : > { %v1063_v57 = vpop.xlane.xlu1 %1062 }
 0x4bf   : > { %1066 = vst.msk [vmem:[%s237_s7 + $0x8] sm:$0xff] %vm1064_vm11, %v1063_v57 }
 0x4c0   : > { %v1071_v58 = vpop.xlane.xlu0 %1070 }
 0x4c1   : > { %1076 = vst.msk [vmem:[%s237_s7] sm:$0xff] %vm1075_vm12, %v1071_v58 }
 0x4c4   : > { %v1074_v59 = vpop.xlane.xlu0 %1073 }
 0x4c5   : > { %1077 = vst.msk [vmem:[%s237_s7 + $0x8] sm:$0xff] %vm1075_vm12, %v1074_v59 }
 0x4c6 PF: > { %s16_s18 = sadd.s32 1, %s1444_s18  }
 0x4c7   : > { %p13_p4 = scmp.ge.s32.totalorder %s16_s18, 4  }
 0x4c9   :  { %15 = sbr.rel (!%p13_p4) target bundleno = 1 (0x1), region = 86 }

// kernel: unet_forward.22
= control target key start
LH: loop header
LB: loop body
LE: loop exit
PB: predicated region body
PF: predicated region fallthrough
CT: control target
= control target key end

     0   :  { %s389_s9 = smov 0   ;;  %s430_s0 = inlined_call_operand.vmem [shape: bf16[64,256], index: 0, kind: input, shape index: {}]   ;;  %s431_s1 = inlined_call_operand.vmem [shape: bf16[2,16,64], index: 1, kind: input, shape index: {}]   ;;  %s432_s2 = inlined_call_operand.vmem [shape: bf16[2,16,256], index: 2, kind: output, shape index: {}]  }
   0x1 LB: > { %s316_s10 = sadd.s32 4294967295, %s371_s9   ;;  %p320_p0 = scmp.ge.s32.totalorder %s371_s9, 1  ;;  %s371_s9 = sphi %s389_s9, %s12_s9  }
   0x2   : > { %p112_p1 = scmp.lt.s32.totalorder %s371_s9, 3 }
   0x4   : > { %p113_p2 = pnand %p320_p0, %p112_p1 }
   0x5   : > { %v352_v0 = vld [vmem:[%s430_s0 + $0x4] ss:$8 sps:$4 sm:$0xff] (!%p113_p2)   ;;  %p134_p3 = scmp.lt.s32.totalorder (!%p113_p2), %s316_s10, 1  ;;  %v354_v1 = vld [vmem:[%s430_s0] ss:$8 sps:$4 sm:$0xff] (!%p113_p2)   ;;  %v373_v2 = vmov (!%p113_p2), 0  }
   0x6   : > { %116 = sbr.rel (%p113_p2) target bundleno = 240 (0xf0), region = 28  ;;  %236 = vmatprep.mubr.bf16.mxu0 (!%p113_p2), %v373_v2  ;;  %204 = vmatprep.subr.bf16.mxu0 (!%p113_p2), %v352_v0  ;;  %v355_v3 = vld [vmem:[%s430_s0 + $0x14] ss:$8 sps:$4 sm:$0xff] (!%p113_p2)   ;;  %v357_v4 = vld [vmem:[%s430_s0 + $0x10] ss:$8 sps:$4 sm:$0xff] (!%p113_p2)   ;;  %vm200_vm0 = vcmask (!%p113_p2), 523264  }
   0x7   : > { %205 = vmatpush1.bf16.msra.mxu0 (!%p113_p2), %v354_v1  ;;  %v358_v5 = vld [vmem:[%s430_s0 + $0x24] ss:$8 sps:$4 sm:$0xff] (!%p113_p2)   ;;  %v360_v6 = vld [vmem:[%s430_s0 + $0x20] ss:$8 sps:$4 sm:$0xff] (!%p113_p2)   ;;  %v361_v7 = vld [vmem:[%s430_s0 + $0x34] ss:$8 sps:$4 sm:$0xff] (!%p113_p2)  }
   0x8   : > { %206 = vmatprep.subr.bf16.mxu0 (!%p113_p2), %v355_v3  ;;  %v363_v8 = vld [vmem:[%s430_s0 + $0x30] ss:$8 sps:$4 sm:$0xff] (!%p113_p2)  }
   0xb   : > { %207 = vmatpush1.bf16.msra.mxu0 (!%p113_p2), %v357_v4 }
   0xc   : > { %208 = vmatprep.subr.bf16.mxu0 (!%p113_p2), %v358_v5 }
   0xd   : > { %s434_s10 = smov (!%p134_p3, %s316_s10), 1 }
   0xe   : > { %s339_s21 = sshll.u32 %s434_s10, 3  ;;  %s340_s3 = sshll.u32 %s434_s10, 4 }
   0xf   : > { %s138_s24 = scalar_lea.vmem %s431_s1, %s339_s21  ;;  %209 = vmatpush1.bf16.msra.mxu0 %v360_v6  ;;  %s143_s6 = scalar_lea.vmem %s432_s2, %s340_s3 }
  0x10   : > { %210 = vmatprep.subr.bf16.mxu0 %v361_v7  ;;  %v364_v9 = vld [vmem:[%s138_s24] sm:$0xff]  }
  0x13   : > { %211 = vmatpush1.bf16.msra.mxu0 %v363_v8 }
  0x16   : > { %334 = vmatmul.mubr.msk.bf16.vlgmr.msra.gmra.mrb[0].mxu0 %vm200_vm0, %v364_v9 }
  0xe9   : > { %v238_v10 = vpop.f32.mrb[0].mxu0 }
  0xea   : > { %v240_v11 = vpop.f32.mrb[1].mxu0 }
  0xeb   : > { %v341_v12 = vpack.c.bf16 %v240_v11, %v238_v10  ;;  %v242_v13 = vpop.f32.mrb[2].mxu0 }
  0xec   : > { %v244_v14 = vpop.f32.mrb[3].mxu0 }
  0xed   : > { %259 = vst [vmem:[%s143_s6] sm:$0xff] %v341_v12  ;;  %v342_v15 = vpack.c.bf16 %v244_v14, %v242_v13 }
  0xef   : > { %260 = vst [vmem:[%s143_s6 + $0x8] sm:$0xff] %v342_v15 }
  0xf0 PF: > { %s12_s9 = sadd.s32 1, %s371_s9  }
  0xf1   : > { %p9_p4 = scmp.ge.s32.totalorder %s12_s9, 4  }
  0xf3   :  { %11 = sbr.rel (!%p9_p4) target bundleno = 1 (0x1), region = 58 }

// kernel: unet_forward.19
= control target key start
LH: loop header
LB: loop body
LE: loop exit
PB: predicated region body
PF: predicated region fallthrough
CT: control target
= control target key end

     0   :  { %s332_s12 = smov 0   ;;  %s361_s0 = inlined_call_operand.vmem [shape: f32[16,1], index: 0, kind: input, shape index: {}]   ;;  %s362_s1 = inlined_call_operand.vmem [shape: f32[16,1], index: 1, kind: input, shape index: {}]   ;;  %s363_s2 = inlined_call_operand.vmem [shape: bf16[2,16,64], index: 2, kind: input, shape index: {}]   ;;  %s364_s3 = inlined_call_operand.vmem [shape: bf16[2,16,64], index: 3, kind: output, shape index: {}]  }
   0x1 LB: > { %s271_s13 = sadd.s32 4294967295, %s309_s12   ;;  %p275_p0 = scmp.ge.s32.totalorder %s309_s12, 1  ;;  %s309_s12 = sphi %s332_s12, %s13_s12  }
   0x2   : > { %p137_p1 = scmp.lt.s32.totalorder %s309_s12, 3 }
   0x4   : > { %p138_p2 = pnand %p275_p0, %p137_p1 }
   0x5   : > { %v189_v0 = vld [vmem:[%s362_s1] sm:$0xff] (!%p138_p2)  ;;  %v311_v2 = vmov (!%p138_p2), 0   ;;  %v190_v3 = vld [vmem:[%s362_s1 + $0x8] sm:$0xff] (!%p138_p2)  ;;  %p161_p3 = scmp.lt.s32.totalorder (!%p138_p2), %s271_s13, 1  ;;  %vm213_vm0 = vcmask (!%p138_p2), 519168  }
   0x6   : > { %141 = sbr.rel (%p138_p2) target bundleno = 148 (0x94), region = 32  ;;  %v175_v1 = vld [vmem:[%s361_s0] sm:$0xff] (!%p138_p2)  ;;  %302 = vset.pattern.permute.xlu1 (!%p138_p2), %v311_v2  ;;  %301 = vset.pattern.permute.xlu0 (!%p138_p2), %v311_v2  ;;  %v176_v4 = vld [vmem:[%s361_s0 + $0x8] sm:$0xff] (!%p138_p2) }
   0x7   : > { %193 = vperm.xlu1 (!%p138_p2), %302, %v189_v0   ;;  %179 = vperm.xlu0 (!%p138_p2), %301, %v175_v1  }
   0xb   : > { %198 = vperm.xlu1 (!%p138_p2), %302, %v190_v3   ;;  %184 = vperm.xlu0 (!%p138_p2), %301, %v176_v4  }
   0xd   : > { %s366_s13 = smov (!%p161_p3, %s271_s13), 1 }
   0xe   : > { %s284_s22 = sshll.u32 %s366_s13, 3 }
   0xf   : > { %s165_s25 = scalar_lea.vmem %s363_s2, %s284_s22  ;;  %s170_s28 = scalar_lea.vmem %s364_s3, %s284_s22 }
  0x10   : > { %v289_v5 = vld [vmem:[%s165_s25] sm:$0xff]  }
  0x11   : > { %v290_v6 = vunpack.c.l.bf16 %v289_v5  ;;  %v291_v10 = vunpack.c.h.bf16 %v289_v5 }
  0x86   : > { %v194_v7 = vpop.permute.xlu1 %193  ;;  %v180_v8 = vpop.permute.xlu0 %179 }
  0x87   : > { %v187_v9 = vmul.f32 %v290_v6, %v180_v8 }
  0x89   : > { %v201_v11 = vadd.f32 %v194_v7, %v187_v9 }
  0x8a   : > { %v185_v12 = vpop.permute.xlu0 %184  ;;  %v199_v15 = vpop.permute.xlu1 %198 }
  0x8b   : > { %v203_v13 = vmax.f32 %v201_v11, 0.0  ;;  %v188_v14 = vmul.f32 %v291_v10, %v185_v12 }
  0x8d   : > { %v286_v16 = vpack.c.bf16 %v203_v13, %v203_v13  ;;  %v202_v17 = vadd.f32 %v199_v15, %v188_v14 }
  0x8f   : > { %214 = vst.msk [vmem:[%s170_s28] sm:$0xf] %vm213_vm0, %v286_v16  ;;  %v204_v18 = vmax.f32 %v202_v17, 0.0 }
  0x91   : > { %v287_v19 = vpack.c.bf16 %v204_v18, %v204_v18 }
  0x93   : > { %215 = vst.msk [vmem:[%s170_s28 + $0x4] sm:$0xf] %vm213_vm0, %v287_v19 }
  0x94 PF: > { %s13_s12 = sadd.s32 1, %s309_s12  }
  0x95   : > { %p10_p4 = scmp.ge.s32.totalorder %s13_s12, 4  }
  0x97   :  { %12 = sbr.rel (!%p10_p4) target bundleno = 1 (0x1), region = 62 }

// kernel: unet_forward.20
= control target key start
LH: loop header
LB: loop body
LE: loop exit
PB: predicated region body
PF: predicated region fallthrough
CT: control target
= control target key end

     0   :  { %s1151_s15 = smov 0   ;;  %s1250_s0 = inlined_call_operand.vmem [shape: bf16[2,16,64], index: 0, kind: input, shape index: {}]   ;;  %s1251_s1 = inlined_call_operand.vmem [shape: bf16[9,16,16], index: 1, kind: input, shape index: {}]   ;;  %s1252_s2 = inlined_call_operand.vmem [shape: bf16[2,64], index: 2, kind: input, shape index: {}]   ;;  %s1253_s3 = inlined_call_operand.vmem [shape: bf16[2,16,64], index: 3, kind: output, shape index: {0}]   ;;  %s1254_s4 = inlined_call_operand.vmem [shape: f32[2,16,2], index: 4, kind: output, shape index: {1}]  }
   0x1 LB: > { %s905_s16 = sadd.s32 4294967295, %s1105_s15   ;;  %p909_p0 = scmp.ge.s32.totalorder %s1105_s15, 1  ;;  %s1105_s15 = sphi %s1151_s15, %s15_s15  }
   0x2   : > { %p165_p1 = scmp.lt.s32.totalorder %s1105_s15, 3 }
   0x4   : > { %p166_p2 = pnand %p909_p0, %p165_p1 }
   0x5   : > { %v229_v0 = vld [vmem:[%s1252_s2] sm:$0x1] (!%p166_p2)  ;;  %v233_v1 = vlaneseq (!%p166_p2)  ;;  %p196_p3 = scmp.lt.s32.totalorder (!%p166_p2), %s905_s16, 1  ;;  %vm214_vm0 = vcmask (!%p166_p2), 130048   ;;  %v1107_v3 = vmov (!%p166_p2), 0   ;;  %vm216_vm1 = vcmask (!%p166_p2), 786048  }
   0x6   : > { %169 = sbr.rel (%p166_p2) target bundleno = 672 (0x2a0), region = 32  ;;  %v353_v2 = vshrl.u32 (!%p166_p2), %v229_v0, 16  ;;  %215 = vst.msk [vmem:[#allocation2] sm:$0xff] (!%p166_p2), %vm214_vm0, %v1107_v3  ;;  %v231_v4 = vpack.i.b16 (!%p166_p2), %v229_v0, %v229_v0  ;;  %s1108_s23 = smov (!%p166_p2), 7   ;;  %v1115_v11 = vmov (!%p166_p2), 0.0   ;;  %vm226_vm2 = vcmask (!%p166_p2), 654464  }
   0x7   : > { %v234_v5 = vshrl.u32 (!%p166_p2), %v233_v1, 7  ;;  %217 = vst.msk [vmem:[#allocation2] sm:$0xff] (!%p166_p2), %vm216_vm1, %v1107_v3  ;;  %s1109_s24 = smov (!%p166_p2), 16   ;;  %s1110_s25 = smov (!%p166_p2), 23   ;;  %978 = vmatprep.subr.bf16.mxu1 (!%p166_p2), %v1115_v11  ;;  %1002 = vmatprep.subr.bf16.mxu0 (!%p166_p2), %v1115_v11  ;;  %vm1116_vm3 = vmmov (!%p166_p2), 0   ;;  %v1091_v27 = vld [vmem:[%s1251_s1 + $0x8] sm:$0xff] (!%p166_p2)  }
   0x8   : > { %v354_v7 = vpack.i.b16 (!%p166_p2), %v353_v2, %v353_v2  ;;  %s1111_s26 = smov (!%p166_p2), 17   ;;  %s1112_s27 = smov (!%p166_p2), 15   ;;  %980 = vmatprep.mubr.msk.bf16.mxu1 (!%p166_p2), %vm1116_vm3, %v1115_v11  ;;  %1004 = vmatprep.mubr.msk.bf16.mxu0 (!%p166_p2), %vm1116_vm3, %v1115_v11  ;;  %v1090_v29 = vld [vmem:[%s1251_s1 + $0x20] sm:$0xff] (!%p166_p2)   ;;  %v1092_v33 = vld [vmem:[%s1251_s1 + $0x28] sm:$0xff] (!%p166_p2)   ;;  %v1094_v36 = vld [vmem:[%s1251_s1 + $0x10] sm:$0xff] (!%p166_p2)   ;;  %vm785_vm4 = vcmask (!%p166_p2), 523264  }
   0x9   : > { %v235_v6 = vsub.s32 (!%p166_p2), 0, %v234_v5  ;;  %s1113_s28 = smov (!%p166_p2), 9   ;;  %s1114_s29 = smov (!%p166_p2), 25   ;;  %v1093_v32 = vld [vmem:[%s1251_s1] sm:$0xff] (!%p166_p2)   ;;  %v1095_v37 = vld [vmem:[%s1251_s1 + $0x30] sm:$0xff] (!%p166_p2)   ;;  %v1096_v40 = vld [vmem:[%s1251_s1 + $0x18] sm:$0xff] (!%p166_p2)  }
   0xa   : > { %s1117_s30 = smov (!%p166_p2), 120   ;;  %s1118_s5 = smov (!%p166_p2), 112   ;;  %v1097_v41 = vld [vmem:[%s1251_s1 + $0x38] sm:$0xff] (!%p166_p2)   ;;  %v1098_v43 = vld [vmem:[%s1251_s1 + $0x40] sm:$0xff] (!%p166_p2)   ;;  %vm814_vm5 = vcmask (!%p166_p2), 519168   ;;  %vm792_vm6 = vcmask (!%p166_p2), 7168  }
   0xb   : > { %v236_v8 = vrot.slane (!%p166_p2), %v231_v4, %v235_v6  ;;  %v359_v10 = vrot.slane (!%p166_p2), %v354_v7, %v235_v6  ;;  %s1119_s6 = smov (!%p166_p2), 121   ;;  %s1120_s7 = smov (!%p166_p2), 111   ;;  %vm803_vm7 = vcmask (!%p166_p2), 15368  }
   0xc   : > { %s1121_s8 = smov (!%p166_p2), 119   ;;  %s1122_s9 = smov (!%p166_p2), 105  }
   0xd   : > { %s1256_s16 = smov (!%p196_p3, %s905_s16), 1  ;;  %238 = vrot.lane.b32.xlu1 %v236_v8, %s1108_s23  ;;  %s1123_s10 = smov 113  }
   0xe   : > { %s955_s19 = sshll.u32 %s1256_s16, 3  ;;  %s1124_s11 = smov 104  }
   0xf   : > { %s200_s22 = scalar_lea.vmem %s1250_s0, %s955_s19  ;;  %s1125_s12 = smov 103  }
  0x10   : > { %v1089_v9 = vld [vmem:[%s200_s22] sm:$0xff]  }
  0x11   : > { %223 = vrot.lane.b32.xlu0 %v1089_v9, %s1109_s24  ;;  %604 = vrot.lane.b32.xlu1 %v236_v8, %s1110_s25 }
  0x15   : > { %542 = vrot.lane.b32.xlu0 %v359_v10, %s1111_s26  ;;  %423 = vrot.lane.b32.xlu1 %v236_v8, %s1112_s27 }
  0x19   : > { %361 = vrot.lane.b32.xlu0 %v359_v10, %s1113_s28 }
  0x1d   : > { %723 = vrot.lane.b32.xlu0 %v359_v10, %s1114_s29 }
  0x7f   : > { %v239_v13 = vpop.permute.xlu1 %238 }
  0x83   : > { %v224_v12 = vpop.permute.xlu0 %223  ;;  %v605_v16 = vpop.permute.xlu1 %604 }
  0x84   : > { %227 = vst.msk [vmem:[#allocation2] sm:$0xff] %vm226_vm2, %v224_v12 }
  0x87   : > { %v543_v14 = vpop.permute.xlu0 %542  ;;  %v424_v22 = vpop.permute.xlu1 %423 }
  0x8b   : > { %v228_v15 = vld [vmem:[#allocation2] sm:$0xff]  ;;  %v362_v19 = vpop.permute.xlu0 %361 }
  0x8c   : > { %253 = vrot.lane.b32.xlu0 %v228_v15, %s1117_s30  ;;  %493 = vrot.lane.b32.xlu1 %v228_v15, %s1118_s5  ;;  %v241_v17 = vmul.bf16 %v239_v13, %v228_v15  ;;  %v545_v18 = vmul.bf16 %v543_v14, %v228_v15  ;;  %v364_v20 = vmul.bf16 %v362_v19, %v228_v15 }
  0x8d   : > { %v607_v21 = vmul.bf16 %v605_v16, %v228_v15  ;;  %v426_v23 = vmul.bf16 %v424_v22, %v228_v15 }
  0x8f   : > { %v724_v24 = vpop.permute.xlu0 %723 }
  0x90   : > { %306 = vrot.lane.b32.xlu0 %v241_v17, %s1119_s6  ;;  %555 = vrot.lane.b32.xlu1 %v545_v18, %s1120_s7  ;;  %v726_v25 = vmul.bf16 %v724_v24, %v228_v15 }
  0x94   : > { %374 = vrot.lane.b32.xlu0 %v364_v20, %s1121_s8  ;;  %617 = vrot.lane.b32.xlu1 %v607_v21, %s1122_s9 }
  0x98   : > { %436 = vrot.lane.b32.xlu0 %v426_v23, %s1123_s10  ;;  %674 = vrot.lane.b32.xlu1 %v228_v15, %s1124_s11  ;;  %s205_s10 = scalar_lea.vmem %s1253_s3, %s955_s19  ;;  %s957_s19 = sshll.u32 %s1256_s16, 4 }
  0x99   : > { %s210_s13 = scalar_lea.vmem %s1254_s4, %s957_s19 }
  0x9c   : > { %736 = vrot.lane.b32.xlu1 %v726_v25, %s1125_s12 }
  0xfe   : > { %v254_v26 = vpop.permute.xlu0 %253  ;;  %v494_v28 = vpop.permute.xlu1 %493 }
  0xff   : > { %979 = vmatpush3.bf16.msra.mxu1 %v254_v26  ;;  %1003 = vmatpush3.bf16.msra.mxu0 %v494_v28 }
 0x100   : > { %984 = vmatprep.subr.bf16.mxu1 %v1115_v11  ;;  %1008 = vmatprep.subr.bf16.mxu0 %v1115_v11 }
 0x102   : > { %981 = vmatmul.mubr.msk.bf16.vlgmr.msra.gmra.mrb[0].mxu1 %vm214_vm0, %v1091_v27  ;;  %v307_v30 = vpop.permute.xlu0 %306  ;;  %1005 = vmatmul.mubr.msk.bf16.vlgmr.msra.gmra.mrb[0].mxu0 %vm214_vm0, %v1090_v29  ;;  %v556_v31 = vpop.permute.xlu1 %555 }
 0x103   : > { %985 = vmatpush3.bf16.msra.mxu1 %v307_v30  ;;  %1009 = vmatpush3.bf16.msra.mxu0 %v556_v31 }
 0x104   : > { %986 = vmatprep.mubr.msk.bf16.mxu1 %vm1116_vm3, %v1115_v11  ;;  %990 = vmatprep.subr.bf16.mxu1 %v1115_v11 }
 0x105   : > { %1010 = vmatprep.mubr.msk.bf16.mxu0 %vm1116_vm3, %v1115_v11  ;;  %1014 = vmatprep.subr.bf16.mxu0 %v1115_v11 }
 0x106   : > { %v375_v34 = vpop.permute.xlu0 %374  ;;  %v618_v35 = vpop.permute.xlu1 %617 }
 0x10a   : > { %v437_v38 = vpop.permute.xlu0 %436  ;;  %v675_v39 = vpop.permute.xlu1 %674 }
 0x10e   : > { %987 = vmatmul.mubr.msk.bf16.vlgmr.msra.gmra.mrb[0].mxu1 %vm214_vm0, %v1093_v32  ;;  %1011 = vmatmul.mubr.msk.bf16.vlgmr.msra.gmra.mrb[0].mxu0 %vm214_vm0, %v1092_v33  ;;  %v737_v42 = vpop.permute.xlu1 %736 }
 0x10f   : > { %991 = vmatpush3.bf16.msra.mxu1 %v375_v34  ;;  %1015 = vmatpush3.bf16.msra.mxu0 %v618_v35 }
 0x110   : > { %992 = vmatprep.mubr.msk.bf16.mxu1 %vm1116_vm3, %v1115_v11  ;;  %996 = vmatprep.subr.bf16.mxu1 %v1115_v11 }
 0x111   : > { %1016 = vmatprep.mubr.msk.bf16.mxu0 %vm1116_vm3, %v1115_v11  ;;  %1020 = vmatprep.subr.bf16.mxu0 %v1115_v11 }
 0x11a   : > { %993 = vmatmul.mubr.msk.bf16.vlgmr.msra.gmra.mrb[0].mxu1 %vm214_vm0, %v1094_v36  ;;  %1017 = vmatmul.mubr.msk.bf16.vlgmr.msra.gmra.mrb[0].mxu0 %vm214_vm0, %v1095_v37 }
 0x11b   : > { %997 = vmatpush3.bf16.msra.mxu1 %v437_v38  ;;  %1021 = vmatpush3.bf16.msra.mxu0 %v675_v39 }
 0x11c   : > { %998 = vmatprep.mubr.msk.bf16.mxu1 %vm1116_vm3, %v1115_v11  ;;  %1022 = vmatprep.mubr.msk.bf16.mxu0 %vm1116_vm3, %v1115_v11 }
 0x11d   : > { %1026 = vmatprep.subr.bf16.mxu0 %v1115_v11 }
 0x126   : > { %999 = vmatmul.mubr.msk.bf16.vlgmr.msra.gmra.mrb[0].mxu1 %vm214_vm0, %v1096_v40  ;;  %1023 = vmatmul.mubr.msk.bf16.vlgmr.msra.gmra.mrb[0].mxu0 %vm214_vm0, %v1097_v41 }
 0x127   : > { %1027 = vmatpush3.bf16.msra.mxu0 %v737_v42  ;;  %1028 = vmatprep.mubr.msk.bf16.mxu0 %vm1116_vm3, %v1115_v11 }
 0x132   : > { %1029 = vmatmul.mubr.msk.bf16.vlgmr.msra.gmra.mrb[0].mxu0 %vm214_vm0, %v1098_v43 }
 0x1f9   : > { %v476_v44 = vpop.f32.mrb[0].mxu1 }
 0x1fa   : > { %v1000_v45 = vpop.f32.mrb[1].mxu1 }
 0x1fb   : > { %v479_v46 = vpop.f32.mrb[2].mxu1 }
 0x1fc   : > { %v1001_v47 = vpop.f32.mrb[3].mxu1 }
 0x205   : > { %v776_v48 = vpop.f32.mrb[0].mxu0 }
 0x206   : > { %v1032_v49 = vadd.f32 %v776_v48, %v476_v44  ;;  %v1030_v50 = vpop.f32.mrb[1].mxu0 }
 0x207   : > { %v779_v51 = vpop.f32.mrb[2].mxu0 }
 0x208   : > { %v958_v52 = vpack.c.bf16 %v1032_v49, %v1032_v49  ;;  %v1033_v53 = vadd.f32 %v779_v51, %v479_v46  ;;  %v1031_v54 = vpop.f32.mrb[3].mxu0  ;;  %v786_v55 = vsel %vm785_vm4, %v1032_v49, 0.0  ;;  %v795_v56 = vmul.f32 %v1032_v49, %v1032_v49 }
 0x209   : > { %787 = vadd.xlane.f32.xlu0 %v786_v55 }
 0x20a   : > { %815 = vst.msk [vmem:[%s205_s10] sm:$0xf] %vm814_vm5, %v958_v52  ;;  %v959_v57 = vpack.c.bf16 %v1033_v53, %v1033_v53  ;;  %v789_v58 = vsel %vm785_vm4, %v1033_v53, 0.0  ;;  %v797_v59 = vsel %vm785_vm4, %v795_v56, 0.0  ;;  %v796_v60 = vmul.f32 %v1033_v53, %v1033_v53 }
 0x20b   : > { %790 = vadd.xlane.f32.xlu1 %v789_v58 }
 0x20c   : > { %816 = vst.msk [vmem:[%s205_s10 + $0x4] sm:$0xf] %vm814_vm5, %v959_v57  ;;  %v800_v61 = vsel %vm785_vm4, %v796_v60, 0.0 }
 0x20d   : > { %798 = vadd.xlane.f32.xlu0 %v797_v59 }
 0x211   : > { %801 = vadd.xlane.f32.xlu0 %v800_v61 }
 0x296   : > { %v788_v62 = vpop.xlane.xlu0 %787 }
 0x297   : > { %793 = vst.msk [vmem:[%s210_s13] sm:$0xff] %vm792_vm6, %v788_v62 }
 0x298   : > { %v791_v63 = vpop.xlane.xlu1 %790 }
 0x299   : > { %794 = vst.msk [vmem:[%s210_s13 + $0x8] sm:$0xff] %vm792_vm6, %v791_v63 }
 0x29a   : > { %v799_v0 = vpop.xlane.xlu0 %798 }
 0x29b   : > { %804 = vst.msk [vmem:[%s210_s13] sm:$0xff] %vm803_vm7, %v799_v0 }
 0x29e   : > { %v802_v1 = vpop.xlane.xlu0 %801 }
 0x29f   : > { %805 = vst.msk [vmem:[%s210_s13 + $0x8] sm:$0xff] %vm803_vm7, %v802_v1 }
 0x2a0 PF: > { %s15_s15 = sadd.s32 1, %s1105_s15  }
 0x2a1   : > { %p12_p4 = scmp.ge.s32.totalorder %s15_s15, 4  }
 0x2a3   :  { %14 = sbr.rel (!%p12_p4) target bundleno = 1 (0x1), region = 82 }

// kernel: unet_forward.23
= control target key start
LH: loop header
LB: loop body
LE: loop exit
PB: predicated region body
PF: predicated region fallthrough
CT: control target
= control target key end

     0   :  { %s1567_s15 = smov 0   ;;  %s1925_s0 = inlined_call_operand.vmem [shape: bf16[2,24,256], index: 0, kind: input, shape index: {}]   ;;  %s1926_s1 = inlined_call_operand.vmem [shape: bf16[9,8,24], index: 1, kind: input, shape index: {}]   ;;  %s1927_s2 = inlined_call_operand.vmem [shape: bf16[2,256], index: 2, kind: input, shape index: {}]   ;;  %s1928_s3 = inlined_call_operand.vmem [shape: bf16[2,8,256], index: 3, kind: output, shape index: {0}]   ;;  %s1929_s4 = inlined_call_operand.vmem [shape: f32[2,8,2], index: 4, kind: output, shape index: {1}]  }
   0x1 LB: > { %s1359_s16 = sadd.s32 4294967295, %s1522_s15   ;;  %p1363_p0 = scmp.ge.s32.totalorder %s1522_s15, 1  ;;  %s1522_s15 = sphi %s1567_s15, %s15_s15  }
   0x2   : > { %p165_p1 = scmp.lt.s32.totalorder %s1522_s15, 3 }
   0x4   : > { %p166_p2 = pnand %p1363_p0, %p165_p1 }
   0x5   : > { %p195_p3 = scmp.lt.s32.totalorder (!%p166_p2), %s1359_s16, 1  ;;  %v1368_v0 = vld.sshfl [vmem:[%s1927_s2] sm:$0x11 pattern:$0x75316420] (!%p166_p2)  ;;  %v271_v1 = vlaneseq (!%p166_p2)  ;;  %vm213_vm0 = vcmask (!%p166_p2), 257024  }
   0x6   : > { %169 = sbr.rel (%p166_p2) target bundleno = 735 (0x2df), region = 32  ;;  %v1524_v2 = vmov (!%p166_p2), 1966171168   ;;  %v1525_v5 = vmov (!%p166_p2), 0   ;;  %vm217_vm1 = vcmask (!%p166_p2), 519424   ;;  %v267_v6 = vcombine.high (!%p166_p2), %v1368_v0, %v1368_v0  ;;  %s1526_s23 = smov (!%p166_p2), 32  }
   0x7   : > { %v269_v3 = vunpack.c.l.s4 (!%p166_p2), %v1524_v2  ;;  %v272_v4 = vshrl.u32 (!%p166_p2), %v271_v1, 7  ;;  %214 = vst.msk [vmem:[#allocation2] sm:$0xf] (!%p166_p2), %vm213_vm0, %v1525_v5  ;;  %215 = vst.msk [vmem:[#allocation2 + $0xc] sm:$0xf] (!%p166_p2), %vm213_vm0, %v1525_v5  ;;  %400 = vmatprep.mubr.bf16.mxu1 (!%p166_p2), %v1525_v5  ;;  %847 = vmatprep.mubr.bf16.mxu0 (!%p166_p2), %v1525_v5  ;;  %s1527_s24 = smov (!%p166_p2), 47  }
   0x8   : > { %216 = vst.msk [vmem:[#allocation2 + $0x18] sm:$0xf] (!%p166_p2), %vm213_vm0, %v1525_v5  ;;  %s1528_s25 = smov (!%p166_p2), 15   ;;  %s1529_s26 = smov (!%p166_p2), 31   ;;  %vm243_vm2 = vcmask (!%p166_p2), 1043712   ;;  %vm244_vm3 = vcmask (!%p166_p2), 1047556  }
   0x9   : > { %218 = vst.msk [vmem:[#allocation2 + $0x8] sm:$0xf] (!%p166_p2), %vm217_vm1, %v1525_v5  ;;  %219 = vst.msk [vmem:[#allocation2 + $0x14] sm:$0xf] (!%p166_p2), %vm217_vm1, %v1525_v5  ;;  %v270_v7 = vunpack.c.0.s8 (!%p166_p2), %v269_v3  ;;  %v287_v13 = vsub.s32 (!%p166_p2), 0, %v272_v4  ;;  %s1530_s27 = smov (!%p166_p2), 17  }
   0xa   : > { %220 = vst.msk [vmem:[#allocation2 + $0x20] sm:$0xf] (!%p166_p2), %vm217_vm1, %v1525_v5  ;;  %s1531_s28 = smov (!%p166_p2), 33   ;;  %s1532_s29 = smov (!%p166_p2), 49   ;;  %vm233_vm4 = vcmask (!%p166_p2), 261120   ;;  %vm245_vm5 = vmor (!%p166_p2), %vm244_vm3, %vm243_vm2  ;;  %vm660_vm6 = vcmask (!%p166_p2), 252928  }
   0xb   : > { %v273_v8 = vsub.s32 (!%p166_p2), %v270_v7, %v272_v4  ;;  %s1533_s30 = smov (!%p166_p2), 112   ;;  %s1534_s5 = smov (!%p166_p2), 96   ;;  %vm547_vm7 = vcmask (!%p166_p2), 138240   ;;  %vm1148_vm8 = vcmask (!%p166_p2), 400384   ;;  %vm304_vm9 = vcmask (!%p166_p2), 121856  }
   0xc   : > { %s1535_s6 = smov (!%p166_p2), 80   ;;  %s1536_s7 = smov (!%p166_p2), 113   ;;  %vm968_vm10 = vcmask (!%p166_p2), 384000   ;;  %vm861_vm11 = vcmask (!%p166_p2), 269312   ;;  %vm799_vm12 = vcmask (!%p166_p2), 785408   ;;  %vm361_vm13 = vcmask (!%p166_p2), 1043456  }
   0xd   : > { %s1931_s16 = smov (!%p195_p3, %s1359_s16), 1  ;;  %v274_v11 = vrot.slane %v1368_v0, %v273_v8  ;;  %v281_v12 = vrot.slane %v267_v6, %v273_v8  ;;  %s1537_s8 = smov 81   ;;  %vm350_vm14 = vcmask 916480   ;;  %vm357_vm15 = vcmask 195584  }
   0xe   : > { %s1481_s19 = smul.u32 24, %s1931_s16  ;;  %s1538_s9 = smov 95   ;;  %vm906_vm1 = vcmask 777216   ;;  %vm1013_vm2 = vcmask 662528   ;;  %vm1086_vm3 = vcmask 654336  }
   0xf   : > { %v283_v15 = vpack.i.b16 %v274_v11, %v274_v11  ;;  %v290_v16 = vpack.i.b16 %v281_v12, %v281_v12  ;;  %v524_v17 = vshrl.u32 %v274_v11, 16  ;;  %v532_v18 = vshrl.u32 %v281_v12, 16  ;;  %s1539_s10 = smov 111   ;;  %s1540_s11 = smov 97  }
  0x10   : > { %s199_s22 = scalar_lea.vmem %s1925_s0, %s1481_s19  ;;  %s1541_s12 = smov 79  }
  0x11   : > { %v210_v9 = vld [vmem:[%s199_s22] sm:$0xff]  ;;  %v212_v10 = vld [vmem:[%s199_s22 + $0x10] sm:$0xff]  ;;  %v211_v14 = vld [vmem:[%s199_s22 + $0x8] sm:$0xff]  ;;  %v288_v19 = vrot.slane %v283_v15, %v287_v13  ;;  %v295_v20 = vrot.slane %v290_v16, %v287_v13  ;;  %v525_v21 = vpack.i.b16 %v524_v17, %v524_v17  ;;  %v533_v22 = vpack.i.b16 %v532_v18, %v532_v18 }
  0x12   : > { %224 = vrot.lane.b32.xlu0 %v210_v9, %s1526_s23  ;;  %228 = vrot.lane.b32.xlu1 %v212_v10, %s1526_s23 }
  0x13   : > { %v1369_v23 = vcombine.low %v288_v19, %v295_v20  ;;  %v530_v24 = vrot.slane %v525_v21, %v287_v13  ;;  %v538_v25 = vrot.slane %v533_v22, %v287_v13 }
  0x15   : > { %v1388_v26 = vcombine.low %v530_v24, %v538_v25 }
  0x16   : > { %226 = vrot.lane.b32.xlu0 %v211_v14, %s1526_s23  ;;  %965 = vrot.lane.b32.xlu1 %v1369_v23, %s1527_s24 }
  0x1a   : > { %301 = vrot.lane.b32.xlu0 %v1369_v23, %s1528_s25  ;;  %657 = vrot.lane.b32.xlu1 %v1369_v23, %s1529_s26 }
  0x1e   : > { %544 = vrot.lane.b32.xlu0 %v1388_v26, %s1530_s27  ;;  %858 = vrot.lane.b32.xlu1 %v1388_v26, %s1531_s28 }
  0x22   : > { %1145 = vrot.lane.b32.xlu0 %v1388_v26, %s1532_s29 }
  0x84   : > { %v225_v27 = vpop.permute.xlu0 %224  ;;  %v229_v28 = vpop.permute.xlu1 %228 }
  0x85   : > { %v230_v29 = vrot.slane %v225_v27, 4  ;;  %v232_v30 = vrot.slane %v229_v28, 4 }
  0x87   : > { %v234_v31 = vsel %vm233_vm4, %v230_v29, %v225_v27  ;;  %247 = vst.msk [vmem:[#allocation2 + $0x8] sm:$0xf] %vm213_vm0, %v230_v29  ;;  %v236_v32 = vsel %vm233_vm4, %v232_v30, %v229_v28  ;;  %251 = vst.msk [vmem:[#allocation2 + $0x20] sm:$0xf] %vm213_vm0, %v232_v30 }
  0x88   : > { %246 = vst.msk [vmem:[#allocation2] sm:$0xff] %vm245_vm5, %v234_v31  ;;  %250 = vst.msk [vmem:[#allocation2 + $0x18] sm:$0xff] %vm245_vm5, %v236_v32  ;;  %v227_v33 = vpop.permute.xlu0 %226  ;;  %v1598_v36 = vpop.permute.xlu1 %965 }
  0x89   : > { %v231_v34 = vrot.slane %v227_v33, 4  ;;  %v967_v21 = vrot.slane %v1598_v36, 4 }
  0x8b   : > { %v235_v35 = vsel %vm233_vm4, %v231_v34, %v227_v33  ;;  %249 = vst.msk [vmem:[#allocation2 + $0x14] sm:$0xf] %vm213_vm0, %v231_v34  ;;  %vm442_vm0 = vcmask 924672   ;;  %vm592_vm4 = vcmask 908288  }
  0x8c   : > { %248 = vst.msk [vmem:[#allocation2 + $0xc] sm:$0xff] %vm245_vm5, %v235_v35  ;;  %v1600_v37 = vpop.permute.xlu0 %301  ;;  %v658_v41 = vpop.permute.xlu1 %657  ;;  %v969_v35 = vsel %vm968_vm10, %v967_v21, %v1598_v36  ;;  %vm705_vm5 = vcmask 793600  }
  0x8d   : > { %v1615_v46 = vrot.slane %v658_v41, 4  ;;  %v303_v19 = vrot.slane %v1600_v37, 4 }
  0x8e   : > { %v1602_v38 = vld [vmem:[#allocation2 + $0x20] sm:$0xf]  ;;  %v1607_v42 = vld [vmem:[#allocation2 + $0x8] sm:$0xf] }
  0x8f   : > { %v1376_v39 = vcombine.low %v1602_v38, %v1602_v38  ;;  %v1617_v47 = vld [vmem:[#allocation2 + $0x20] sm:$0xf]  ;;  %v1631_v53 = vsel %vm660_vm6, %v1615_v46, %v658_v41  ;;  %v1645_v58 = vld [vmem:[#allocation2 + $0x8] sm:$0xf]  ;;  %v1647_v59 = vld [vmem:[#allocation2 + $0x18] sm:$0xff]  ;;  %v665_v8 = vmul.bf16 %v1615_v46, %v1607_v42  ;;  %v313_v23 = vmul.bf16 %v303_v19, %v1602_v38 }
  0x90   : > { %v545_v40 = vpop.permute.xlu0 %544  ;;  %v1619_v48 = vld [vmem:[#allocation2] sm:$0xff]  ;;  %v1628_v52 = vcombine.low %v1617_v47, %v1617_v47  ;;  %v1674_v2 = vcombine.high %v1647_v59, %v1647_v59  ;;  %v1705_v14 = vcombine.low %v1647_v59, %v1647_v59  ;;  %v309_v22 = vmul.bf16 %v303_v19, %v1645_v58  ;;  %v859_v26 = vpop.permute.xlu1 %858 }
  0x91   : > { %348 = vrot.lane.b32.xlu1 %v1376_v39, %s1533_s30  ;;  %v1622_v50 = vrot.slane %v545_v40, 4  ;;  %v1651_v60 = vmul.bf16 %v1631_v53, %v1619_v48  ;;  %v305_v27 = vsel %vm304_vm9, %v303_v19, %v1600_v37  ;;  %v973_v28 = vmul.bf16 %v967_v21, %v1607_v42 }
  0x92   : > { %v1609_v43 = vld [vmem:[#allocation2 + $0x14] sm:$0xf]  ;;  %v1384_v30 = vcombine.low %v313_v23, %v313_v23  ;;  %v860_v31 = vrot.slane %v859_v26, 4  ;;  %v977_v33 = vmul.bf16 %v967_v21, %v1617_v47  ;;  %v308_v34 = vmul.bf16 %v1619_v48, %v305_v27 }
  0x93   : > { %v1611_v44 = vld [vmem:[#allocation2 + $0xc] sm:$0xff]  ;;  %v1410_v45 = vcombine.low %v1607_v42, %v1609_v43  ;;  %v1636_v55 = vld [vmem:[#allocation2 + $0x14] sm:$0xf]  ;;  %v1641_v56 = vsel %vm547_vm7, %v1622_v50, %v545_v40  ;;  %v667_v9 = vmul.bf16 %v1615_v46, %v1609_v43  ;;  %v975_v25 = vmul.bf16 %v967_v21, %v1609_v43 }
  0x94   : > { %v1146_v49 = vpop.permute.xlu0 %1145  ;;  %v1409_v51 = vcombine.high %v1619_v48, %v1611_v44  ;;  %v1408_v57 = vcombine.low %v1619_v48, %v1611_v44  ;;  %v1655_v61 = vmul.bf16 %v1631_v53, %v1611_v44  ;;  %v1373_v62 = vcombine.low %v1645_v58, %v1636_v55 }
  0x95   : > { %791 = vrot.lane.b32.xlu0 %v1410_v45, %s1534_s5  ;;  %v1633_v54 = vrot.slane %v1146_v49, 4  ;;  %v1665_v0 = vmul.bf16 %v1619_v48, %v1641_v56  ;;  %v1669_v1 = vmul.bf16 %v1611_v44, %v1641_v56  ;;  %v1707_v15 = vcombine.low %v665_v8, %v667_v9 }
  0x96   : > { %789 = vrot.lane.b32.xlu1 %v1409_v51, %s1534_s5  ;;  %v1400_v6 = vcombine.high %v1651_v60, %v1655_v61  ;;  %v1399_v7 = vcombine.low %v1651_v60, %v1655_v61  ;;  %v311_v20 = vmul.bf16 %v303_v19, %v1636_v55  ;;  %v310_v29 = vmul.bf16 %v1611_v44, %v305_v27 }
  0x97   : > { %v1660_v63 = vsel %vm1148_vm8, %v1633_v54, %v1146_v49  ;;  %v1391_v10 = vcombine.high %v1665_v0, %v1669_v1  ;;  %v1153_v11 = vmul.bf16 %v1633_v54, %v1607_v42  ;;  %v1155_v12 = vmul.bf16 %v1633_v54, %v1609_v43 }
  0x98   : > { %v1678_v3 = vmul.bf16 %v1660_v63, %v1619_v48  ;;  %v1682_v4 = vmul.bf16 %v1660_v63, %v1611_v44  ;;  %v1390_v13 = vcombine.low %v1665_v0, %v1669_v1  ;;  %v1381_v24 = vcombine.low %v309_v22, %v311_v20 }
  0x99   : > { %797 = vrot.lane.b32.xlu0 %v1628_v52, %s1534_s5  ;;  %v1709_v16 = vcombine.low %v1153_v11, %v1155_v12  ;;  %v1428_v32 = vcombine.low %v973_v28, %v975_v25  ;;  %v974_v37 = vmul.bf16 %v969_v35, %v1611_v44  ;;  %v1380_v39 = vcombine.high %v308_v34, %v310_v29 }
  0x9a   : > { %787 = vrot.lane.b32.xlu1 %v1408_v57, %s1534_s5  ;;  %v1438_v17 = vcombine.low %v1678_v3, %v1682_v4  ;;  %v1439_v18 = vcombine.high %v1678_v3, %v1682_v4  ;;  %v1431_v40 = vcombine.low %v977_v33, %v977_v33  ;;  %v866_v41 = vmul.bf16 %v860_v31, %v1607_v42 }
  0x9b   : > { %v972_v49 = vmul.bf16 %v969_v35, %v1619_v48  ;;  %v870_v36 = vmul.bf16 %v860_v31, %v1617_v47  ;;  %v1379_v42 = vcombine.low %v308_v34, %v310_v29  ;;  %v556_v19 = vmul.bf16 %v1622_v50, %v1602_v38  ;;  %v1407_v34 = vld [vmem:[%s1926_s1 + $0x10] sm:$0xf] }
  0x9c   : > { %v862_v20 = vsel %vm861_vm11, %v860_v31, %v859_v26  ;;  %v554_v28 = vmul.bf16 %v1622_v50, %v1636_v55  ;;  %v669_v61 = vmul.bf16 %v1615_v46, %v1617_v47  ;;  %v1157_v1 = vmul.bf16 %v1633_v54, %v1617_v47 }
  0x9d   : > { %342 = vrot.lane.b32.xlu0 %v1373_v62, %s1533_s30  ;;  %v312_v62 = vmul.bf16 %v1647_v59, %v305_v27  ;;  %v1422_v8 = vcombine.low %v870_v36, %v870_v36  ;;  %v1426_v11 = vcombine.low %v972_v49, %v974_v37  ;;  %v865_v22 = vmul.bf16 %v862_v20, %v1619_v48 }
  0x9e   : > { %795 = vrot.lane.b32.xlu1 %v1674_v2, %s1534_s5  ;;  %v867_v23 = vmul.bf16 %v862_v20, %v1611_v44  ;;  %v552_v27 = vmul.bf16 %v1622_v50, %v1645_v58  ;;  %v869_v44 = vmul.bf16 %v862_v20, %v1647_v59  ;;  %v668_v58 = vmul.bf16 %v1631_v53, %v1647_v59 }
  0x9f   : > { %v1382_v9 = vcombine.low %v312_v62, %v312_v62  ;;  %v1383_v21 = vcombine.high %v312_v62, %v312_v62  ;;  %v555_v53 = vmul.bf16 %v1647_v59, %v1641_v56  ;;  %v1156_v56 = vmul.bf16 %v1660_v63, %v1647_v59 }
  0xa0   : > { %v1418_v38 = vcombine.high %v865_v22, %v867_v23  ;;  %v1392_v26 = vcombine.low %v552_v27, %v554_v28  ;;  %v1417_v48 = vcombine.low %v865_v22, %v867_v23  ;;  %v1421_v50 = vcombine.high %v869_v44, %v869_v44 }
  0xa1   : > { %1078 = vrot.lane.b32.xlu0 %v1410_v45, %s1535_s6  ;;  %v868_v45 = vmul.bf16 %v860_v31, %v1609_v43  ;;  %v976_v43 = vmul.bf16 %v969_v35, %v1647_v59  ;;  %v1420_v55 = vcombine.low %v869_v44, %v869_v44  ;;  %v1403_v60 = vcombine.high %v668_v58, %v668_v58  ;;  %v314_v44 = vld [vmem:[%s1926_s1] sm:$0xf] }
  0xa2   : > { %340 = vrot.lane.b32.xlu1 %v1409_v51, %s1533_s30  ;;  %v1441_v0 = vcombine.low %v1156_v56, %v1156_v56  ;;  %v1442_v46 = vcombine.high %v1156_v56, %v1156_v56  ;;  %vm1193_vm6 = vcmask 646144   ;;  %vm1255_vm7 = vcmask 7168  }
  0xa3   : > { %v1430_v12 = vcombine.high %v976_v43, %v976_v43  ;;  %v1429_v25 = vcombine.low %v976_v43, %v976_v43  ;;  %vm1262_vm8 = vcmask 15368  }
  0xa5   : > { %793 = vrot.lane.b32.xlu0 %v1705_v14, %s1534_s5 }
  0xa6   : > { %338 = vrot.lane.b32.xlu1 %v1408_v57, %s1533_s30 }
  0xa9   : > { %346 = vrot.lane.b32.xlu0 %v1674_v2, %s1533_s30 }
  0xaa   : > { %344 = vrot.lane.b32.xlu1 %v1705_v14, %s1533_s30 }
  0xad   : > { %1074 = vrot.lane.b32.xlu0 %v1408_v57, %s1535_s6  ;;  %v1419_v57 = vcombine.low %v866_v41, %v868_v45 }
  0xae   : > { %1076 = vrot.lane.b32.xlu1 %v1409_v51, %s1535_s6  ;;  %v1427_v51 = vcombine.high %v972_v49, %v974_v37 }
  0xb1   : > { %434 = vrot.lane.b32.xlu0 %v1381_v24, %s1536_s7  ;;  %v1395_v24 = vcombine.low %v556_v19, %v556_v19 }
  0xb2   : > { %440 = vrot.lane.b32.xlu1 %v1384_v30, %s1536_s7 }
  0xb5   : > { %1005 = vrot.lane.b32.xlu0 %v1428_v32, %s1537_s8 }
  0xb6   : > { %432 = vrot.lane.b32.xlu1 %v1380_v39, %s1536_s7 }
  0xb9   : > { %1011 = vrot.lane.b32.xlu0 %v1431_v40, %s1537_s8 }
  0xba   : > { %1003 = vrot.lane.b32.xlu1 %v1427_v51, %s1537_s8  ;;  %v1370_v51 = vld [vmem:[%s1926_s1 + $0x4] sm:$0xf] }
  0xbd   : > { %898 = vrot.lane.b32.xlu0 %v1419_v57, %s1538_s9 }
  0xbe   : > { %430 = vrot.lane.b32.xlu1 %v1379_v42, %s1536_s7 }
  0xc1   : > { %904 = vrot.lane.b32.xlu0 %v1422_v8, %s1538_s9 }
  0xc2   : > { %436 = vrot.lane.b32.xlu1 %v1382_v9, %s1536_s7 }
  0xc5   : > { %1001 = vrot.lane.b32.xlu0 %v1426_v11, %s1537_s8 }
  0xc6   : > { %1009 = vrot.lane.b32.xlu1 %v1430_v12, %s1537_s8 }
  0xc9   : > { %438 = vrot.lane.b32.xlu0 %v1383_v21, %s1536_s7  ;;  %s1449_s7 = sshll.u32 %s1931_s16, 3 }
  0xca   : > { %590 = vrot.lane.b32.xlu1 %v1395_v24, %s1539_s10 }
  0xcd   : > { %1007 = vrot.lane.b32.xlu0 %v1429_v25, %s1537_s8 }
  0xce   : > { %896 = vrot.lane.b32.xlu1 %v1418_v38, %s1538_s9 }
  0xd1   : > { %584 = vrot.lane.b32.xlu0 %v1392_v26, %s1539_s10 }
  0xd2   : > { %1082 = vrot.lane.b32.xlu1 %v1674_v2, %s1535_s6  ;;  %v1402_v2 = vcombine.low %v668_v58, %v668_v58 }
  0xd5   : > { %894 = vrot.lane.b32.xlu0 %v1417_v48, %s1538_s9 }
  0xd6   : > { %902 = vrot.lane.b32.xlu1 %v1421_v50, %s1538_s9 }
  0xd9   : > { %900 = vrot.lane.b32.xlu0 %v1420_v55, %s1538_s9 }
  0xda   : > { %695 = vrot.lane.b32.xlu1 %v1400_v6, %s1540_s11  ;;  %v1394_v6 = vcombine.high %v555_v53, %v555_v53 }
  0xdd   : > { %1080 = vrot.lane.b32.xlu0 %v1705_v14, %s1535_s6 }
  0xde   : > { %693 = vrot.lane.b32.xlu1 %v1399_v7, %s1540_s11  ;;  %v1404_v7 = vcombine.low %v669_v61, %v669_v61 }
  0xe1   : > { %1084 = vrot.lane.b32.xlu0 %v1628_v52, %s1535_s6  ;;  %v1393_v52 = vcombine.low %v555_v53, %v555_v53 }
  0xe2   : > { %699 = vrot.lane.b32.xlu1 %v1402_v2, %s1540_s11 }
  0xe5   : > { %697 = vrot.lane.b32.xlu0 %v1707_v15, %s1540_s11 }
  0xe6   : > { %582 = vrot.lane.b32.xlu1 %v1391_v10, %s1539_s10  ;;  %v1443_v10 = vcombine.low %v1157_v1, %v1157_v1 }
  0xe9   : > { %1185 = vrot.lane.b32.xlu0 %v1709_v16, %s1541_s12 }
  0xea   : > { %580 = vrot.lane.b32.xlu1 %v1390_v13, %s1539_s10 }
  0xed   : > { %701 = vrot.lane.b32.xlu0 %v1403_v60, %s1540_s11 }
  0xee   : > { %586 = vrot.lane.b32.xlu1 %v1393_v52, %s1539_s10 }
  0xf1   : > { %588 = vrot.lane.b32.xlu0 %v1394_v6, %s1539_s10  ;;  %s204_s10 = scalar_lea.vmem %s1928_s3, %s1449_s7 }
  0xf2   : > { %703 = vrot.lane.b32.xlu1 %v1404_v7, %s1540_s11 }
  0xf5   : > { %1181 = vrot.lane.b32.xlu0 %v1438_v17, %s1541_s12 }
  0xf6   : > { %1183 = vrot.lane.b32.xlu1 %v1439_v18, %s1541_s12 }
  0xf9   : > { %1187 = vrot.lane.b32.xlu0 %v1441_v0, %s1541_s12 }
  0xfa   : > { %1189 = vrot.lane.b32.xlu1 %v1442_v46, %s1541_s12  ;;  %v1416_v46 = vld [vmem:[%s1926_s1 + $0x14] sm:$0xf] }
  0xfd   : > { %1191 = vrot.lane.b32.xlu0 %v1443_v10, %s1541_s12  ;;  %s208_s12 = scalar_lea.vmem %s1929_s4, %s1449_s7 }
 0x103   : > { %v349_v13 = vpop.permute.xlu1 %348 }
 0x107   : > { %v792_v59 = vpop.permute.xlu0 %791 }
 0x108   : > { %v790_v63 = vpop.permute.xlu1 %789 }
 0x109   : > { %v801_v14 = vsel %vm799_vm12, %v790_v63, %v792_v59 }
 0x10a   : > { %815 = vmatprep.subr.bf16.mxu0 %v801_v14 }
 0x10b   : > { %v798_v15 = vpop.permute.xlu0 %797 }
 0x10c   : > { %v788_v16 = vpop.permute.xlu1 %787 }
 0x10d   : > { %v800_v47 = vsel %vm799_vm12, %v788_v16, %v790_v63 }
 0x10e   : > { %816 = vmatpush1.bf16.msra.mxu0 %v800_v47 }
 0x10f   : > { %v343_v54 = vpop.permute.xlu0 %342 }
 0x110   : > { %v796_v3 = vpop.permute.xlu1 %795 }
 0x111   : > { %v803_v4 = vsel %vm799_vm12, %v796_v3, %v798_v15 }
 0x112   : > { %1414 = vmatprep.subr.msk.bf16.mxu0 %vm361_vm13, %v803_v4 }
 0x113   : > { %v1816_v17 = vpop.permute.xlu0 %1078 }
 0x114   : > { %v341_v18 = vpop.permute.xlu1 %340 }
 0x115   : > { %v352_v29 = vsel %vm350_vm14, %v341_v18, %v343_v54 }
 0x116   : > { %368 = vmatprep.subr.bf16.mxu1 %v352_v29 }
 0x117   : > { %v794_v30 = vpop.permute.xlu0 %793 }
 0x118   : > { %v802_v31 = vsel %vm799_vm12, %v794_v30, %v796_v3  ;;  %v339_v33 = vpop.permute.xlu1 %338 }
 0x119   : > { %v810_v32 = vsel %vm361_vm13, %v802_v31, 0  ;;  %v351_v35 = vsel %vm350_vm14, %v339_v33, %v341_v18  ;;  %v1425_v18 = vld [vmem:[%s1926_s1 + $0x18] sm:$0xf] }
 0x11a   : > { %818 = vmatpush1.bf16.msra.mxu0 %v810_v32  ;;  %369 = vmatpush1.bf16.msra.mxu1 %v351_v35 }
 0x11b   : > { %v347_v37 = vpop.permute.xlu0 %346 }
 0x11c   : > { %v354_v39 = vsel %vm350_vm14, %v347_v37, %v349_v13  ;;  %v345_v40 = vpop.permute.xlu1 %344 }
 0x11d   : > { %1377 = vmatprep.subr.msk.bf16.mxu1 %vm361_vm13, %v354_v39  ;;  %1415 = vmatmul.mubr.msk.bf16.vlgmr.msra.gmra.mrb[0].mxu0 %vm357_vm15, %v1407_v34  ;;  %v353_v41 = vsel %vm350_vm14, %v345_v40, %v347_v37 }
 0x11e   : > { %954 = vmatprep.mubr.bf16.mxu0 %v1525_v5  ;;  %v363_v49 = vsel %vm361_vm13, %v353_v41, 0 }
 0x11f   : > { %v1831_v45 = vpop.permute.xlu0 %1074  ;;  %371 = vmatpush1.bf16.msra.mxu1 %v363_v49 }
 0x120   : > { %v1837_v57 = vpop.permute.xlu1 %1076 }
 0x121   : > { %v1088_v54 = vsel %vm1086_vm3, %v1837_v57, %v1816_v17  ;;  %v1087_v31 = vsel %vm1086_vm3, %v1831_v45, %v1837_v57 }
 0x122   : > { %1378 = vmatmul.mubr.msk.bf16.vlgmr.msra.gmra.mrb[0].mxu1 %vm357_vm15, %v1370_v51 }
 0x123   : > { %v435_v36 = vpop.permute.xlu0 %434  ;;  %490 = vmatprep.mubr.bf16.mxu1 %v1525_v5 }
 0x124   : > { %v441_v62 = vpop.permute.xlu1 %440 }
 0x127   : > { %v1006_v42 = vpop.permute.xlu0 %1005 }
 0x128   : > { %v433_v8 = vpop.permute.xlu1 %432 }
 0x129   : > { %v444_v43 = vsel %vm442_vm0, %v433_v8, %v435_v36  ;;  %v1389_v36 = vld [vmem:[%s1926_s1 + $0x8] sm:$0xf] }
 0x12a   : > { %458 = vmatprep.subr.bf16.mxu1 %v444_v43 }
 0x12b   : > { %v1012_v9 = vpop.permute.xlu0 %1011 }
 0x12c   : > { %v1004_v11 = vpop.permute.xlu1 %1003 }
 0x12d   : > { %v1015_v1 = vsel %vm1013_vm2, %v1004_v11, %v1006_v42 }
 0x12f   : > { %v899_v12 = vpop.permute.xlu0 %898 }
 0x130   : > { %v431_v19 = vpop.permute.xlu1 %430 }
 0x131   : > { %v443_v20 = vsel %vm442_vm0, %v431_v19, %v433_v8 }
 0x132   : > { %459 = vmatpush1.bf16.msra.mxu1 %v443_v20 }
 0x133   : > { %v905_v21 = vpop.permute.xlu0 %904 }
 0x134   : > { %v437_v22 = vpop.permute.xlu1 %436 }
 0x137   : > { %v1002_v23 = vpop.permute.xlu0 %1001 }
 0x138   : > { %v1010_v24 = vpop.permute.xlu1 %1009  ;;  %v1014_v13 = vsel %vm1013_vm2, %v1002_v23, %v1004_v11 }
 0x139   : > { %v1017_v59 = vsel %vm1013_vm2, %v1010_v24, %v1012_v9 }
 0x13b   : > { %v439_v25 = vpop.permute.xlu0 %438 }
 0x13c   : > { %v445_v27 = vsel %vm442_vm0, %v437_v22, %v439_v25  ;;  %v446_v28 = vsel %vm442_vm0, %v439_v25, %v441_v62  ;;  %v1847_v26 = vpop.permute.xlu1 %590  ;;  %v1434_v62 = vld [vmem:[%s1926_s1 + $0x1c] sm:$0xf] }
 0x13d   : > { %v453_v38 = vsel %vm361_vm13, %v445_v27, 0  ;;  %1385 = vmatprep.subr.msk.bf16.mxu1 %vm361_vm13, %v446_v28  ;;  %v1437_v28 = vld [vmem:[%s1926_s1 + $0x20] sm:$0xf] }
 0x13e   : > { %461 = vmatpush1.bf16.msra.mxu1 %v453_v38 }
 0x13f   : > { %v1008_v48 = vpop.permute.xlu0 %1007 }
 0x140   : > { %v897_v50 = vpop.permute.xlu1 %896  ;;  %v1016_v63 = vsel %vm1013_vm2, %v1008_v48, %v1010_v24 }
 0x141   : > { %1386 = vmatmul.mubr.msk.bf16.vlgmr.msra.gmra.mrb[0].mxu1 %vm357_vm15, %v314_v44  ;;  %v908_v55 = vsel %vm906_vm1, %v897_v50, %v899_v12  ;;  %v1024_v16 = vsel %vm361_vm13, %v1016_v63, 0 }
 0x142   : > { %640 = vmatprep.mubr.bf16.mxu1 %v1525_v5  ;;  %922 = vmatprep.subr.bf16.mxu0 %v908_v55 }
 0x143   : > { %v585_v58 = vpop.permute.xlu0 %584 }
 0x144   : > { %v1083_v2 = vpop.permute.xlu1 %1082 }
 0x147   : > { %v895_v53 = vpop.permute.xlu0 %894 }
 0x148   : > { %v907_v60 = vsel %vm906_vm1, %v895_v53, %v897_v50  ;;  %v903_v52 = vpop.permute.xlu1 %902 }
 0x149   : > { %923 = vmatpush1.bf16.msra.mxu0 %v907_v60  ;;  %v910_v61 = vsel %vm906_vm1, %v903_v52, %v905_v21 }
 0x14a   : > { %1423 = vmatprep.subr.msk.bf16.mxu0 %vm361_vm13, %v910_v61 }
 0x14b   : > { %v901_v6 = vpop.permute.xlu0 %900 }
 0x14c   : > { %v909_v7 = vsel %vm906_vm1, %v901_v6, %v903_v52  ;;  %v696_v0 = vpop.permute.xlu1 %695 }
 0x14d   : > { %v917_v56 = vsel %vm361_vm13, %v909_v7, 0 }
 0x14e   : > { %925 = vmatpush1.bf16.msra.mxu0 %v917_v56 }
 0x14f   : > { %1029 = vmatprep.subr.bf16.mxu0 %v1015_v1  ;;  %v1081_v10 = vpop.permute.xlu0 %1080 }
 0x150   : > { %v694_v14 = vpop.permute.xlu1 %693  ;;  %v1089_v17 = vsel %vm1086_vm3, %v1081_v10, %v1083_v2 }
 0x151   : > { %1424 = vmatmul.mubr.msk.bf16.vlgmr.msra.gmra.mrb[0].mxu0 %vm357_vm15, %v1416_v46  ;;  %v1097_v37 = vsel %vm361_vm13, %v1089_v17, 0  ;;  %v706_v8 = vsel %vm705_vm5, %v694_v14, %v696_v0 }
 0x152   : > { %1030 = vmatpush1.bf16.msra.mxu0 %v1014_v13  ;;  %1061 = vmatprep.mubr.bf16.mxu0 %v1525_v5 }
 0x153   : > { %1432 = vmatprep.subr.msk.bf16.mxu0 %vm361_vm13, %v1017_v59  ;;  %v1085_v15 = vpop.permute.xlu0 %1084 }
 0x154   : > { %v700_v47 = vpop.permute.xlu1 %699  ;;  %v1090_v32 = vsel %vm1086_vm3, %v1083_v2, %v1085_v15 }
 0x156   : > { %1032 = vmatpush1.bf16.msra.mxu0 %v1024_v16 }
 0x157   : > { %1102 = vmatprep.subr.bf16.mxu0 %v1088_v54  ;;  %v698_v3 = vpop.permute.xlu0 %697 }
 0x158   : > { %v583_v4 = vpop.permute.xlu1 %582  ;;  %v707_v57 = vsel %vm705_vm5, %v696_v0, %v698_v3 }
 0x159   : > { %v594_v29 = vsel %vm592_vm4, %v583_v4, %v585_v58 }
 0x15a   : > { %608 = vmatprep.subr.bf16.mxu1 %v594_v29 }
 0x15b   : > { %v1186_v30 = vpop.permute.xlu0 %1185 }
 0x15c   : > { %v581_v33 = vpop.permute.xlu1 %580 }
 0x15d   : > { %1433 = vmatmul.mubr.msk.bf16.vlgmr.msra.gmra.mrb[0].mxu0 %vm357_vm15, %v1425_v18  ;;  %v593_v34 = vsel %vm592_vm4, %v581_v33, %v583_v4 }
 0x15e   : > { %1103 = vmatpush1.bf16.msra.mxu0 %v1087_v31  ;;  %1134 = vmatprep.mubr.bf16.mxu0 %v1525_v5 }
 0x15f   : > { %1435 = vmatprep.subr.msk.bf16.mxu0 %vm361_vm13, %v1090_v32  ;;  %v702_v35 = vpop.permute.xlu0 %701  ;;  %609 = vmatpush1.bf16.msra.mxu1 %v593_v34 }
 0x160   : > { %v587_v39 = vpop.permute.xlu1 %586  ;;  %v708_v43 = vsel %vm705_vm5, %v700_v47, %v702_v35 }
 0x161   : > { %v716_v21 = vsel %vm361_vm13, %v708_v43, 0 }
 0x162   : > { %1105 = vmatpush1.bf16.msra.mxu0 %v1097_v37 }
 0x163   : > { %v589_v40 = vpop.permute.xlu0 %588 }
 0x164   : > { %v595_v41 = vsel %vm592_vm4, %v587_v39, %v589_v40  ;;  %v596_v45 = vsel %vm592_vm4, %v589_v40, %v1847_v26  ;;  %v704_v51 = vpop.permute.xlu1 %703 }
 0x165   : > { %v603_v49 = vsel %vm361_vm13, %v595_v41, 0  ;;  %1396 = vmatprep.subr.msk.bf16.mxu1 %vm361_vm13, %v596_v45  ;;  %v709_v9 = vsel %vm705_vm5, %v702_v35, %v704_v51 }
 0x166   : > { %611 = vmatpush1.bf16.msra.mxu1 %v603_v49 }
 0x167   : > { %721 = vmatprep.subr.bf16.mxu1 %v707_v57  ;;  %v1182_v42 = vpop.permute.xlu0 %1181 }
 0x168   : > { %v1184_v11 = vpop.permute.xlu1 %1183 }
 0x169   : > { %1397 = vmatmul.mubr.msk.bf16.vlgmr.msra.gmra.mrb[0].mxu1 %vm357_vm15, %v1389_v36  ;;  %1436 = vmatmul.mubr.msk.bf16.vlgmr.msra.gmra.mrb[0].mxu0 %vm357_vm15, %v1434_v62  ;;  %v1194_v12 = vsel %vm1193_vm6, %v1182_v42, %v1184_v11  ;;  %v1195_v19 = vsel %vm1193_vm6, %v1184_v11, %v1186_v30 }
 0x16a   : > { %722 = vmatpush1.bf16.msra.mxu1 %v706_v8  ;;  %753 = vmatprep.mubr.bf16.mxu1 %v1525_v5 }
 0x16b   : > { %1405 = vmatprep.subr.msk.bf16.mxu1 %vm361_vm13, %v709_v9  ;;  %v1188_v20 = vpop.permute.xlu0 %1187  ;;  %1241 = vmatprep.mubr.bf16.mxu0 %v1525_v5  ;;  %v1398_v5 = vld [vmem:[%s1926_s1 + $0xc] sm:$0xf] }
 0x16c   : > { %1209 = vmatprep.subr.bf16.mxu0 %v1195_v19  ;;  %v1190_v22 = vpop.permute.xlu1 %1189 }
 0x16d   : > { %1210 = vmatpush1.bf16.msra.mxu0 %v1194_v12  ;;  %v1196_v23 = vsel %vm1193_vm6, %v1188_v20, %v1190_v22 }
 0x16e   : > { %724 = vmatpush1.bf16.msra.mxu1 %v716_v21  ;;  %v1204_v27 = vsel %vm361_vm13, %v1196_v23, 0 }
 0x16f   : > { %v1192_v24 = vpop.permute.xlu0 %1191 }
 0x170   : > { %v1197_v25 = vsel %vm1193_vm6, %v1190_v22, %v1192_v24 }
 0x171   : > { %1444 = vmatprep.subr.msk.bf16.mxu0 %vm361_vm13, %v1197_v25 }
 0x172   : > { %1212 = vmatpush1.bf16.msra.mxu0 %v1204_v27 }
 0x175   : > { %1406 = vmatmul.mubr.msk.bf16.vlgmr.msra.gmra.mrb[0].mxu1 %vm357_vm15, %v1398_v5  ;;  %1445 = vmatmul.mubr.msk.bf16.vlgmr.msra.gmra.mrb[0].mxu0 %vm357_vm15, %v1437_v28 }
 0x248   : > { %v755_v38 = vpop.f32.mrb[0].mxu1  ;;  %v1243_v26 = vpop.f32.mrb[0].mxu0 }
 0x249   : > { %v1451_v44 = vadd.f32 %v1243_v26, %v755_v38  ;;  %v757_v48 = vpop.f32.mrb[1].mxu1  ;;  %v1245_v50 = vpop.f32.mrb[1].mxu0 }
 0x24a   : > { %v1452_v55 = vadd.f32 %v1245_v50, %v757_v48  ;;  %v759_v58 = vpop.f32.mrb[2].mxu1  ;;  %v1247_v2 = vpop.f32.mrb[2].mxu0 }
 0x24b   : > { %v760_v53 = vpop.f32.mrb[3].mxu1  ;;  %v1248_v60 = vpop.f32.mrb[3].mxu0  ;;  %v1257_v52 = vmul.f32 %v1451_v44, %v1451_v44 }
 0x24c   : > { %v1450_v61 = vpack.c.bf16 %v1452_v55, %v1451_v44  ;;  %v1252_v6 = vadd.f32 %v1452_v55, %v1451_v44  ;;  %v1258_v7 = vmul.f32 %v1452_v55, %v1452_v55 }
 0x24e   : > { %1253 = vadd.xlane.f32.xlu1 %v1252_v6  ;;  %v1259_v56 = vadd.f32 %v1258_v7, %v1257_v52  ;;  %1272 = vst [vmem:[%s204_s10] sm:$0xff] %v1450_v61 }
 0x250   : > { %1260 = vadd.xlane.f32.xlu0 %v1259_v56 }
 0x2db   : > { %v1254_v0 = vpop.xlane.xlu1 %1253 }
 0x2dc   : > { %1256 = vst.msk [vmem:[%s208_s12] sm:$0xff] %vm1255_vm7, %v1254_v0 }
 0x2dd   : > { %v1261_v1 = vpop.xlane.xlu0 %1260 }
 0x2de   : > { %1263 = vst.msk [vmem:[%s208_s12] sm:$0xff] %vm1262_vm8, %v1261_v1 }
 0x2df PF: > { %s15_s15 = sadd.s32 1, %s1522_s15  }
 0x2e0   : > { %p12_p4 = scmp.ge.s32.totalorder %s15_s15, 4  }
 0x2e2   :  { %14 = sbr.rel (!%p12_p4) target bundleno = 1 (0x1), region = 82 }

// kernel: unet_forward.27
= control target key start
LH: loop header
LB: loop body
LE: loop exit
PB: predicated region body
PF: predicated region fallthrough
CT: control target
= control target key end

     0   :  { %s385_s12 = smov 0   ;;  %s412_s0 = inlined_call_operand.vmem [shape: bf16[2,8], index: 0, kind: input, shape index: {}]   ;;  %s413_s1 = inlined_call_operand.vmem [shape: f32[2,1], index: 1, kind: input, shape index: {}]   ;;  %s414_s2 = inlined_call_operand.vmem [shape: bf16[2,8,256], index: 2, kind: input, shape index: {}]   ;;  %s415_s3 = inlined_call_operand.vmem [shape: f32[2,2,256], index: 3, kind: output, shape index: {}]  }
   0x1 LB: > { %s316_s13 = sadd.s32 4294967295, %s362_s12   ;;  %p320_p0 = scmp.ge.s32.totalorder %s362_s12, 1  ;;  %s362_s12 = sphi %s385_s12, %s13_s12  }
   0x2   : > { %p137_p1 = scmp.lt.s32.totalorder %s362_s12, 3 }
   0x4   : > { %p138_p2 = pnand %p320_p0, %p137_p1 }
   0x5   : > { %p161_p3 = scmp.lt.s32.totalorder (!%p138_p2), %s316_s13, 1  ;;  %v364_v0 = vmov (!%p138_p2), 0   ;;  %v174_v1 = vld [vmem:[%s413_s1] sm:$0x3] (!%p138_p2)  ;;  %vm189_vm0 = vcmask (!%p138_p2), 1043456   ;;  %vm185_vm1 = vcmask (!%p138_p2), 64512  }
   0x6   : > { %141 = sbr.rel (%p138_p2) target bundleno = 267 (0x10b), region = 32  ;;  %228 = vmatprep.mubr.bf16.mxu0 (!%p138_p2), %v364_v0  ;;  %345 = vset.pattern.permute.xlu0 (!%p138_p2), %v364_v0  ;;  %v172_v6 = vld [vmem:[%s412_s0] sm:$0x1] (!%p138_p2) }
   0x7   : > { %177 = vperm.xlu0 (!%p138_p2), %345, %v174_v1  }
   0xd   : > { %s417_s13 = smov (!%p161_p3, %s316_s13), 1 }
   0xe   : > { %s334_s16 = sshll.u32 %s417_s13, 3  ;;  %s335_s22 = sshll.u32 %s417_s13, 2 }
   0xf   : > { %s165_s19 = scalar_lea.vmem %s414_s2, %s334_s16  ;;  %s170_s25 = scalar_lea.vmem %s415_s3, %s335_s22 }
  0x10   : > { %v173_v2 = vld [vmem:[%s165_s19] sm:$0xff] }
  0x11   : > { %v326_v3 = vcombine.high %v173_v2, %v173_v2  ;;  %v325_v4 = vcombine.low %v173_v2, %v173_v2 }
  0x13   : > { %327 = vmatprep.subr.msk.bf16.mxu0 %vm189_vm0, %v326_v3  ;;  %v191_v5 = vsel %vm189_vm0, %v325_v4, 0 }
  0x14   : > { %197 = vmatpush1.bf16.msra.mxu0 %v191_v5 }
  0x17   : > { %328 = vmatmul.mubr.msk.bf16.vlgmr.msra.gmra.mrb[0].mxu0 %vm185_vm1, %v172_v6 }
  0x86   : > { %v178_v7 = vpop.permute.xlu0 %177 }
  0xea   : > { %v230_v8 = vpop.f32.mrb[0].mxu0 }
  0xeb   : > { %v231_v9 = vadd.f32 %v230_v8, %v178_v7  ;;  %v232_v10 = vpop.f32.mrb[1].mxu0 }
  0xec   : > { %v233_v11 = vadd.f32 %v232_v10, %v178_v7  ;;  %v234_v12 = vpop.f32.mrb[2].mxu0 }
  0xed   : > { %v329_v13 = vmul.f32 -1.442695, %v231_v9  ;;  %v235_v14 = vpop.f32.mrb[3].mxu0 }
  0xee   : > { %v330_v15 = vmul.f32 -1.442695, %v233_v11 }
  0xef   : > { %348 = vpow2.f32 %v329_v13 }
  0xf0   : > { %350 = vpow2.f32 %v330_v15 }
  0xf9   : > { %v349_v16 = vpop.eup %348 }
  0xfa   : > { %v351_v17 = vpop.eup %350  ;;  %v243_v18 = vadd.f32 1.0, %v349_v16 }
  0xfb   : > { %v244_v19 = vadd.f32 1.0, %v351_v17 }
  0xfc   : > { %352 = vrcp.f32 %v243_v18 }
  0xfd   : > { %354 = vrcp.f32 %v244_v19 }
 0x106   : > { %v353_v20 = vpop.eup %352 }
 0x107   : > { %v355_v21 = vpop.eup %354 }
 0x108   : > { %v251_v22 = vcombine.low %v353_v20, %v355_v21 }
 0x10a   : > { %331 = vst.sshfl [vmem:[%s170_s25] sm:$0x33 pattern:$0x76325410] %v251_v22 }
 0x10b PF: > { %s13_s12 = sadd.s32 1, %s362_s12  }
 0x10c   : > { %p10_p4 = scmp.ge.s32.totalorder %s13_s12, 4  }
 0x10e   :  { %12 = sbr.rel (!%p10_p4) target bundleno = 1 (0x1), region = 62 }

</bundles_post_ra>
